<compile_context>
chip_gen: v7x
topology: tpu7x:2x2x1
jax: 0.10.0
libtpu: 0.0.40
codegen_flags: <defaults>
</compile_context>

<pallas_src>
import jax
import jax.numpy as jnp
from jax import lax
from jax.experimental import pallas as pl
from jax.experimental.pallas import tpu as pltpu


def _round_up(x, m):
    return ((x + m - 1) // m) * m


_GATE_SCALE = (1.0, 1.0, 2.0, 1.0)  # [i, f, g, o]; g pre-scaled by 2 for the sigmoid trick


def _prep_gate_weight(w, H, Hp):
    """(4H, C) -> (4Hp, C): per-gate row padding + 2x pre-scale of the g-gate rows
    (so tanh(x) = 2*sigmoid(2x) - 1 lets one fused sigmoid cover all four gates).
    Padded rows are exactly zero (and stay exactly zero in bf16)."""
    C = w.shape[1]
    w4 = w.reshape(4, H, C) * jnp.array(_GATE_SCALE, w.dtype)[:, None, None]
    return jnp.pad(w4, ((0, 0), (0, Hp - H), (0, 0))).reshape(4 * Hp, C)


def _prep_gate_bias(b, H, Hp):
    b4 = b.reshape(4, H) * jnp.array(_GATE_SCALE, b.dtype)[:, None]
    return jnp.pad(b4, ((0, 0), (0, Hp - H))).reshape(4 * Hp)


def _pad_cols(w, C, Cp):
    return jnp.pad(w, ((0, 0), (0, Cp - C)))


def _lstm_recurrent_kernel(gx_ref, whh0_ref, w1_ref, b1_ref,
                           h1seq_ref,
                           h0_ref, c0_ref, h1_ref, c1_ref):
    """One grid step == one (batch block, time chunk).

    gx_ref:    (T, Bb, 4Hp) bf16  precomputed layer-0 input gates (g rows pre-scaled x2)
    whh0_ref:  (Hp, 4Hp)    bf16  layer-0 recurrent weights (transposed, gate-padded)
    w1_ref:    (2Hp, 4Hp)   bf16  layer-1 stacked [Wih1; Whh1] (transposed, gate-padded)
    b1_ref:    (1, 4Hp)     f32   layer-1 bias (bih1 + bhh1, gate-padded, g x2)
    h1seq_ref: (T, Bb, Hp)  bf16  layer-1 hidden sequence (final Linear applied outside)
    h0/c0/h1/c1: (Bb, Hp)   f32   persistent recurrent state (VMEM scratch)
    """
    Hp = h0_ref.shape[1]
    T = gx_ref.shape[0]

    @pl.when(pl.program_id(1) == 0)          # first time chunk of this batch block
    def _():
        h0_ref[...] = jnp.zeros_like(h0_ref)
        c0_ref[...] = jnp.zeros_like(c0_ref)
        h1_ref[...] = jnp.zeros_like(h1_ref)
        c1_ref[...] = jnp.zeros_like(c1_ref)

    whh0 = whh0_ref[...]
    w1 = w1_ref[...]
    b1 = b1_ref[...]

    def gate_math(pre, c_prev):
        # One fused sigmoid over the whole (Bb, 4Hp) slab (single EUP push);
        # g was pre-scaled by 2, so g = tanh(g_orig) = 2*sigmoid(2*g_orig) - 1.
        s = jax.nn.sigmoid(pre)
        i = s[:, 0 * Hp:1 * Hp]
        f = s[:, 1 * Hp:2 * Hp]
        g = 2.0 * s[:, 2 * Hp:3 * Hp] - 1.0
        o = s[:, 3 * Hp:4 * Hp]
        c_new = f * c_prev + i * g
        h_new = o * jnp.tanh(c_new)
        return h_new, c_new

    def body(t, carry):
        h0, c0, h1, c1 = carry
        # Layer 0: input projection was hoisted; only the recurrent matmul remains.
        g0 = gx_ref[t].astype(jnp.float32) + jnp.dot(
            h0.astype(jnp.bfloat16), whh0, preferred_element_type=jnp.float32)
        h0n, c0n = gate_math(g0, c0)
        # Layer 1: single fused K=2*Hp matmul over [h0_new, h1] (dropout = identity at eval).
        h01 = jnp.concatenate([h0n, h1], axis=-1).astype(jnp.bfloat16)
        g1 = jnp.dot(h01, w1, preferred_element_type=jnp.float32) + b1
        h1n, c1n = gate_math(g1, c1)
        h1seq_ref[t] = h1n.astype(h1seq_ref.dtype)
        return h0n, c0n, h1n, c1n

    carry0 = (h0_ref[...], c0_ref[...], h1_ref[...], c1_ref[...])
    h0, c0, h1, c1 = lax.fori_loop(0, T, body, carry0, unroll=8)
    h0_ref[...] = h0
    c0_ref[...] = c0
    h1_ref[...] = h1
    c1_ref[...] = c1


def lstm_forward_pallas(x_bsd, params, *, max_chunk=32, batch_block=8):
    """x_bsd: (B, S, D) float32, batch_first like PyTorch. Returns (B, S, D) float32."""
    B, S, D = x_bsd.shape
    H = params["whh0"].shape[1]               # whh0 stored as (4H, H)
    Hp = _round_up(H, 128)                    # lane-aligned per-gate width
    G = 4 * Hp

    # Time chunking: pad S up to a multiple of T (never degrade to T=1 for odd S).
    T = min(max_chunk, S)
    S_pad = _round_up(S, T)
    nt = S_pad // T

    # Batch: pad to sublane-full blocks; leading grid axis is parallel (v7x 2nd core).
    Bb = batch_block
    Bp = _round_up(B, Bb)
    nb = Bp // Bb

    x_sbd = jnp.transpose(x_bsd, (1, 0, 2)).astype(jnp.float32)       # (S, B, D)
    x_sbd = jnp.pad(x_sbd, ((0, S_pad - S), (0, Bp - B), (0, 0)))     # (S_pad, Bp, D)

    # --- Layer-0 input projection hoisted out: bf16 operands, f32 accumulation ---
    wih0_p = _prep_gate_weight(params["wih0"], H, Hp)                  # (G, D)
    b0_p = _prep_gate_bias(params["bih0"] + params["bhh0"], H, Hp)     # (G,)
    gx = jnp.einsum("sbd,gd->sbg", x_sbd.astype(jnp.bfloat16),
                    wih0_p.astype(jnp.bfloat16),
                    preferred_element_type=jnp.float32) + b0_p
    gx = gx.astype(jnp.bfloat16)                                       # (S_pad, Bp, G)

    # --- Kernel weights: gate-padded, g-rows x2, pre-transposed, bf16 ---
    def to_kT(w):                                                      # (4H, H) -> (Hp, G)
        return _pad_cols(_prep_gate_weight(w, H, Hp), H, Hp).T.astype(jnp.bfloat16)

    whh0_k = to_kT(params["whh0"])                                     # (Hp, G)
    w1_k = jnp.concatenate([to_kT(params["wih1"]),
                            to_kT(params["whh1"])], axis=0)            # (2Hp, G)
    b1_k = _prep_gate_bias(params["bih1"] + params["bhh1"], H, Hp).reshape(1, G)

    # Grid-invariant inputs: single-buffered (no benefit from double buffering).
    def const_spec(shape):
        return pl.BlockSpec(shape, lambda b, s: (0,) * len(shape),
                            pipeline_mode=pl.Buffered(1))

    # Explicit VMEM budget: weights (1x) + double-buffered gx/out chunks + state.
    weights_bytes = (Hp * G + 2 * Hp * G) * 2 + G * 4
    stream_bytes = 2 * (T * Bb * G * 2 + T * Bb * Hp * 2)
    state_bytes = 4 * Bb * Hp * 4
    vmem_limit = int(min(max(int(1.5 * (weights_bytes + stream_bytes + state_bytes))
                             + (4 << 20), 16 << 20), 64 << 20))

    # Advisory cost estimate so XLA schedules the hoisted GEMMs around the kernel.
    flops = S_pad * Bp * (2 * Hp * G + 2 * (2 * Hp) * G)
    transcendentals = S_pad * Bp * 2 * 5 * Hp
    bytes_accessed = (S_pad * Bp * G * 2 + S_pad * Bp * Hp * 2
                      + 3 * Hp * G * 2 + G * 4)

    h1_seq = pl.pallas_call(
        _lstm_recurrent_kernel,
        out_shape=jax.ShapeDtypeStruct((S_pad, Bp, Hp), jnp.bfloat16),
        grid_spec=pltpu.PrefetchScalarGridSpec(
            num_scalar_prefetch=0,
            grid=(nb, nt),                                             # (batch, time)
            in_specs=[
                pl.BlockSpec((T, Bb, G), lambda b, s: (s, b, 0)),      # gx chunk
                const_spec((Hp, G)),                                   # whh0^T
                const_spec((2 * Hp, G)),                               # [wih1; whh1]^T
                const_spec((1, G)),                                    # b1
            ],
            out_specs=pl.BlockSpec((T, Bb, Hp), lambda b, s: (s, b, 0)),
            scratch_shapes=[pltpu.VMEM((Bb, Hp), jnp.float32)] * 4,    # h0, c0, h1, c1
        ),
        compiler_params=pltpu.CompilerParams(
            dimension_semantics=("parallel", "arbitrary"),             # batch ||, time serial
            vmem_limit_bytes=vmem_limit),
        cost_estimate=pl.CostEstimate(flops=flops,
                                      transcendentals=transcendentals,
                                      bytes_accessed=bytes_accessed),
    )(gx, whh0_k, w1_k, b1_k)

    # Drop time/batch padding, then the hoisted final Linear (bf16 ops, f32 accumulation).
    h1_seq = h1_seq[:S, :B]                                            # (S, B, Hp) bf16
    wlin_p = _pad_cols(params["wlin"], H, Hp).astype(jnp.bfloat16)     # (D, Hp)
    out_sbd = jnp.einsum("sbh,dh->sbd", h1_seq, wlin_p,
                         preferred_element_type=jnp.float32) + params["blin"]
    return jnp.transpose(out_sbd, (1, 0, 2))                           # (B, S, D)


def lstm_forward_ref(x_bsd, params):
    """Pure-JAX f32 reference (lax.scan) mirroring torch.nn.LSTM + Linear, eval mode."""
    B, S, D = x_bsd.shape
    H = params["whh0"].shape[1]

    def cell(x_in, h_prev, c_prev, wih, whh, bih, bhh):
        gates = x_in @ wih.T + bih + h_prev @ whh.T + bhh
        i = jax.nn.sigmoid(gates[:, 0:H])
        f = jax.nn.sigmoid(gates[:, H:2 * H])
        g = jnp.tanh(gates[:, 2 * H:3 * H])
        o = jax.nn.sigmoid(gates[:, 3 * H:4 * H])
        c_new = f * c_prev + i * g
        h_new = o * jnp.tanh(c_new)
        return h_new, c_new

    def step(carry, x_t):
        h0, c0, h1, c1 = carry
        h0, c0 = cell(x_t, h0, c0, params["wih0"], params["whh0"],
                      params["bih0"], params["bhh0"])
        h1, c1 = cell(h0, h1, c1, params["wih1"], params["whh1"],
                      params["bih1"], params["bhh1"])
        return (h0, c0, h1, c1), h1

    z = jnp.zeros((B, H), jnp.float32)
    _, hs = lax.scan(step, (z, z, z, z), jnp.transpose(x_bsd, (1, 0, 2)))
    out = hs @ params["wlin"].T + params["blin"]                        # (S, B, D)
    return jnp.transpose(out, (1, 0, 2))


def init_params(key, model_dim, hid_dim):
    """Deterministic init matching PyTorch shapes (uniform(-1/sqrt(H), 1/sqrt(H)))."""
    k = 1.0 / jnp.sqrt(hid_dim)
    keys = jax.random.split(key, 10)
    u = lambda kk, shape: jax.random.uniform(kk, shape, jnp.float32, -k, k)
    return {
        # layer 0
        "wih0": u(keys[0], (4 * hid_dim, model_dim)),
        "whh0": u(keys[1], (4 * hid_dim, hid_dim)),
        "bih0": u(keys[2], (4 * hid_dim,)),
        "bhh0": u(keys[3], (4 * hid_dim,)),
        # layer 1
        "wih1": u(keys[4], (4 * hid_dim, hid_dim)),
        "whh1": u(keys[5], (4 * hid_dim, hid_dim)),
        "bih1": u(keys[6], (4 * hid_dim,)),
        "bhh1": u(keys[7], (4 * hid_dim,)),
        # final linear
        "wlin": u(keys[8], (model_dim, hid_dim)),
        "blin": u(keys[9], (model_dim,)),
    }


if __name__ == "__main__":
    B, S, D, H = 2, 8, 16, 32  # batch, seq, model_dim, hid_dim

    key = jax.random.PRNGKey(0)
    kx, kp = jax.random.split(key)
    x = jax.random.normal(kx, (B, S, D), jnp.float32)
    params = init_params(kp, D, H)

    out = lstm_forward_pallas(x, params)
    out = jax.block_until_ready(out)

    ref = lstm_forward_ref(x, params)
    assert out.shape == (B, S, D)
    # bf16 operands / bf16 gx + h1 streams (f32 accumulation) vs f32 reference.
    assert jnp.allclose(out, ref, atol=2e-2, rtol=2e-2)

    print("KERNEL_OK")
</pallas_src>

<mosaic_0001>
module attributes {stable_mosaic.version = 11 : i64} {
  func.func @_lstm_recurrent_kernel(%arg0: i32, %arg1: i32, %arg2: memref<8x8x512xbf16, #tpu.memory_space<vmem>>, %arg3: memref<128x512xbf16, #tpu.memory_space<vmem>>, %arg4: memref<256x512xbf16, #tpu.memory_space<vmem>>, %arg5: memref<1x512xf32, #tpu.memory_space<vmem>>, %arg6: memref<8x8x128xbf16, #tpu.memory_space<vmem>>, %arg7: memref<8x128xf32, #tpu.memory_space<vmem>>, %arg8: memref<8x128xf32, #tpu.memory_space<vmem>>, %arg9: memref<8x128xf32, #tpu.memory_space<vmem>>, %arg10: memref<8x128xf32, #tpu.memory_space<vmem>>) attributes {dimension_semantics = [#tpu.dimension_semantics<parallel>, #tpu.dimension_semantics<arbitrary>], iteration_bounds = array<i64: 1, 1>, scalar_prefetch = 0 : i64, scratch_operands = 4 : i64, tpu.core_type = #tpu.core_type<tc>, window_params = [{transform_indices = @transform_0, window_bounds = array<i64: 8, 8, 512>}, {pipeline_mode = #tpu.pipeline_mode<synchronous>, transform_indices = @transform_1, window_bounds = array<i64: 128, 512>}, {pipeline_mode = #tpu.pipeline_mode<synchronous>, transform_indices = @transform_2, window_bounds = array<i64: 256, 512>}, {pipeline_mode = #tpu.pipeline_mode<synchronous>, transform_indices = @transform_3, window_bounds = array<i64: 1, 512>}, {transform_indices = @transform_4, window_bounds = array<i64: 8, 8, 128>}]} {
    %c0_i32 = arith.constant 0 : i32
    %0 = arith.cmpi eq, %arg1, %c0_i32 : i32
    %1 = arith.extui %0 : i1 to i32
    %c0_i32_0 = arith.constant 0 : i32
    %2 = arith.cmpi ne, %1, %c0_i32_0 : i32
    scf.if %2 {
      %cst_118 = arith.constant 0.000000e+00 : f32
      %438 = vector.broadcast %cst_118 : f32 to vector<8x128xf32>
      %c0_119 = arith.constant 0 : index
      %c0_120 = arith.constant 0 : index
      %439 = vector.load %arg7[%c0_119, %c0_120] : memref<8x128xf32, #tpu.memory_space<vmem>>, vector<8x128xf32>
      tpu.vector_store %arg7[%c0_119, %c0_120], %438 {strides = array<i32>} : memref<8x128xf32, #tpu.memory_space<vmem>>, vector<8x128xf32>,
      %cst_121 = arith.constant 0.000000e+00 : f32
      %440 = vector.broadcast %cst_121 : f32 to vector<8x128xf32>
      %c0_122 = arith.constant 0 : index
      %c0_123 = arith.constant 0 : index
      %441 = vector.load %arg8[%c0_122, %c0_123] : memref<8x128xf32, #tpu.memory_space<vmem>>, vector<8x128xf32>
      tpu.vector_store %arg8[%c0_122, %c0_123], %440 {strides = array<i32>} : memref<8x128xf32, #tpu.memory_space<vmem>>, vector<8x128xf32>,
      %cst_124 = arith.constant 0.000000e+00 : f32
      %442 = vector.broadcast %cst_124 : f32 to vector<8x128xf32>
      %c0_125 = arith.constant 0 : index
      %c0_126 = arith.constant 0 : index
      %443 = vector.load %arg9[%c0_125, %c0_126] : memref<8x128xf32, #tpu.memory_space<vmem>>, vector<8x128xf32>
      tpu.vector_store %arg9[%c0_125, %c0_126], %442 {strides = array<i32>} : memref<8x128xf32, #tpu.memory_space<vmem>>, vector<8x128xf32>,
      %cst_127 = arith.constant 0.000000e+00 : f32
      %444 = vector.broadcast %cst_127 : f32 to vector<8x128xf32>
      %c0_128 = arith.constant 0 : index
      %c0_129 = arith.constant 0 : index
      %445 = vector.load %arg10[%c0_128, %c0_129] : memref<8x128xf32, #tpu.memory_space<vmem>>, vector<8x128xf32>
      tpu.vector_store %arg10[%c0_128, %c0_129], %444 {strides = array<i32>} : memref<8x128xf32, #tpu.memory_space<vmem>>, vector<8x128xf32>,
    } else {
    }
    %c0 = arith.constant 0 : index
    %c0_1 = arith.constant 0 : index
    %3 = vector.load %arg3[%c0, %c0_1] : memref<128x512xbf16, #tpu.memory_space<vmem>>, vector<128x512xbf16>
    %c0_2 = arith.constant 0 : index
    %c0_3 = arith.constant 0 : index
    %4 = vector.load %arg4[%c0_2, %c0_3] : memref<256x512xbf16, #tpu.memory_space<vmem>>, vector<256x512xbf16>
    %c0_4 = arith.constant 0 : index
    %c0_5 = arith.constant 0 : index
    %5 = vector.load %arg5[%c0_4, %c0_5] : memref<1x512xf32, #tpu.memory_space<vmem>>, vector<1x512xf32>
    %c0_6 = arith.constant 0 : index
    %c0_7 = arith.constant 0 : index
    %6 = vector.load %arg7[%c0_6, %c0_7] : memref<8x128xf32, #tpu.memory_space<vmem>>, vector<8x128xf32>
    %c0_8 = arith.constant 0 : index
    %c0_9 = arith.constant 0 : index
    %7 = vector.load %arg8[%c0_8, %c0_9] : memref<8x128xf32, #tpu.memory_space<vmem>>, vector<8x128xf32>
    %c0_10 = arith.constant 0 : index
    %c0_11 = arith.constant 0 : index
    %8 = vector.load %arg9[%c0_10, %c0_11] : memref<8x128xf32, #tpu.memory_space<vmem>>, vector<8x128xf32>
    %c0_12 = arith.constant 0 : index
    %c0_13 = arith.constant 0 : index
    %9 = vector.load %arg10[%c0_12, %c0_13] : memref<8x128xf32, #tpu.memory_space<vmem>>, vector<8x128xf32>
    %c0_i32_14 = arith.constant 0 : i32
    %10 = arith.index_cast %c0_i32_14 : i32 to index
    %c0_15 = arith.constant 0 : index
    %c0_16 = arith.constant 0 : index
    %11 = vector.load %arg2[%10, %c0_15, %c0_16] : memref<8x8x512xbf16, #tpu.memory_space<vmem>>, vector<1x8x512xbf16>
    %12 = vector.shape_cast %11 : vector<1x8x512xbf16> to vector<8x512xbf16>
    %13 = arith.extf %12 : vector<8x512xbf16> to vector<8x512xf32>
    %14 = arith.truncf %6 : vector<8x128xf32> to vector<8x128xbf16>
    %cst = arith.constant dense<0.000000e+00> : vector<8x512xf32>
    %15 = tpu.matmul %14, %3, %cst {dimension_numbers = #tpu.dot_dimension_numbers<[1], [0], [0], [1], [0, 0, 1, 1], [], []>} : vector<8x128xbf16>, vector<128x512xbf16>, vector<8x512xf32> -> vector<8x512xf32>
    %16 = arith.addf %13, %15 : vector<8x512xf32>
    %17 = arith.negf %16 : vector<8x512xf32>
    %18 = math.exp %17 : vector<8x512xf32>
    %cst_17 = arith.constant 1.000000e+00 : f32
    %19 = vector.broadcast %cst_17 : f32 to vector<8x512xf32>
    %20 = arith.addf %19, %18 : vector<8x512xf32>
    %21 = arith.divf %19, %20 : vector<8x512xf32>
    %22 = vector.extract_strided_slice %21 {offsets = [0, 0], sizes = [8, 128], strides = [1, 1]} : vector<8x512xf32> to vector<8x128xf32>
    %23 = vector.extract_strided_slice %21 {offsets = [0, 128], sizes = [8, 128], strides = [1, 1]} : vector<8x512xf32> to vector<8x128xf32>
    %24 = vector.extract_strided_slice %21 {offsets = [0, 256], sizes = [8, 128], strides = [1, 1]} : vector<8x512xf32> to vector<8x128xf32>
    %cst_18 = arith.constant 2.000000e+00 : f32
    %25 = vector.broadcast %cst_18 : f32 to vector<8x128xf32>
    %26 = arith.mulf %25, %24 : vector<8x128xf32>
    %cst_19 = arith.constant 1.000000e+00 : f32
    %27 = vector.broadcast %cst_19 : f32 to vector<8x128xf32>
    %28 = arith.subf %26, %27 : vector<8x128xf32>
    %29 = vector.extract_strided_slice %21 {offsets = [0, 384], sizes = [8, 128], strides = [1, 1]} : vector<8x512xf32> to vector<8x128xf32>
    %30 = arith.mulf %23, %7 : vector<8x128xf32>
    %31 = arith.mulf %22, %28 : vector<8x128xf32>
    %32 = arith.addf %30, %31 : vector<8x128xf32>
    %33 = math.tanh %32 : vector<8x128xf32>
    %34 = arith.mulf %29, %33 : vector<8x128xf32>
    %35 = tpu.concatenate %34, %8 in 1 : vector<8x128xf32>, vector<8x128xf32> -> vector<8x256xf32>
    %36 = arith.truncf %35 : vector<8x256xf32> to vector<8x256xbf16>
    %cst_20 = arith.constant dense<0.000000e+00> : vector<8x512xf32>
    %37 = tpu.matmul %36, %4, %cst_20 {dimension_numbers = #tpu.dot_dimension_numbers<[1], [0], [0], [1], [0, 0, 1, 1], [], []>} : vector<8x256xbf16>, vector<256x512xbf16>, vector<8x512xf32> -> vector<8x512xf32>
    %38 = vector.broadcast %5 : vector<1x512xf32> to vector<8x512xf32>
    %39 = arith.addf %37, %38 : vector<8x512xf32>
    %40 = arith.negf %39 : vector<8x512xf32>
    %41 = math.exp %40 : vector<8x512xf32>
    %cst_21 = arith.constant 1.000000e+00 : f32
    %42 = vector.broadcast %cst_21 : f32 to vector<8x512xf32>
    %43 = arith.addf %42, %41 : vector<8x512xf32>
    %44 = arith.divf %42, %43 : vector<8x512xf32>
    %45 = vector.extract_strided_slice %44 {offsets = [0, 0], sizes = [8, 128], strides = [1, 1]} : vector<8x512xf32> to vector<8x128xf32>
    %46 = vector.extract_strided_slice %44 {offsets = [0, 128], sizes = [8, 128], strides = [1, 1]} : vector<8x512xf32> to vector<8x128xf32>
    %47 = vector.extract_strided_slice %44 {offsets = [0, 256], sizes = [8, 128], strides = [1, 1]} : vector<8x512xf32> to vector<8x128xf32>
    %cst_22 = arith.constant 2.000000e+00 : f32
    %48 = vector.broadcast %cst_22 : f32 to vector<8x128xf32>
    %49 = arith.mulf %48, %47 : vector<8x128xf32>
    %cst_23 = arith.constant 1.000000e+00 : f32
    %50 = vector.broadcast %cst_23 : f32 to vector<8x128xf32>
    %51 = arith.subf %49, %50 : vector<8x128xf32>
    %52 = vector.extract_strided_slice %44 {offsets = [0, 384], sizes = [8, 128], strides = [1, 1]} : vector<8x512xf32> to vector<8x128xf32>
    %53 = arith.mulf %46, %9 : vector<8x128xf32>
    %54 = arith.mulf %45, %51 : vector<8x128xf32>
    %55 = arith.addf %53, %54 : vector<8x128xf32>
    %56 = math.tanh %55 : vector<8x128xf32>
    %57 = arith.mulf %52, %56 : vector<8x128xf32>
    %58 = arith.truncf %57 : vector<8x128xf32> to vector<8x128xbf16>
    %59 = arith.index_cast %c0_i32_14 : i32 to index
    %c0_24 = arith.constant 0 : index
    %c0_25 = arith.constant 0 : index
    %60 = vector.load %arg6[%59, %c0_24, %c0_25] : memref<8x8x128xbf16, #tpu.memory_space<vmem>>, vector<1x8x128xbf16>
    %61 = vector.shape_cast %60 : vector<1x8x128xbf16> to vector<8x128xbf16>
    %62 = vector.shape_cast %58 : vector<8x128xbf16> to vector<1x8x128xbf16>
    tpu.vector_store %arg6[%59, %c0_24, %c0_25], %62 {strides = array<i32>} : memref<8x8x128xbf16, #tpu.memory_space<vmem>>, vector<1x8x128xbf16>,
    %c1_i32 = arith.constant 1 : i32
    %63 = arith.index_cast %c1_i32 : i32 to index
    %c0_26 = arith.constant 0 : index
    %c0_27 = arith.constant 0 : index
    %64 = vector.load %arg2[%63, %c0_26, %c0_27] : memref<8x8x512xbf16, #tpu.memory_space<vmem>>, vector<1x8x512xbf16>
    %65 = vector.shape_cast %64 : vector<1x8x512xbf16> to vector<8x512xbf16>
    %66 = arith.extf %65 : vector<8x512xbf16> to vector<8x512xf32>
    %67 = arith.truncf %34 : vector<8x128xf32> to vector<8x128xbf16>
    %cst_28 = arith.constant dense<0.000000e+00> : vector<8x512xf32>
    %68 = tpu.matmul %67, %3, %cst_28 {dimension_numbers = #tpu.dot_dimension_numbers<[1], [0], [0], [1], [0, 0, 1, 1], [], []>} : vector<8x128xbf16>, vector<128x512xbf16>, vector<8x512xf32> -> vector<8x512xf32>
    %69 = arith.addf %66, %68 : vector<8x512xf32>
    %70 = arith.negf %69 : vector<8x512xf32>
    %71 = math.exp %70 : vector<8x512xf32>
    %cst_29 = arith.constant 1.000000e+00 : f32
    %72 = vector.broadcast %cst_29 : f32 to vector<8x512xf32>
    %73 = arith.addf %72, %71 : vector<8x512xf32>
    %74 = arith.divf %72, %73 : vector<8x512xf32>
    %75 = vector.extract_strided_slice %74 {offsets = [0, 0], sizes = [8, 128], strides = [1, 1]} : vector<8x512xf32> to vector<8x128xf32>
    %76 = vector.extract_strided_slice %74 {offsets = [0, 128], sizes = [8, 128], strides = [1, 1]} : vector<8x512xf32> to vector<8x128xf32>
    %77 = vector.extract_strided_slice %74 {offsets = [0, 256], sizes = [8, 128], strides = [1, 1]} : vector<8x512xf32> to vector<8x128xf32>
    %cst_30 = arith.constant 2.000000e+00 : f32
    %78 = vector.broadcast %cst_30 : f32 to vector<8x128xf32>
    %79 = arith.mulf %78, %77 : vector<8x128xf32>
    %cst_31 = arith.constant 1.000000e+00 : f32
    %80 = vector.broadcast %cst_31 : f32 to vector<8x128xf32>
    %81 = arith.subf %79, %80 : vector<8x128xf32>
    %82 = vector.extract_strided_slice %74 {offsets = [0, 384], sizes = [8, 128], strides = [1, 1]} : vector<8x512xf32> to vector<8x128xf32>
    %83 = arith.mulf %76, %32 : vector<8x128xf32>
    %84 = arith.mulf %75, %81 : vector<8x128xf32>
    %85 = arith.addf %83, %84 : vector<8x128xf32>
    %86 = math.tanh %85 : vector<8x128xf32>
    %87 = arith.mulf %82, %86 : vector<8x128xf32>
    %88 = tpu.concatenate %87, %57 in 1 : vector<8x128xf32>, vector<8x128xf32> -> vector<8x256xf32>
    %89 = arith.truncf %88 : vector<8x256xf32> to vector<8x256xbf16>
    %cst_32 = arith.constant dense<0.000000e+00> : vector<8x512xf32>
    %90 = tpu.matmul %89, %4, %cst_32 {dimension_numbers = #tpu.dot_dimension_numbers<[1], [0], [0], [1], [0, 0, 1, 1], [], []>} : vector<8x256xbf16>, vector<256x512xbf16>, vector<8x512xf32> -> vector<8x512xf32>
    %91 = vector.broadcast %5 : vector<1x512xf32> to vector<8x512xf32>
    %92 = arith.addf %90, %91 : vector<8x512xf32>
    %93 = arith.negf %92 : vector<8x512xf32>
    %94 = math.exp %93 : vector<8x512xf32>
    %cst_33 = arith.constant 1.000000e+00 : f32
    %95 = vector.broadcast %cst_33 : f32 to vector<8x512xf32>
    %96 = arith.addf %95, %94 : vector<8x512xf32>
    %97 = arith.divf %95, %96 : vector<8x512xf32>
    %98 = vector.extract_strided_slice %97 {offsets = [0, 0], sizes = [8, 128], strides = [1, 1]} : vector<8x512xf32> to vector<8x128xf32>
    %99 = vector.extract_strided_slice %97 {offsets = [0, 128], sizes = [8, 128], strides = [1, 1]} : vector<8x512xf32> to vector<8x128xf32>
    %100 = vector.extract_strided_slice %97 {offsets = [0, 256], sizes = [8, 128], strides = [1, 1]} : vector<8x512xf32> to vector<8x128xf32>
    %cst_34 = arith.constant 2.000000e+00 : f32
    %101 = vector.broadcast %cst_34 : f32 to vector<8x128xf32>
    %102 = arith.mulf %101, %100 : vector<8x128xf32>
    %cst_35 = arith.constant 1.000000e+00 : f32
    %103 = vector.broadcast %cst_35 : f32 to vector<8x128xf32>
    %104 = arith.subf %102, %103 : vector<8x128xf32>
    %105 = vector.extract_strided_slice %97 {offsets = [0, 384], sizes = [8, 128], strides = [1, 1]} : vector<8x512xf32> to vector<8x128xf32>
    %106 = arith.mulf %99, %55 : vector<8x128xf32>
    %107 = arith.mulf %98, %104 : vector<8x128xf32>
    %108 = arith.addf %106, %107 : vector<8x128xf32>
    %109 = math.tanh %108 : vector<8x128xf32>
    %110 = arith.mulf %105, %109 : vector<8x128xf32>
    %111 = arith.truncf %110 : vector<8x128xf32> to vector<8x128xbf16>
    %112 = arith.index_cast %c1_i32 : i32 to index
    %c0_36 = arith.constant 0 : index
    %c0_37 = arith.constant 0 : index
    %113 = vector.load %arg6[%112, %c0_36, %c0_37] : memref<8x8x128xbf16, #tpu.memory_space<vmem>>, vector<1x8x128xbf16>
    %114 = vector.shape_cast %113 : vector<1x8x128xbf16> to vector<8x128xbf16>
    %115 = vector.shape_cast %111 : vector<8x128xbf16> to vector<1x8x128xbf16>
    tpu.vector_store %arg6[%112, %c0_36, %c0_37], %115 {strides = array<i32>} : memref<8x8x128xbf16, #tpu.memory_space<vmem>>, vector<1x8x128xbf16>,
    %c2_i32 = arith.constant 2 : i32
    %116 = arith.index_cast %c2_i32 : i32 to index
    %c0_38 = arith.constant 0 : index
    %c0_39 = arith.constant 0 : index
    %117 = vector.load %arg2[%116, %c0_38, %c0_39] : memref<8x8x512xbf16, #tpu.memory_space<vmem>>, vector<1x8x512xbf16>
    %118 = vector.shape_cast %117 : vector<1x8x512xbf16> to vector<8x512xbf16>
    %119 = arith.extf %118 : vector<8x512xbf16> to vector<8x512xf32>
    %120 = arith.truncf %87 : vector<8x128xf32> to vector<8x128xbf16>
    %cst_40 = arith.constant dense<0.000000e+00> : vector<8x512xf32>
    %121 = tpu.matmul %120, %3, %cst_40 {dimension_numbers = #tpu.dot_dimension_numbers<[1], [0], [0], [1], [0, 0, 1, 1], [], []>} : vector<8x128xbf16>, vector<128x512xbf16>, vector<8x512xf32> -> vector<8x512xf32>
    %122 = arith.addf %119, %121 : vector<8x512xf32>
    %123 = arith.negf %122 : vector<8x512xf32>
    %124 = math.exp %123 : vector<8x512xf32>
    %cst_41 = arith.constant 1.000000e+00 : f32
    %125 = vector.broadcast %cst_41 : f32 to vector<8x512xf32>
    %126 = arith.addf %125, %124 : vector<8x512xf32>
    %127 = arith.divf %125, %126 : vector<8x512xf32>
    %128 = vector.extract_strided_slice %127 {offsets = [0, 0], sizes = [8, 128], strides = [1, 1]} : vector<8x512xf32> to vector<8x128xf32>
    %129 = vector.extract_strided_slice %127 {offsets = [0, 128], sizes = [8, 128], strides = [1, 1]} : vector<8x512xf32> to vector<8x128xf32>
    %130 = vector.extract_strided_slice %127 {offsets = [0, 256], sizes = [8, 128], strides = [1, 1]} : vector<8x512xf32> to vector<8x128xf32>
    %cst_42 = arith.constant 2.000000e+00 : f32
    %131 = vector.broadcast %cst_42 : f32 to vector<8x128xf32>
    %132 = arith.mulf %131, %130 : vector<8x128xf32>
    %cst_43 = arith.constant 1.000000e+00 : f32
    %133 = vector.broadcast %cst_43 : f32 to vector<8x128xf32>
    %134 = arith.subf %132, %133 : vector<8x128xf32>
    %135 = vector.extract_strided_slice %127 {offsets = [0, 384], sizes = [8, 128], strides = [1, 1]} : vector<8x512xf32> to vector<8x128xf32>
    %136 = arith.mulf %129, %85 : vector<8x128xf32>
    %137 = arith.mulf %128, %134 : vector<8x128xf32>
    %138 = arith.addf %136, %137 : vector<8x128xf32>
    %139 = math.tanh %138 : vector<8x128xf32>
    %140 = arith.mulf %135, %139 : vector<8x128xf32>
    %141 = tpu.concatenate %140, %110 in 1 : vector<8x128xf32>, vector<8x128xf32> -> vector<8x256xf32>
    %142 = arith.truncf %141 : vector<8x256xf32> to vector<8x256xbf16>
    %cst_44 = arith.constant dense<0.000000e+00> : vector<8x512xf32>
    %143 = tpu.matmul %142, %4, %cst_44 {dimension_numbers = #tpu.dot_dimension_numbers<[1], [0], [0], [1], [0, 0, 1, 1], [], []>} : vector<8x256xbf16>, vector<256x512xbf16>, vector<8x512xf32> -> vector<8x512xf32>
    %144 = vector.broadcast %5 : vector<1x512xf32> to vector<8x512xf32>
    %145 = arith.addf %143, %144 : vector<8x512xf32>
    %146 = arith.negf %145 : vector<8x512xf32>
    %147 = math.exp %146 : vector<8x512xf32>
    %cst_45 = arith.constant 1.000000e+00 : f32
    %148 = vector.broadcast %cst_45 : f32 to vector<8x512xf32>
    %149 = arith.addf %148, %147 : vector<8x512xf32>
    %150 = arith.divf %148, %149 : vector<8x512xf32>
    %151 = vector.extract_strided_slice %150 {offsets = [0, 0], sizes = [8, 128], strides = [1, 1]} : vector<8x512xf32> to vector<8x128xf32>
    %152 = vector.extract_strided_slice %150 {offsets = [0, 128], sizes = [8, 128], strides = [1, 1]} : vector<8x512xf32> to vector<8x128xf32>
    %153 = vector.extract_strided_slice %150 {offsets = [0, 256], sizes = [8, 128], strides = [1, 1]} : vector<8x512xf32> to vector<8x128xf32>
    %cst_46 = arith.constant 2.000000e+00 : f32
    %154 = vector.broadcast %cst_46 : f32 to vector<8x128xf32>
    %155 = arith.mulf %154, %153 : vector<8x128xf32>
    %cst_47 = arith.constant 1.000000e+00 : f32
    %156 = vector.broadcast %cst_47 : f32 to vector<8x128xf32>
    %157 = arith.subf %155, %156 : vector<8x128xf32>
    %158 = vector.extract_strided_slice %150 {offsets = [0, 384], sizes = [8, 128], strides = [1, 1]} : vector<8x512xf32> to vector<8x128xf32>
    %159 = arith.mulf %152, %108 : vector<8x128xf32>
    %160 = arith.mulf %151, %157 : vector<8x128xf32>
    %161 = arith.addf %159, %160 : vector<8x128xf32>
    %162 = math.tanh %161 : vector<8x128xf32>
    %163 = arith.mulf %158, %162 : vector<8x128xf32>
    %164 = arith.truncf %163 : vector<8x128xf32> to vector<8x128xbf16>
    %165 = arith.index_cast %c2_i32 : i32 to index
    %c0_48 = arith.constant 0 : index
    %c0_49 = arith.constant 0 : index
    %166 = vector.load %arg6[%165, %c0_48, %c0_49] : memref<8x8x128xbf16, #tpu.memory_space<vmem>>, vector<1x8x128xbf16>
    %167 = vector.shape_cast %166 : vector<1x8x128xbf16> to vector<8x128xbf16>
    %168 = vector.shape_cast %164 : vector<8x128xbf16> to vector<1x8x128xbf16>
    tpu.vector_store %arg6[%165, %c0_48, %c0_49], %168 {strides = array<i32>} : memref<8x8x128xbf16, #tpu.memory_space<vmem>>, vector<1x8x128xbf16>,
    %c3_i32 = arith.constant 3 : i32
    %169 = arith.index_cast %c3_i32 : i32 to index
    %c0_50 = arith.constant 0 : index
    %c0_51 = arith.constant 0 : index
    %170 = vector.load %arg2[%169, %c0_50, %c0_51] : memref<8x8x512xbf16, #tpu.memory_space<vmem>>, vector<1x8x512xbf16>
    %171 = vector.shape_cast %170 : vector<1x8x512xbf16> to vector<8x512xbf16>
    %172 = arith.extf %171 : vector<8x512xbf16> to vector<8x512xf32>
    %173 = arith.truncf %140 : vector<8x128xf32> to vector<8x128xbf16>
    %cst_52 = arith.constant dense<0.000000e+00> : vector<8x512xf32>
    %174 = tpu.matmul %173, %3, %cst_52 {dimension_numbers = #tpu.dot_dimension_numbers<[1], [0], [0], [1], [0, 0, 1, 1], [], []>} : vector<8x128xbf16>, vector<128x512xbf16>, vector<8x512xf32> -> vector<8x512xf32>
    %175 = arith.addf %172, %174 : vector<8x512xf32>
    %176 = arith.negf %175 : vector<8x512xf32>
    %177 = math.exp %176 : vector<8x512xf32>
    %cst_53 = arith.constant 1.000000e+00 : f32
    %178 = vector.broadcast %cst_53 : f32 to vector<8x512xf32>
    %179 = arith.addf %178, %177 : vector<8x512xf32>
    %180 = arith.divf %178, %179 : vector<8x512xf32>
    %181 = vector.extract_strided_slice %180 {offsets = [0, 0], sizes = [8, 128], strides = [1, 1]} : vector<8x512xf32> to vector<8x128xf32>
    %182 = vector.extract_strided_slice %180 {offsets = [0, 128], sizes = [8, 128], strides = [1, 1]} : vector<8x512xf32> to vector<8x128xf32>
    %183 = vector.extract_strided_slice %180 {offsets = [0, 256], sizes = [8, 128], strides = [1, 1]} : vector<8x512xf32> to vector<8x128xf32>
    %cst_54 = arith.constant 2.000000e+00 : f32
    %184 = vector.broadcast %cst_54 : f32 to vector<8x128xf32>
    %185 = arith.mulf %184, %183 : vector<8x128xf32>
    %cst_55 = arith.constant 1.000000e+00 : f32
    %186 = vector.broadcast %cst_55 : f32 to vector<8x128xf32>
    %187 = arith.subf %185, %186 : vector<8x128xf32>
    %188 = vector.extract_strided_slice %180 {offsets = [0, 384], sizes = [8, 128], strides = [1, 1]} : vector<8x512xf32> to vector<8x128xf32>
    %189 = arith.mulf %182, %138 : vector<8x128xf32>
    %190 = arith.mulf %181, %187 : vector<8x128xf32>
    %191 = arith.addf %189, %190 : vector<8x128xf32>
    %192 = math.tanh %191 : vector<8x128xf32>
    %193 = arith.mulf %188, %192 : vector<8x128xf32>
    %194 = tpu.concatenate %193, %163 in 1 : vector<8x128xf32>, vector<8x128xf32> -> vector<8x256xf32>
    %195 = arith.truncf %194 : vector<8x256xf32> to vector<8x256xbf16>
    %cst_56 = arith.constant dense<0.000000e+00> : vector<8x512xf32>
    %196 = tpu.matmul %195, %4, %cst_56 {dimension_numbers = #tpu.dot_dimension_numbers<[1], [0], [0], [1], [0, 0, 1, 1], [], []>} : vector<8x256xbf16>, vector<256x512xbf16>, vector<8x512xf32> -> vector<8x512xf32>
    %197 = vector.broadcast %5 : vector<1x512xf32> to vector<8x512xf32>
    %198 = arith.addf %196, %197 : vector<8x512xf32>
    %199 = arith.negf %198 : vector<8x512xf32>
    %200 = math.exp %199 : vector<8x512xf32>
    %cst_57 = arith.constant 1.000000e+00 : f32
    %201 = vector.broadcast %cst_57 : f32 to vector<8x512xf32>
    %202 = arith.addf %201, %200 : vector<8x512xf32>
    %203 = arith.divf %201, %202 : vector<8x512xf32>
    %204 = vector.extract_strided_slice %203 {offsets = [0, 0], sizes = [8, 128], strides = [1, 1]} : vector<8x512xf32> to vector<8x128xf32>
    %205 = vector.extract_strided_slice %203 {offsets = [0, 128], sizes = [8, 128], strides = [1, 1]} : vector<8x512xf32> to vector<8x128xf32>
    %206 = vector.extract_strided_slice %203 {offsets = [0, 256], sizes = [8, 128], strides = [1, 1]} : vector<8x512xf32> to vector<8x128xf32>
    %cst_58 = arith.constant 2.000000e+00 : f32
    %207 = vector.broadcast %cst_58 : f32 to vector<8x128xf32>
    %208 = arith.mulf %207, %206 : vector<8x128xf32>
    %cst_59 = arith.constant 1.000000e+00 : f32
    %209 = vector.broadcast %cst_59 : f32 to vector<8x128xf32>
    %210 = arith.subf %208, %209 : vector<8x128xf32>
    %211 = vector.extract_strided_slice %203 {offsets = [0, 384], sizes = [8, 128], strides = [1, 1]} : vector<8x512xf32> to vector<8x128xf32>
    %212 = arith.mulf %205, %161 : vector<8x128xf32>
    %213 = arith.mulf %204, %210 : vector<8x128xf32>
    %214 = arith.addf %212, %213 : vector<8x128xf32>
    %215 = math.tanh %214 : vector<8x128xf32>
    %216 = arith.mulf %211, %215 : vector<8x128xf32>
    %217 = arith.truncf %216 : vector<8x128xf32> to vector<8x128xbf16>
    %218 = arith.index_cast %c3_i32 : i32 to index
    %c0_60 = arith.constant 0 : index
    %c0_61 = arith.constant 0 : index
    %219 = vector.load %arg6[%218, %c0_60, %c0_61] : memref<8x8x128xbf16, #tpu.memory_space<vmem>>, vector<1x8x128xbf16>
    %220 = vector.shape_cast %219 : vector<1x8x128xbf16> to vector<8x128xbf16>
    %221 = vector.shape_cast %217 : vector<8x128xbf16> to vector<1x8x128xbf16>
    tpu.vector_store %arg6[%218, %c0_60, %c0_61], %221 {strides = array<i32>} : memref<8x8x128xbf16, #tpu.memory_space<vmem>>, vector<1x8x128xbf16>,
    %c4_i32 = arith.constant 4 : i32
    %222 = arith.index_cast %c4_i32 : i32 to index
    %c0_62 = arith.constant 0 : index
    %c0_63 = arith.constant 0 : index
    %223 = vector.load %arg2[%222, %c0_62, %c0_63] : memref<8x8x512xbf16, #tpu.memory_space<vmem>>, vector<1x8x512xbf16>
    %224 = vector.shape_cast %223 : vector<1x8x512xbf16> to vector<8x512xbf16>
    %225 = arith.extf %224 : vector<8x512xbf16> to vector<8x512xf32>
    %226 = arith.truncf %193 : vector<8x128xf32> to vector<8x128xbf16>
    %cst_64 = arith.constant dense<0.000000e+00> : vector<8x512xf32>
    %227 = tpu.matmul %226, %3, %cst_64 {dimension_numbers = #tpu.dot_dimension_numbers<[1], [0], [0], [1], [0, 0, 1, 1], [], []>} : vector<8x128xbf16>, vector<128x512xbf16>, vector<8x512xf32> -> vector<8x512xf32>
    %228 = arith.addf %225, %227 : vector<8x512xf32>
    %229 = arith.negf %228 : vector<8x512xf32>
    %230 = math.exp %229 : vector<8x512xf32>
    %cst_65 = arith.constant 1.000000e+00 : f32
    %231 = vector.broadcast %cst_65 : f32 to vector<8x512xf32>
    %232 = arith.addf %231, %230 : vector<8x512xf32>
    %233 = arith.divf %231, %232 : vector<8x512xf32>
    %234 = vector.extract_strided_slice %233 {offsets = [0, 0], sizes = [8, 128], strides = [1, 1]} : vector<8x512xf32> to vector<8x128xf32>
    %235 = vector.extract_strided_slice %233 {offsets = [0, 128], sizes = [8, 128], strides = [1, 1]} : vector<8x512xf32> to vector<8x128xf32>
    %236 = vector.extract_strided_slice %233 {offsets = [0, 256], sizes = [8, 128], strides = [1, 1]} : vector<8x512xf32> to vector<8x128xf32>
    %cst_66 = arith.constant 2.000000e+00 : f32
    %237 = vector.broadcast %cst_66 : f32 to vector<8x128xf32>
    %238 = arith.mulf %237, %236 : vector<8x128xf32>
    %cst_67 = arith.constant 1.000000e+00 : f32
    %239 = vector.broadcast %cst_67 : f32 to vector<8x128xf32>
    %240 = arith.subf %238, %239 : vector<8x128xf32>
    %241 = vector.extract_strided_slice %233 {offsets = [0, 384], sizes = [8, 128], strides = [1, 1]} : vector<8x512xf32> to vector<8x128xf32>
    %242 = arith.mulf %235, %191 : vector<8x128xf32>
    %243 = arith.mulf %234, %240 : vector<8x128xf32>
    %244 = arith.addf %242, %243 : vector<8x128xf32>
    %245 = math.tanh %244 : vector<8x128xf32>
    %246 = arith.mulf %241, %245 : vector<8x128xf32>
    %247 = tpu.concatenate %246, %216 in 1 : vector<8x128xf32>, vector<8x128xf32> -> vector<8x256xf32>
    %248 = arith.truncf %247 : vector<8x256xf32> to vector<8x256xbf16>
    %cst_68 = arith.constant dense<0.000000e+00> : vector<8x512xf32>
    %249 = tpu.matmul %248, %4, %cst_68 {dimension_numbers = #tpu.dot_dimension_numbers<[1], [0], [0], [1], [0, 0, 1, 1], [], []>} : vector<8x256xbf16>, vector<256x512xbf16>, vector<8x512xf32> -> vector<8x512xf32>
    %250 = vector.broadcast %5 : vector<1x512xf32> to vector<8x512xf32>
    %251 = arith.addf %249, %250 : vector<8x512xf32>
    %252 = arith.negf %251 : vector<8x512xf32>
    %253 = math.exp %252 : vector<8x512xf32>
    %cst_69 = arith.constant 1.000000e+00 : f32
    %254 = vector.broadcast %cst_69 : f32 to vector<8x512xf32>
    %255 = arith.addf %254, %253 : vector<8x512xf32>
    %256 = arith.divf %254, %255 : vector<8x512xf32>
    %257 = vector.extract_strided_slice %256 {offsets = [0, 0], sizes = [8, 128], strides = [1, 1]} : vector<8x512xf32> to vector<8x128xf32>
    %258 = vector.extract_strided_slice %256 {offsets = [0, 128], sizes = [8, 128], strides = [1, 1]} : vector<8x512xf32> to vector<8x128xf32>
    %259 = vector.extract_strided_slice %256 {offsets = [0, 256], sizes = [8, 128], strides = [1, 1]} : vector<8x512xf32> to vector<8x128xf32>
    %cst_70 = arith.constant 2.000000e+00 : f32
    %260 = vector.broadcast %cst_70 : f32 to vector<8x128xf32>
    %261 = arith.mulf %260, %259 : vector<8x128xf32>
    %cst_71 = arith.constant 1.000000e+00 : f32
    %262 = vector.broadcast %cst_71 : f32 to vector<8x128xf32>
    %263 = arith.subf %261, %262 : vector<8x128xf32>
    %264 = vector.extract_strided_slice %256 {offsets = [0, 384], sizes = [8, 128], strides = [1, 1]} : vector<8x512xf32> to vector<8x128xf32>
    %265 = arith.mulf %258, %214 : vector<8x128xf32>
    %266 = arith.mulf %257, %263 : vector<8x128xf32>
    %267 = arith.addf %265, %266 : vector<8x128xf32>
    %268 = math.tanh %267 : vector<8x128xf32>
    %269 = arith.mulf %264, %268 : vector<8x128xf32>
    %270 = arith.truncf %269 : vector<8x128xf32> to vector<8x128xbf16>
    %271 = arith.index_cast %c4_i32 : i32 to index
    %c0_72 = arith.constant 0 : index
    %c0_73 = arith.constant 0 : index
    %272 = vector.load %arg6[%271, %c0_72, %c0_73] : memref<8x8x128xbf16, #tpu.memory_space<vmem>>, vector<1x8x128xbf16>
    %273 = vector.shape_cast %272 : vector<1x8x128xbf16> to vector<8x128xbf16>
    %274 = vector.shape_cast %270 : vector<8x128xbf16> to vector<1x8x128xbf16>
    tpu.vector_store %arg6[%271, %c0_72, %c0_73], %274 {strides = array<i32>} : memref<8x8x128xbf16, #tpu.memory_space<vmem>>, vector<1x8x128xbf16>,
    %c5_i32 = arith.constant 5 : i32
    %275 = arith.index_cast %c5_i32 : i32 to index
    %c0_74 = arith.constant 0 : index
    %c0_75 = arith.constant 0 : index
    %276 = vector.load %arg2[%275, %c0_74, %c0_75] : memref<8x8x512xbf16, #tpu.memory_space<vmem>>, vector<1x8x512xbf16>
    %277 = vector.shape_cast %276 : vector<1x8x512xbf16> to vector<8x512xbf16>
    %278 = arith.extf %277 : vector<8x512xbf16> to vector<8x512xf32>
    %279 = arith.truncf %246 : vector<8x128xf32> to vector<8x128xbf16>
    %cst_76 = arith.constant dense<0.000000e+00> : vector<8x512xf32>
    %280 = tpu.matmul %279, %3, %cst_76 {dimension_numbers = #tpu.dot_dimension_numbers<[1], [0], [0], [1], [0, 0, 1, 1], [], []>} : vector<8x128xbf16>, vector<128x512xbf16>, vector<8x512xf32> -> vector<8x512xf32>
    %281 = arith.addf %278, %280 : vector<8x512xf32>
    %282 = arith.negf %281 : vector<8x512xf32>
    %283 = math.exp %282 : vector<8x512xf32>
    %cst_77 = arith.constant 1.000000e+00 : f32
    %284 = vector.broadcast %cst_77 : f32 to vector<8x512xf32>
    %285 = arith.addf %284, %283 : vector<8x512xf32>
    %286 = arith.divf %284, %285 : vector<8x512xf32>
    %287 = vector.extract_strided_slice %286 {offsets = [0, 0], sizes = [8, 128], strides = [1, 1]} : vector<8x512xf32> to vector<8x128xf32>
    %288 = vector.extract_strided_slice %286 {offsets = [0, 128], sizes = [8, 128], strides = [1, 1]} : vector<8x512xf32> to vector<8x128xf32>
    %289 = vector.extract_strided_slice %286 {offsets = [0, 256], sizes = [8, 128], strides = [1, 1]} : vector<8x512xf32> to vector<8x128xf32>
    %cst_78 = arith.constant 2.000000e+00 : f32
    %290 = vector.broadcast %cst_78 : f32 to vector<8x128xf32>
    %291 = arith.mulf %290, %289 : vector<8x128xf32>
    %cst_79 = arith.constant 1.000000e+00 : f32
    %292 = vector.broadcast %cst_79 : f32 to vector<8x128xf32>
    %293 = arith.subf %291, %292 : vector<8x128xf32>
    %294 = vector.extract_strided_slice %286 {offsets = [0, 384], sizes = [8, 128], strides = [1, 1]} : vector<8x512xf32> to vector<8x128xf32>
    %295 = arith.mulf %288, %244 : vector<8x128xf32>
    %296 = arith.mulf %287, %293 : vector<8x128xf32>
    %297 = arith.addf %295, %296 : vector<8x128xf32>
    %298 = math.tanh %297 : vector<8x128xf32>
    %299 = arith.mulf %294, %298 : vector<8x128xf32>
    %300 = tpu.concatenate %299, %269 in 1 : vector<8x128xf32>, vector<8x128xf32> -> vector<8x256xf32>
    %301 = arith.truncf %300 : vector<8x256xf32> to vector<8x256xbf16>
    %cst_80 = arith.constant dense<0.000000e+00> : vector<8x512xf32>
    %302 = tpu.matmul %301, %4, %cst_80 {dimension_numbers = #tpu.dot_dimension_numbers<[1], [0], [0], [1], [0, 0, 1, 1], [], []>} : vector<8x256xbf16>, vector<256x512xbf16>, vector<8x512xf32> -> vector<8x512xf32>
    %303 = vector.broadcast %5 : vector<1x512xf32> to vector<8x512xf32>
    %304 = arith.addf %302, %303 : vector<8x512xf32>
    %305 = arith.negf %304 : vector<8x512xf32>
    %306 = math.exp %305 : vector<8x512xf32>
    %cst_81 = arith.constant 1.000000e+00 : f32
    %307 = vector.broadcast %cst_81 : f32 to vector<8x512xf32>
    %308 = arith.addf %307, %306 : vector<8x512xf32>
    %309 = arith.divf %307, %308 : vector<8x512xf32>
    %310 = vector.extract_strided_slice %309 {offsets = [0, 0], sizes = [8, 128], strides = [1, 1]} : vector<8x512xf32> to vector<8x128xf32>
    %311 = vector.extract_strided_slice %309 {offsets = [0, 128], sizes = [8, 128], strides = [1, 1]} : vector<8x512xf32> to vector<8x128xf32>
    %312 = vector.extract_strided_slice %309 {offsets = [0, 256], sizes = [8, 128], strides = [1, 1]} : vector<8x512xf32> to vector<8x128xf32>
    %cst_82 = arith.constant 2.000000e+00 : f32
    %313 = vector.broadcast %cst_82 : f32 to vector<8x128xf32>
    %314 = arith.mulf %313, %312 : vector<8x128xf32>
    %cst_83 = arith.constant 1.000000e+00 : f32
    %315 = vector.broadcast %cst_83 : f32 to vector<8x128xf32>
    %316 = arith.subf %314, %315 : vector<8x128xf32>
    %317 = vector.extract_strided_slice %309 {offsets = [0, 384], sizes = [8, 128], strides = [1, 1]} : vector<8x512xf32> to vector<8x128xf32>
    %318 = arith.mulf %311, %267 : vector<8x128xf32>
    %319 = arith.mulf %310, %316 : vector<8x128xf32>
    %320 = arith.addf %318, %319 : vector<8x128xf32>
    %321 = math.tanh %320 : vector<8x128xf32>
    %322 = arith.mulf %317, %321 : vector<8x128xf32>
    %323 = arith.truncf %322 : vector<8x128xf32> to vector<8x128xbf16>
    %324 = arith.index_cast %c5_i32 : i32 to index
    %c0_84 = arith.constant 0 : index
    %c0_85 = arith.constant 0 : index
    %325 = vector.load %arg6[%324, %c0_84, %c0_85] : memref<8x8x128xbf16, #tpu.memory_space<vmem>>, vector<1x8x128xbf16>
    %326 = vector.shape_cast %325 : vector<1x8x128xbf16> to vector<8x128xbf16>
    %327 = vector.shape_cast %323 : vector<8x128xbf16> to vector<1x8x128xbf16>
    tpu.vector_store %arg6[%324, %c0_84, %c0_85], %327 {strides = array<i32>} : memref<8x8x128xbf16, #tpu.memory_space<vmem>>, vector<1x8x128xbf16>,
    %c6_i32 = arith.constant 6 : i32
    %328 = arith.index_cast %c6_i32 : i32 to index
    %c0_86 = arith.constant 0 : index
    %c0_87 = arith.constant 0 : index
    %329 = vector.load %arg2[%328, %c0_86, %c0_87] : memref<8x8x512xbf16, #tpu.memory_space<vmem>>, vector<1x8x512xbf16>
    %330 = vector.shape_cast %329 : vector<1x8x512xbf16> to vector<8x512xbf16>
    %331 = arith.extf %330 : vector<8x512xbf16> to vector<8x512xf32>
    %332 = arith.truncf %299 : vector<8x128xf32> to vector<8x128xbf16>
    %cst_88 = arith.constant dense<0.000000e+00> : vector<8x512xf32>
    %333 = tpu.matmul %332, %3, %cst_88 {dimension_numbers = #tpu.dot_dimension_numbers<[1], [0], [0], [1], [0, 0, 1, 1], [], []>} : vector<8x128xbf16>, vector<128x512xbf16>, vector<8x512xf32> -> vector<8x512xf32>
    %334 = arith.addf %331, %333 : vector<8x512xf32>
    %335 = arith.negf %334 : vector<8x512xf32>
    %336 = math.exp %335 : vector<8x512xf32>
    %cst_89 = arith.constant 1.000000e+00 : f32
    %337 = vector.broadcast %cst_89 : f32 to vector<8x512xf32>
    %338 = arith.addf %337, %336 : vector<8x512xf32>
    %339 = arith.divf %337, %338 : vector<8x512xf32>
    %340 = vector.extract_strided_slice %339 {offsets = [0, 0], sizes = [8, 128], strides = [1, 1]} : vector<8x512xf32> to vector<8x128xf32>
    %341 = vector.extract_strided_slice %339 {offsets = [0, 128], sizes = [8, 128], strides = [1, 1]} : vector<8x512xf32> to vector<8x128xf32>
    %342 = vector.extract_strided_slice %339 {offsets = [0, 256], sizes = [8, 128], strides = [1, 1]} : vector<8x512xf32> to vector<8x128xf32>
    %cst_90 = arith.constant 2.000000e+00 : f32
    %343 = vector.broadcast %cst_90 : f32 to vector<8x128xf32>
    %344 = arith.mulf %343, %342 : vector<8x128xf32>
    %cst_91 = arith.constant 1.000000e+00 : f32
    %345 = vector.broadcast %cst_91 : f32 to vector<8x128xf32>
    %346 = arith.subf %344, %345 : vector<8x128xf32>
    %347 = vector.extract_strided_slice %339 {offsets = [0, 384], sizes = [8, 128], strides = [1, 1]} : vector<8x512xf32> to vector<8x128xf32>
    %348 = arith.mulf %341, %297 : vector<8x128xf32>
    %349 = arith.mulf %340, %346 : vector<8x128xf32>
    %350 = arith.addf %348, %349 : vector<8x128xf32>
    %351 = math.tanh %350 : vector<8x128xf32>
    %352 = arith.mulf %347, %351 : vector<8x128xf32>
    %353 = tpu.concatenate %352, %322 in 1 : vector<8x128xf32>, vector<8x128xf32> -> vector<8x256xf32>
    %354 = arith.truncf %353 : vector<8x256xf32> to vector<8x256xbf16>
    %cst_92 = arith.constant dense<0.000000e+00> : vector<8x512xf32>
    %355 = tpu.matmul %354, %4, %cst_92 {dimension_numbers = #tpu.dot_dimension_numbers<[1], [0], [0], [1], [0, 0, 1, 1], [], []>} : vector<8x256xbf16>, vector<256x512xbf16>, vector<8x512xf32> -> vector<8x512xf32>
    %356 = vector.broadcast %5 : vector<1x512xf32> to vector<8x512xf32>
    %357 = arith.addf %355, %356 : vector<8x512xf32>
    %358 = arith.negf %357 : vector<8x512xf32>
    %359 = math.exp %358 : vector<8x512xf32>
    %cst_93 = arith.constant 1.000000e+00 : f32
    %360 = vector.broadcast %cst_93 : f32 to vector<8x512xf32>
    %361 = arith.addf %360, %359 : vector<8x512xf32>
    %362 = arith.divf %360, %361 : vector<8x512xf32>
    %363 = vector.extract_strided_slice %362 {offsets = [0, 0], sizes = [8, 128], strides = [1, 1]} : vector<8x512xf32> to vector<8x128xf32>
    %364 = vector.extract_strided_slice %362 {offsets = [0, 128], sizes = [8, 128], strides = [1, 1]} : vector<8x512xf32> to vector<8x128xf32>
    %365 = vector.extract_strided_slice %362 {offsets = [0, 256], sizes = [8, 128], strides = [1, 1]} : vector<8x512xf32> to vector<8x128xf32>
    %cst_94 = arith.constant 2.000000e+00 : f32
    %366 = vector.broadcast %cst_94 : f32 to vector<8x128xf32>
    %367 = arith.mulf %366, %365 : vector<8x128xf32>
    %cst_95 = arith.constant 1.000000e+00 : f32
    %368 = vector.broadcast %cst_95 : f32 to vector<8x128xf32>
    %369 = arith.subf %367, %368 : vector<8x128xf32>
    %370 = vector.extract_strided_slice %362 {offsets = [0, 384], sizes = [8, 128], strides = [1, 1]} : vector<8x512xf32> to vector<8x128xf32>
    %371 = arith.mulf %364, %320 : vector<8x128xf32>
    %372 = arith.mulf %363, %369 : vector<8x128xf32>
    %373 = arith.addf %371, %372 : vector<8x128xf32>
    %374 = math.tanh %373 : vector<8x128xf32>
    %375 = arith.mulf %370, %374 : vector<8x128xf32>
    %376 = arith.truncf %375 : vector<8x128xf32> to vector<8x128xbf16>
    %377 = arith.index_cast %c6_i32 : i32 to index
    %c0_96 = arith.constant 0 : index
    %c0_97 = arith.constant 0 : index
    %378 = vector.load %arg6[%377, %c0_96, %c0_97] : memref<8x8x128xbf16, #tpu.memory_space<vmem>>, vector<1x8x128xbf16>
    %379 = vector.shape_cast %378 : vector<1x8x128xbf16> to vector<8x128xbf16>
    %380 = vector.shape_cast %376 : vector<8x128xbf16> to vector<1x8x128xbf16>
    tpu.vector_store %arg6[%377, %c0_96, %c0_97], %380 {strides = array<i32>} : memref<8x8x128xbf16, #tpu.memory_space<vmem>>, vector<1x8x128xbf16>,
    %c7_i32 = arith.constant 7 : i32
    %381 = arith.index_cast %c7_i32 : i32 to index
    %c0_98 = arith.constant 0 : index
    %c0_99 = arith.constant 0 : index
    %382 = vector.load %arg2[%381, %c0_98, %c0_99] : memref<8x8x512xbf16, #tpu.memory_space<vmem>>, vector<1x8x512xbf16>
    %383 = vector.shape_cast %382 : vector<1x8x512xbf16> to vector<8x512xbf16>
    %384 = arith.extf %383 : vector<8x512xbf16> to vector<8x512xf32>
    %385 = arith.truncf %352 : vector<8x128xf32> to vector<8x128xbf16>
    %cst_100 = arith.constant dense<0.000000e+00> : vector<8x512xf32>
    %386 = tpu.matmul %385, %3, %cst_100 {dimension_numbers = #tpu.dot_dimension_numbers<[1], [0], [0], [1], [0, 0, 1, 1], [], []>} : vector<8x128xbf16>, vector<128x512xbf16>, vector<8x512xf32> -> vector<8x512xf32>
    %387 = arith.addf %384, %386 : vector<8x512xf32>
    %388 = arith.negf %387 : vector<8x512xf32>
    %389 = math.exp %388 : vector<8x512xf32>
    %cst_101 = arith.constant 1.000000e+00 : f32
    %390 = vector.broadcast %cst_101 : f32 to vector<8x512xf32>
    %391 = arith.addf %390, %389 : vector<8x512xf32>
    %392 = arith.divf %390, %391 : vector<8x512xf32>
    %393 = vector.extract_strided_slice %392 {offsets = [0, 0], sizes = [8, 128], strides = [1, 1]} : vector<8x512xf32> to vector<8x128xf32>
    %394 = vector.extract_strided_slice %392 {offsets = [0, 128], sizes = [8, 128], strides = [1, 1]} : vector<8x512xf32> to vector<8x128xf32>
    %395 = vector.extract_strided_slice %392 {offsets = [0, 256], sizes = [8, 128], strides = [1, 1]} : vector<8x512xf32> to vector<8x128xf32>
    %cst_102 = arith.constant 2.000000e+00 : f32
    %396 = vector.broadcast %cst_102 : f32 to vector<8x128xf32>
    %397 = arith.mulf %396, %395 : vector<8x128xf32>
    %cst_103 = arith.constant 1.000000e+00 : f32
    %398 = vector.broadcast %cst_103 : f32 to vector<8x128xf32>
    %399 = arith.subf %397, %398 : vector<8x128xf32>
    %400 = vector.extract_strided_slice %392 {offsets = [0, 384], sizes = [8, 128], strides = [1, 1]} : vector<8x512xf32> to vector<8x128xf32>
    %401 = arith.mulf %394, %350 : vector<8x128xf32>
    %402 = arith.mulf %393, %399 : vector<8x128xf32>
    %403 = arith.addf %401, %402 : vector<8x128xf32>
    %404 = math.tanh %403 : vector<8x128xf32>
    %405 = arith.mulf %400, %404 : vector<8x128xf32>
    %406 = tpu.concatenate %405, %375 in 1 : vector<8x128xf32>, vector<8x128xf32> -> vector<8x256xf32>
    %407 = arith.truncf %406 : vector<8x256xf32> to vector<8x256xbf16>
    %cst_104 = arith.constant dense<0.000000e+00> : vector<8x512xf32>
    %408 = tpu.matmul %407, %4, %cst_104 {dimension_numbers = #tpu.dot_dimension_numbers<[1], [0], [0], [1], [0, 0, 1, 1], [], []>} : vector<8x256xbf16>, vector<256x512xbf16>, vector<8x512xf32> -> vector<8x512xf32>
    %409 = vector.broadcast %5 : vector<1x512xf32> to vector<8x512xf32>
    %410 = arith.addf %408, %409 : vector<8x512xf32>
    %411 = arith.negf %410 : vector<8x512xf32>
    %412 = math.exp %411 : vector<8x512xf32>
    %cst_105 = arith.constant 1.000000e+00 : f32
    %413 = vector.broadcast %cst_105 : f32 to vector<8x512xf32>
    %414 = arith.addf %413, %412 : vector<8x512xf32>
    %415 = arith.divf %413, %414 : vector<8x512xf32>
    %416 = vector.extract_strided_slice %415 {offsets = [0, 0], sizes = [8, 128], strides = [1, 1]} : vector<8x512xf32> to vector<8x128xf32>
    %417 = vector.extract_strided_slice %415 {offsets = [0, 128], sizes = [8, 128], strides = [1, 1]} : vector<8x512xf32> to vector<8x128xf32>
    %418 = vector.extract_strided_slice %415 {offsets = [0, 256], sizes = [8, 128], strides = [1, 1]} : vector<8x512xf32> to vector<8x128xf32>
    %cst_106 = arith.constant 2.000000e+00 : f32
    %419 = vector.broadcast %cst_106 : f32 to vector<8x128xf32>
    %420 = arith.mulf %419, %418 : vector<8x128xf32>
    %cst_107 = arith.constant 1.000000e+00 : f32
    %421 = vector.broadcast %cst_107 : f32 to vector<8x128xf32>
    %422 = arith.subf %420, %421 : vector<8x128xf32>
    %423 = vector.extract_strided_slice %415 {offsets = [0, 384], sizes = [8, 128], strides = [1, 1]} : vector<8x512xf32> to vector<8x128xf32>
    %424 = arith.mulf %417, %373 : vector<8x128xf32>
    %425 = arith.mulf %416, %422 : vector<8x128xf32>
    %426 = arith.addf %424, %425 : vector<8x128xf32>
    %427 = math.tanh %426 : vector<8x128xf32>
    %428 = arith.mulf %423, %427 : vector<8x128xf32>
    %429 = arith.truncf %428 : vector<8x128xf32> to vector<8x128xbf16>
    %430 = arith.index_cast %c7_i32 : i32 to index
    %c0_108 = arith.constant 0 : index
    %c0_109 = arith.constant 0 : index
    %431 = vector.load %arg6[%430, %c0_108, %c0_109] : memref<8x8x128xbf16, #tpu.memory_space<vmem>>, vector<1x8x128xbf16>
    %432 = vector.shape_cast %431 : vector<1x8x128xbf16> to vector<8x128xbf16>
    %433 = vector.shape_cast %429 : vector<8x128xbf16> to vector<1x8x128xbf16>
    tpu.vector_store %arg6[%430, %c0_108, %c0_109], %433 {strides = array<i32>} : memref<8x8x128xbf16, #tpu.memory_space<vmem>>, vector<1x8x128xbf16>,
    %c8_i32 = arith.constant 8 : i32
    %c0_110 = arith.constant 0 : index
    %c0_111 = arith.constant 0 : index
    %434 = vector.load %arg7[%c0_110, %c0_111] : memref<8x128xf32, #tpu.memory_space<vmem>>, vector<8x128xf32>
    tpu.vector_store %arg7[%c0_110, %c0_111], %405 {strides = array<i32>} : memref<8x128xf32, #tpu.memory_space<vmem>>, vector<8x128xf32>,
    %c0_112 = arith.constant 0 : index
    %c0_113 = arith.constant 0 : index
    %435 = vector.load %arg8[%c0_112, %c0_113] : memref<8x128xf32, #tpu.memory_space<vmem>>, vector<8x128xf32>
    tpu.vector_store %arg8[%c0_112, %c0_113], %403 {strides = array<i32>} : memref<8x128xf32, #tpu.memory_space<vmem>>, vector<8x128xf32>,
    %c0_114 = arith.constant 0 : index
    %c0_115 = arith.constant 0 : index
    %436 = vector.load %arg9[%c0_114, %c0_115] : memref<8x128xf32, #tpu.memory_space<vmem>>, vector<8x128xf32>
    tpu.vector_store %arg9[%c0_114, %c0_115], %428 {strides = array<i32>} : memref<8x128xf32, #tpu.memory_space<vmem>>, vector<8x128xf32>,
    %c0_116 = arith.constant 0 : index
    %c0_117 = arith.constant 0 : index
    %437 = vector.load %arg10[%c0_116, %c0_117] : memref<8x128xf32, #tpu.memory_space<vmem>>, vector<8x128xf32>
    tpu.vector_store %arg10[%c0_116, %c0_117], %426 {strides = array<i32>} : memref<8x128xf32, #tpu.memory_space<vmem>>, vector<8x128xf32>,
    return
  }
  func.func @transform_0(%arg0: i32, %arg1: i32) -> (i32, i32, i32) {
    %c0_i32 = arith.constant 0 : i32
    %c0_i32_0 = arith.constant 0 : i32
    return %arg1, %arg0, %c0_i32 : i32, i32, i32
  }
  func.func @transform_1(%arg0: i32, %arg1: i32) -> (i32, i32) {
    %c0_i32 = arith.constant 0 : i32
    %c0_i32_0 = arith.constant 0 : i32
    %c0_i32_1 = arith.constant 0 : i32
    return %c0_i32, %c0_i32_0 : i32, i32
  }
  func.func @transform_2(%arg0: i32, %arg1: i32) -> (i32, i32) {
    %c0_i32 = arith.constant 0 : i32
    %c0_i32_0 = arith.constant 0 : i32
    %c0_i32_1 = arith.constant 0 : i32
    return %c0_i32, %c0_i32_0 : i32, i32
  }
  func.func @transform_3(%arg0: i32, %arg1: i32) -> (i32, i32) {
    %c0_i32 = arith.constant 0 : i32
    %c0_i32_0 = arith.constant 0 : i32
    %c0_i32_1 = arith.constant 0 : i32
    return %c0_i32, %c0_i32_0 : i32, i32
  }
  func.func @transform_4(%arg0: i32, %arg1: i32) -> (i32, i32, i32) {
    %c0_i32 = arith.constant 0 : i32
    %c0_i32_0 = arith.constant 0 : i32
    return %arg1, %arg0, %c0_i32 : i32, i32, i32
  }
}

</mosaic_0001>

<bundles_post_ra>
// kernel: tpu_custom_call.1
= control target key start
LH: loop header
LB: loop body
LE: loop exit
PB: predicated region body
PF: predicated region fallthrough
CT: control target
= control target key end

     0   :  { %9 = vsyncpa [#allocation7], 0  ;;  %s5082_s0 = inlined_call_operand.hbm [shape: bf16[8,8,512], index: 0, kind: input, shape index: {}]   ;;  %s5083_s1 = inlined_call_operand.hbm [shape: bf16[128,512], index: 1, kind: input, shape index: {}]   ;;  %s5084_s2 = inlined_call_operand.hbm [shape: bf16[256,512], index: 2, kind: input, shape index: {}]   ;;  %s5085_s3 = inlined_call_operand.vmem [shape: f32[1,512], index: 3, kind: input, shape index: {}]   ;;  %s5086_s4 = inlined_call_operand.hbm [shape: bf16[8,8,128], index: 4, kind: output, shape index: {}]  }
   0x1   :  { %10 = vsyncpa [#allocation10], 0 }
   0x2   :  { %11 = vsyncpa [#allocation8], 0  ;;  %s3524_s15 = smov [#allocation9]   ;;  %s3525_s17 = smov [#allocation6]  }
   0x3   :  { %s29_s16 = sshll.u32 %s3524_s15, 4  ;;  %s17_s18 = sshll.u32 %s3525_s17, 4  ;;  %s30_s16 = int_to_ptr.vmem [resolvable:$true] %s29_s16  ;;  %s3559_s18 = int_to_ptr.vmem [resolvable:$true] %s17_s18 }
   0x4   :  { %s3430_s21 = scalar_lea.hbm %s5083_s1, 4096 }
   0x5   :  { %p3431_p0 = scmp.ne.s32.totalorder %s5083_s1, %s3430_s21  ;;  %p3434_p1 = scmp.lt.u32.totalorder %s3430_s21, %s5083_s1 }
   0x7   :  { %p3436_p2 = pnand %p3434_p1, %p3431_p0 }
   0x9   :  { %3439 = shalt.err (!%p3436_p2)
}
   0xa   :  { %s3440_s26 = scalar_lea.vmem %s30_s16, 4096  ;;  %p3445_p4 = scmp.lt.s32.totalorder %s30_s16, %s30_s16 }
   0xb   :  { %p3441_p3 = scmp.ne.s32.totalorder %s30_s16, %s3440_s26  ;;  %p3446_p5 = scmp.lt.s32.totalorder %s3440_s26, %s3440_s26 }
   0xd   :  { %p3447_p6 = por %p3446_p5, %p3445_p4 }
   0xf   :  { %p3448_p7 = pnand %p3447_p6, %p3441_p3 }
  0x11   :  { %3451 = shalt.err (!%p3448_p7)
}
  0x12   :  { %s3526_s27 = smov 256   ;;  %s3527_s28 = smov 16  }
  0x13   :  { %35 = dma.hbm_to_vmem [thread:$0]  %s5083_s1, 4096, %s30_s16, [#allocation10], %s3526_s27, %s3526_s27, %s3527_s28  }
  0x14   :  { %s3452_s7 = scalar_lea.hbm %s5082_s0, 2048 }
  0x15   :  { %p3453_p8 = scmp.ne.s32.totalorder %s5082_s0, %s3452_s7  ;;  %p3456_p9 = scmp.lt.u32.totalorder %s3452_s7, %s5082_s0 }
  0x17   :  { %p3458_p10 = pnand %p3456_p9, %p3453_p8 }
  0x19   :  { %3461 = shalt.err (!%p3458_p10)
}
  0x1a   :  { %s3462_s12 = scalar_lea.vmem %s3559_s18, 2048  ;;  %p3467_p12 = scmp.lt.s32.totalorder %s3559_s18, %s3559_s18 }
  0x1b   :  { %p3463_p11 = scmp.ne.s32.totalorder %s3559_s18, %s3462_s12  ;;  %p3468_p13 = scmp.lt.s32.totalorder %s3462_s12, %s3462_s12 }
  0x1d   :  { %p3469_p0 = por %p3468_p13, %p3467_p12 }
  0x1f   :  { %p3470_p1 = pnand %p3469_p0, %p3463_p11 }
  0x21   :  { %3473 = shalt.err (!%p3470_p1)
}
  0x22   :  { %23 = dma.hbm_to_vmem [thread:$0]  %s5082_s0, 2048, %s3559_s18, [#allocation7], %s3526_s27, %s3526_s27, %s3527_s28  }
  0x23   :  { %s3528_s14 = smov [#allocation11]   ;;  %s3474_s19 = scalar_lea.hbm %s5084_s2, 8192 }
  0x24   :  { %s41_s15 = sshll.u32 %s3528_s14, 4  ;;  %p3475_p2 = scmp.ne.s32.totalorder %s5084_s2, %s3474_s19  ;;  %s42_s15 = int_to_ptr.vmem [resolvable:$true] %s41_s15 }
  0x25   :  { %p3478_p3 = scmp.lt.u32.totalorder %s3474_s19, %s5084_s2 }
  0x27   :  { %p3480_p4 = pnand %p3478_p3, %p3475_p2 }
  0x29   :  { %3483 = shalt.err (!%p3480_p4)
}
  0x2a   :  { %s3484_s24 = scalar_lea.vmem %s42_s15, 8192  ;;  %p3489_p6 = scmp.lt.s32.totalorder %s42_s15, %s42_s15 }
  0x2b   :  { %p3485_p5 = scmp.ne.s32.totalorder %s42_s15, %s3484_s24  ;;  %p3490_p7 = scmp.lt.s32.totalorder %s3484_s24, %s3484_s24 }
  0x2d   :  { %p3491_p8 = por %p3490_p7, %p3489_p6 }
  0x2f   :  { %p3492_p9 = pnand %p3491_p8, %p3485_p5 }
  0x31   :  { %3495 = shalt.err (!%p3492_p9)
}
  0x32   :  { %47 = dma.hbm_to_vmem [thread:$0]  %s5084_s2, 8192, %s42_s15, [#allocation10], %s3526_s27, %s3526_s27, %s3527_s28  }
  0x33   :  { %3518 = dma.done.wait [#allocation7], 2048  }
  0x34   :  { %3519 = vsyncadd [#allocation7], 4294965248 }
  0x35   :  { %3520 = dma.done.wait [#allocation10], 12288  }
  0x36   :  { %3521 = vsyncadd [#allocation10], 4294955008  ;;  %v5087_v0 = vmov 0   ;;  %v3613_v1 = vld [vmem:[#allocation9 + $0x4] ss:$16 sps:$4 sm:$0xff]   ;;  %v3530_v41 = vmov 0.0|0.0  }
  0x37   :  { %368 = vmatprep.mubr.bf16.mxu0 %v5087_v0  ;;  %409 = vmatprep.mubr.bf16.mxu1 %v5087_v0  ;;  %5392 = vst [vmem:[#allocation16_spill] sm:$0xff] %v3613_v1  ;;  %v3615_v2 = vld [vmem:[#allocation9 + $0xc] ss:$16 sps:$4 sm:$0xff]   ;;  %v3618_v3 = vld [vmem:[#allocation9] ss:$16 sps:$4 sm:$0xff]  }
  0x38   :  { %5393 = vst [vmem:[#allocation17_spill] sm:$0xff] %v3615_v2  ;;  %336 = vmatprep.subr.bf16.mxu0 %v3613_v1  ;;  %v3620_v4 = vld [vmem:[#allocation9 + $0x8] ss:$16 sps:$4 sm:$0xff]   ;;  %377 = vmatprep.subr.bf16.mxu1 %v3615_v2  ;;  %v3623_v5 = vld [vmem:[#allocation9 + $0x24] ss:$16 sps:$4 sm:$0xff]  }
  0x39   :  { %337 = vmatpush1.bf16.msra.mxu0 %v3618_v3  ;;  %378 = vmatpush1.bf16.msra.mxu1 %v3620_v4  ;;  %v3627_v6 = vld [vmem:[#allocation9 + $0x2c] ss:$16 sps:$4 sm:$0xff]   ;;  %v3629_v7 = vld [vmem:[#allocation9 + $0x20] ss:$16 sps:$4 sm:$0xff]   ;;  %v3632_v8 = vld [vmem:[#allocation9 + $0x28] ss:$16 sps:$4 sm:$0xff]  }
  0x3a   :  { %338 = vmatprep.subr.bf16.mxu0 %v3623_v5  ;;  %379 = vmatprep.subr.bf16.mxu1 %v3627_v6  ;;  %v3635_v9 = vld [vmem:[#allocation9 + $0x44] ss:$16 sps:$4 sm:$0xff]   ;;  %v3637_v10 = vld [vmem:[#allocation9 + $0x4c] ss:$16 sps:$4 sm:$0xff]   ;;  %v3639_v11 = vld [vmem:[#allocation9 + $0x40] ss:$16 sps:$4 sm:$0xff]  }
  0x3b   :  { %v3641_v12 = vld [vmem:[#allocation9 + $0x48] ss:$16 sps:$4 sm:$0xff]   ;;  %v3645_v13 = vld [vmem:[#allocation9 + $0x64] ss:$16 sps:$4 sm:$0xff]   ;;  %v3649_v14 = vld [vmem:[#allocation9 + $0x6c] ss:$16 sps:$4 sm:$0xff]  }
  0x3c   :  { %v3651_v15 = vld [vmem:[#allocation9 + $0x60] ss:$16 sps:$4 sm:$0xff]   ;;  %v3655_v16 = vld [vmem:[#allocation9 + $0x68] ss:$16 sps:$4 sm:$0xff]   ;;  %v3657_v17 = vld [vmem:[#allocation9 + $0x84] ss:$16 sps:$4 sm:$0xff]  }
  0x3d   :  { %339 = vmatpush1.bf16.msra.mxu0 %v3629_v7  ;;  %380 = vmatpush1.bf16.msra.mxu1 %v3632_v8  ;;  %v3661_v18 = vld [vmem:[#allocation9 + $0x8c] ss:$16 sps:$4 sm:$0xff]   ;;  %v3663_v19 = vld [vmem:[#allocation9 + $0x80] ss:$16 sps:$4 sm:$0xff]   ;;  %v3665_v20 = vld [vmem:[#allocation9 + $0x88] ss:$16 sps:$4 sm:$0xff]  }
  0x3e   :  { %340 = vmatprep.subr.bf16.mxu0 %v3635_v9  ;;  %381 = vmatprep.subr.bf16.mxu1 %v3637_v10  ;;  %v3669_v21 = vld [vmem:[#allocation9 + $0xa4] ss:$16 sps:$4 sm:$0xff]   ;;  %v3673_v22 = vld [vmem:[#allocation9 + $0xac] ss:$16 sps:$4 sm:$0xff]   ;;  %v3675_v23 = vld [vmem:[#allocation9 + $0xa0] ss:$16 sps:$4 sm:$0xff]  }
  0x3f   :  { %v3679_v24 = vld [vmem:[#allocation9 + $0xa8] ss:$16 sps:$4 sm:$0xff]   ;;  %v3681_v25 = vld [vmem:[#allocation9 + $0xc4] ss:$16 sps:$4 sm:$0xff]   ;;  %v3685_v26 = vld [vmem:[#allocation9 + $0xcc] ss:$16 sps:$4 sm:$0xff]  }
  0x40   :  { %v3687_v27 = vld [vmem:[#allocation9 + $0xc0] ss:$16 sps:$4 sm:$0xff]   ;;  %v3689_v28 = vld [vmem:[#allocation9 + $0xc8] ss:$16 sps:$4 sm:$0xff]   ;;  %v3693_v29 = vld [vmem:[#allocation9 + $0xe4] ss:$16 sps:$4 sm:$0xff]  }
  0x41   :  { %341 = vmatpush1.bf16.msra.mxu0 %v3639_v11  ;;  %382 = vmatpush1.bf16.msra.mxu1 %v3641_v12  ;;  %v3697_v30 = vld [vmem:[#allocation9 + $0xec] ss:$16 sps:$4 sm:$0xff]   ;;  %v3699_v31 = vld [vmem:[#allocation9 + $0xe0] ss:$16 sps:$4 sm:$0xff]   ;;  %v3703_v32 = vld [vmem:[#allocation9 + $0xe8] ss:$16 sps:$4 sm:$0xff]  }
  0x42   :  { %342 = vmatprep.subr.bf16.mxu0 %v3645_v13  ;;  %383 = vmatprep.subr.bf16.mxu1 %v3649_v14  ;;  %v3705_v33 = vld [vmem:[#allocation11 + $0x4] ss:$16 sps:$4 sm:$0xff]   ;;  %v3709_v34 = vld [vmem:[#allocation11 + $0xc] ss:$16 sps:$4 sm:$0xff]   ;;  %v3711_v35 = vld [vmem:[#allocation11] ss:$16 sps:$4 sm:$0xff]  }
  0x43   :  { %v3713_v36 = vld [vmem:[#allocation11 + $0x8] ss:$16 sps:$4 sm:$0xff]   ;;  %v3715_v37 = vld [vmem:[#allocation11 + $0x24] ss:$16 sps:$4 sm:$0xff]   ;;  %v3717_v38 = vld [vmem:[#allocation11 + $0x2c] ss:$16 sps:$4 sm:$0xff]  }
  0x44   :  { %v3723_v39 = vld [vmem:[#allocation11 + $0x20] ss:$16 sps:$4 sm:$0xff]   ;;  %v3725_v40 = vld [vmem:[#allocation11 + $0x28] ss:$16 sps:$4 sm:$0xff]   ;;  %v3727_v42 = vld [vmem:[#allocation11 + $0x44] ss:$16 sps:$4 sm:$0xff]  }
  0x45   :  { %343 = vmatpush1.bf16.msra.mxu0 %v3651_v15  ;;  %384 = vmatpush1.bf16.msra.mxu1 %v3655_v16  ;;  %v3729_v43 = vld [vmem:[#allocation11 + $0x4c] ss:$16 sps:$4 sm:$0xff]   ;;  %v3735_v44 = vld [vmem:[#allocation11 + $0x40] ss:$16 sps:$4 sm:$0xff]   ;;  %v3737_v45 = vld [vmem:[#allocation11 + $0x48] ss:$16 sps:$4 sm:$0xff]  }
  0x46   :  { %344 = vmatprep.subr.bf16.mxu0 %v3657_v17  ;;  %385 = vmatprep.subr.bf16.mxu1 %v3661_v18  ;;  %5394 = vst [vmem:[#allocation18_spill] sm:$0xff] %v3737_v45  ;;  %v3739_v46 = vld [vmem:[#allocation11 + $0x64] ss:$16 sps:$4 sm:$0xff]   ;;  %v3741_v47 = vld [vmem:[#allocation11 + $0x6c] ss:$16 sps:$4 sm:$0xff]  }
  0x47   :  { %5395 = vst [vmem:[#allocation19_spill] sm:$0xff] %v3739_v46  ;;  %5396 = vst [vmem:[#allocation20_spill] sm:$0xff] %v3741_v47  ;;  %v3751_v48 = vld [vmem:[#allocation11 + $0x60] ss:$16 sps:$4 sm:$0xff]   ;;  %v3753_v49 = vld [vmem:[#allocation11 + $0x68] ss:$16 sps:$4 sm:$0xff]  }
  0x48   :  { %5397 = vst [vmem:[#allocation21_spill] sm:$0xff] %v3751_v48  ;;  %5398 = vst [vmem:[#allocation22_spill] sm:$0xff] %v3753_v49  ;;  %v3757_v50 = vld [vmem:[#allocation11 + $0x84] ss:$16 sps:$4 sm:$0xff]   ;;  %v3759_v51 = vld [vmem:[#allocation11 + $0x8c] ss:$16 sps:$4 sm:$0xff]  }
  0x49   :  { %345 = vmatpush1.bf16.msra.mxu0 %v3663_v19  ;;  %386 = vmatpush1.bf16.msra.mxu1 %v3665_v20  ;;  %5399 = vst [vmem:[#allocation23_spill] sm:$0xff] %v3757_v50  ;;  %5400 = vst [vmem:[#allocation24_spill] sm:$0xff] %v3759_v51  ;;  %v3761_v52 = vld [vmem:[#allocation11 + $0x80] ss:$16 sps:$4 sm:$0xff]   ;;  %v3763_v53 = vld [vmem:[#allocation11 + $0x88] ss:$16 sps:$4 sm:$0xff]  }
  0x4a   :  { %346 = vmatprep.subr.bf16.mxu0 %v3669_v21  ;;  %387 = vmatprep.subr.bf16.mxu1 %v3673_v22  ;;  %5401 = vst [vmem:[#allocation25_spill] sm:$0xff] %v3761_v52  ;;  %5402 = vst [vmem:[#allocation26_spill] sm:$0xff] %v3763_v53  ;;  %v3769_v54 = vld [vmem:[#allocation11 + $0xa4] ss:$16 sps:$4 sm:$0xff]   ;;  %v3771_v55 = vld [vmem:[#allocation11 + $0xac] ss:$16 sps:$4 sm:$0xff]  }
  0x4b   :  { %5403 = vst [vmem:[#allocation27_spill] sm:$0xff] %v3769_v54  ;;  %5404 = vst [vmem:[#allocation28_spill] sm:$0xff] %v3771_v55  ;;  %v3773_v56 = vld [vmem:[#allocation11 + $0xa0] ss:$16 sps:$4 sm:$0xff]   ;;  %v3775_v57 = vld [vmem:[#allocation11 + $0xa8] ss:$16 sps:$4 sm:$0xff]  }
  0x4c   :  { %5405 = vst [vmem:[#allocation29_spill] sm:$0xff] %v3773_v56  ;;  %5406 = vst [vmem:[#allocation30_spill] sm:$0xff] %v3775_v57  ;;  %v3781_v58 = vld [vmem:[#allocation11 + $0xc4] ss:$16 sps:$4 sm:$0xff]   ;;  %v3783_v59 = vld [vmem:[#allocation11 + $0xcc] ss:$16 sps:$4 sm:$0xff]  }
  0x4d   :  { %347 = vmatpush1.bf16.msra.mxu0 %v3675_v23  ;;  %388 = vmatpush1.bf16.msra.mxu1 %v3679_v24  ;;  %5407 = vst [vmem:[#allocation31_spill] sm:$0xff] %v3781_v58  ;;  %5408 = vst [vmem:[#allocation32_spill] sm:$0xff] %v3783_v59  ;;  %v3785_v60 = vld [vmem:[#allocation11 + $0xc0] ss:$16 sps:$4 sm:$0xff]   ;;  %v3787_v61 = vld [vmem:[#allocation11 + $0xc8] ss:$16 sps:$4 sm:$0xff]  }
  0x4e   :  { %348 = vmatprep.subr.bf16.mxu0 %v3681_v25  ;;  %389 = vmatprep.subr.bf16.mxu1 %v3685_v26  ;;  %5409 = vst [vmem:[#allocation33_spill] sm:$0xff] %v3785_v60  ;;  %5410 = vst [vmem:[#allocation34_spill] sm:$0xff] %v3787_v61  ;;  %v3793_v62 = vld [vmem:[#allocation11 + $0xe4] ss:$16 sps:$4 sm:$0xff]   ;;  %v3795_v63 = vld [vmem:[#allocation11 + $0xec] ss:$16 sps:$4 sm:$0xff]  }
  0x4f   :  { %5411 = vst [vmem:[#allocation35_spill] sm:$0xff] %v3793_v62  ;;  %5412 = vst [vmem:[#allocation36_spill] sm:$0xff] %v3795_v63  ;;  %v3799_v0 = vld [vmem:[#allocation11 + $0xe8] ss:$16 sps:$4 sm:$0xff]  }
  0x50   :  { %5414 = vst [vmem:[#allocation38_spill] sm:$0xff] %v3799_v0 }
  0x51   :  { %349 = vmatpush1.bf16.msra.mxu0 %v3687_v27  ;;  %390 = vmatpush1.bf16.msra.mxu1 %v3689_v28 }
  0x52   :  { %350 = vmatprep.subr.bf16.mxu0 %v3693_v29  ;;  %391 = vmatprep.subr.bf16.mxu1 %v3697_v30 }
  0x55   :  { %351 = vmatpush1.bf16.msra.mxu0 %v3699_v31  ;;  %392 = vmatpush1.bf16.msra.mxu1 %v3703_v32 }
  0x56   :  { %796 = vmatprep.subr.bf16.mxu0 %v3705_v33  ;;  %837 = vmatprep.subr.bf16.mxu1 %v3709_v34 }
  0x58   :  { %369 = vmatmul.mubr.bf16.vlgmr.msra.gmra.mrb[0].mxu0 %v3530_v41  ;;  %410 = vmatmul.mubr.bf16.vlgmr.msra.gmra.mrb[0].mxu1 %v3530_v41 }
  0x59   :  { %797 = vmatpush1.bf16.msra.mxu0 %v3711_v35  ;;  %838 = vmatpush1.bf16.msra.mxu1 %v3713_v36 }
  0x5a   :  { %798 = vmatprep.subr.bf16.mxu0 %v3715_v37  ;;  %839 = vmatprep.subr.bf16.mxu1 %v3717_v38 }
  0x5b   :  { %828 = vmatprep.mubr.bf16.mxu0 %v3530_v41  ;;  %869 = vmatprep.mubr.bf16.mxu1 %v3530_v41  ;;  %v3797_v41 = vld [vmem:[#allocation11 + $0xe0] ss:$16 sps:$4 sm:$0xff]  }
  0x5c   :  { %5413 = vst [vmem:[#allocation37_spill] sm:$0xff] %v3797_v41 }
  0x5d   :  { %799 = vmatpush1.bf16.msra.mxu0 %v3723_v39  ;;  %840 = vmatpush1.bf16.msra.mxu1 %v3725_v40 }
  0x5e   :  { %800 = vmatprep.subr.bf16.mxu0 %v3727_v42  ;;  %841 = vmatprep.subr.bf16.mxu1 %v3729_v43 }
  0x61   :  { %801 = vmatpush1.bf16.msra.mxu0 %v3735_v44  ;;  %842 = vmatpush1.bf16.msra.mxu1 %v3737_v45 }
  0x62   :  { %802 = vmatprep.subr.bf16.mxu0 %v3739_v46  ;;  %843 = vmatprep.subr.bf16.mxu1 %v3741_v47 }
  0x65   :  { %803 = vmatpush1.bf16.msra.mxu0 %v3751_v48  ;;  %844 = vmatpush1.bf16.msra.mxu1 %v3753_v49 }
  0x66   :  { %804 = vmatprep.subr.bf16.mxu0 %v3757_v50  ;;  %845 = vmatprep.subr.bf16.mxu1 %v3759_v51 }
  0x69   :  { %805 = vmatpush1.bf16.msra.mxu0 %v3761_v52  ;;  %846 = vmatpush1.bf16.msra.mxu1 %v3763_v53 }
  0x6a   :  { %806 = vmatprep.subr.bf16.mxu0 %v3769_v54  ;;  %847 = vmatprep.subr.bf16.mxu1 %v3771_v55 }
  0x6d   :  { %807 = vmatpush1.bf16.msra.mxu0 %v3773_v56  ;;  %848 = vmatpush1.bf16.msra.mxu1 %v3775_v57  ;;  %v3873_v57 = vld [vmem:[#allocation11 + $0x1c4] ss:$16 sps:$4 sm:$0xff]   ;;  %v3875_v56 = vld [vmem:[#allocation11 + $0x1cc] ss:$16 sps:$4 sm:$0xff]  }
  0x6e   :  { %808 = vmatprep.subr.bf16.mxu0 %v3781_v58  ;;  %849 = vmatprep.subr.bf16.mxu1 %v3783_v59  ;;  %v3805_v59 = vld [vmem:[#allocation11 + $0x104] ss:$16 sps:$4 sm:$0xff]   ;;  %v3811_v58 = vld [vmem:[#allocation11 + $0x108] ss:$16 sps:$4 sm:$0xff]   ;;  %5439 = vst [vmem:[#allocation63_spill] sm:$0xff] %v3873_v57  ;;  %5440 = vst [vmem:[#allocation64_spill] sm:$0xff] %v3875_v56 }
  0x6f   :  { %5415 = vst [vmem:[#allocation39_spill] sm:$0xff] %v3805_v59  ;;  %5418 = vst [vmem:[#allocation42_spill] sm:$0xff] %v3811_v58 }
  0x71   :  { %809 = vmatpush1.bf16.msra.mxu0 %v3785_v60  ;;  %850 = vmatpush1.bf16.msra.mxu1 %v3787_v61  ;;  %v3807_v60 = vld [vmem:[#allocation11 + $0x10c] ss:$16 sps:$4 sm:$0xff]   ;;  %v3809_v61 = vld [vmem:[#allocation11 + $0x100] ss:$16 sps:$4 sm:$0xff]  }
  0x72   :  { %810 = vmatprep.subr.bf16.mxu0 %v3793_v62  ;;  %851 = vmatprep.subr.bf16.mxu1 %v3795_v63  ;;  %5416 = vst [vmem:[#allocation40_spill] sm:$0xff] %v3807_v60  ;;  %5417 = vst [vmem:[#allocation41_spill] sm:$0xff] %v3809_v61  ;;  %v3817_v63 = vld [vmem:[#allocation11 + $0x124] ss:$16 sps:$4 sm:$0xff]   ;;  %v3823_v62 = vld [vmem:[#allocation11 + $0x128] ss:$16 sps:$4 sm:$0xff]  }
  0x73   :  { %5419 = vst [vmem:[#allocation43_spill] sm:$0xff] %v3817_v63  ;;  %5422 = vst [vmem:[#allocation46_spill] sm:$0xff] %v3823_v62 }
  0x75   :  { %811 = vmatpush1.bf16.msra.mxu0 %v3797_v41  ;;  %852 = vmatpush1.bf16.msra.mxu1 %v3799_v0  ;;  %v3819_v41 = vld [vmem:[#allocation11 + $0x12c] ss:$16 sps:$4 sm:$0xff]   ;;  %v3821_v0 = vld [vmem:[#allocation11 + $0x120] ss:$16 sps:$4 sm:$0xff]  }
  0x76   :  { %812 = vmatprep.subr.bf16.mxu0 %v3805_v59  ;;  %853 = vmatprep.subr.bf16.mxu1 %v3807_v60  ;;  %5420 = vst [vmem:[#allocation44_spill] sm:$0xff] %v3819_v41  ;;  %5421 = vst [vmem:[#allocation45_spill] sm:$0xff] %v3821_v0  ;;  %v3829_v60 = vld [vmem:[#allocation11 + $0x144] ss:$16 sps:$4 sm:$0xff]   ;;  %v3835_v59 = vld [vmem:[#allocation11 + $0x148] ss:$16 sps:$4 sm:$0xff]  }
  0x77   :  { %5423 = vst [vmem:[#allocation47_spill] sm:$0xff] %v3829_v60  ;;  %5426 = vst [vmem:[#allocation50_spill] sm:$0xff] %v3835_v59 }
  0x79   :  { %813 = vmatpush1.bf16.msra.mxu0 %v3809_v61  ;;  %854 = vmatpush1.bf16.msra.mxu1 %v3811_v58  ;;  %v3831_v61 = vld [vmem:[#allocation11 + $0x14c] ss:$16 sps:$4 sm:$0xff]   ;;  %v3833_v58 = vld [vmem:[#allocation11 + $0x140] ss:$16 sps:$4 sm:$0xff]  }
  0x7a   :  { %814 = vmatprep.subr.bf16.mxu0 %v3817_v63  ;;  %855 = vmatprep.subr.bf16.mxu1 %v3819_v41  ;;  %5424 = vst [vmem:[#allocation48_spill] sm:$0xff] %v3831_v61  ;;  %5425 = vst [vmem:[#allocation49_spill] sm:$0xff] %v3833_v58  ;;  %v3841_v41 = vld [vmem:[#allocation11 + $0x164] ss:$16 sps:$4 sm:$0xff]   ;;  %v3847_v63 = vld [vmem:[#allocation11 + $0x168] ss:$16 sps:$4 sm:$0xff]  }
  0x7b   :  { %5427 = vst [vmem:[#allocation51_spill] sm:$0xff] %v3841_v41  ;;  %5430 = vst [vmem:[#allocation54_spill] sm:$0xff] %v3847_v63 }
  0x7d   :  { %815 = vmatpush1.bf16.msra.mxu0 %v3821_v0  ;;  %856 = vmatpush1.bf16.msra.mxu1 %v3823_v62  ;;  %v3843_v0 = vld [vmem:[#allocation11 + $0x16c] ss:$16 sps:$4 sm:$0xff]   ;;  %v3845_v62 = vld [vmem:[#allocation11 + $0x160] ss:$16 sps:$4 sm:$0xff]  }
  0x7e   :  { %816 = vmatprep.subr.bf16.mxu0 %v3829_v60  ;;  %857 = vmatprep.subr.bf16.mxu1 %v3831_v61  ;;  %5428 = vst [vmem:[#allocation52_spill] sm:$0xff] %v3843_v0  ;;  %5429 = vst [vmem:[#allocation53_spill] sm:$0xff] %v3845_v62  ;;  %v3853_v61 = vld [vmem:[#allocation11 + $0x184] ss:$16 sps:$4 sm:$0xff]   ;;  %v3859_v60 = vld [vmem:[#allocation11 + $0x188] ss:$16 sps:$4 sm:$0xff]  }
  0x7f   :  { %5431 = vst [vmem:[#allocation55_spill] sm:$0xff] %v3853_v61  ;;  %5434 = vst [vmem:[#allocation58_spill] sm:$0xff] %v3859_v60 }
  0x81   :  { %817 = vmatpush1.bf16.msra.mxu0 %v3833_v58  ;;  %858 = vmatpush1.bf16.msra.mxu1 %v3835_v59  ;;  %v3855_v58 = vld [vmem:[#allocation11 + $0x18c] ss:$16 sps:$4 sm:$0xff]   ;;  %v3857_v59 = vld [vmem:[#allocation11 + $0x180] ss:$16 sps:$4 sm:$0xff]  }
  0x82   :  { %818 = vmatprep.subr.bf16.mxu0 %v3841_v41  ;;  %859 = vmatprep.subr.bf16.mxu1 %v3843_v0  ;;  %5432 = vst [vmem:[#allocation56_spill] sm:$0xff] %v3855_v58  ;;  %5433 = vst [vmem:[#allocation57_spill] sm:$0xff] %v3857_v59  ;;  %v3865_v0 = vld [vmem:[#allocation11 + $0x1a4] ss:$16 sps:$4 sm:$0xff]   ;;  %v3871_v41 = vld [vmem:[#allocation11 + $0x1a8] ss:$16 sps:$4 sm:$0xff]  }
  0x83   :  { %5435 = vst [vmem:[#allocation59_spill] sm:$0xff] %v3865_v0  ;;  %5438 = vst [vmem:[#allocation62_spill] sm:$0xff] %v3871_v41 }
  0x85   :  { %819 = vmatpush1.bf16.msra.mxu0 %v3845_v62  ;;  %860 = vmatpush1.bf16.msra.mxu1 %v3847_v63  ;;  %v3867_v62 = vld [vmem:[#allocation11 + $0x1ac] ss:$16 sps:$4 sm:$0xff]   ;;  %v3869_v63 = vld [vmem:[#allocation11 + $0x1a0] ss:$16 sps:$4 sm:$0xff]  }
  0x86   :  { %820 = vmatprep.subr.bf16.mxu0 %v3853_v61  ;;  %861 = vmatprep.subr.bf16.mxu1 %v3855_v58  ;;  %5436 = vst [vmem:[#allocation60_spill] sm:$0xff] %v3867_v62  ;;  %5437 = vst [vmem:[#allocation61_spill] sm:$0xff] %v3869_v63  ;;  %v3887_v58 = vld [vmem:[#allocation11 + $0x1e4] ss:$16 sps:$4 sm:$0xff]   ;;  %v3889_v61 = vld [vmem:[#allocation11 + $0x1ec] ss:$16 sps:$4 sm:$0xff]  }
  0x87   :  { %5443 = vst [vmem:[#allocation67_spill] sm:$0xff] %v3887_v58  ;;  %5444 = vst [vmem:[#allocation68_spill] sm:$0xff] %v3889_v61 }
  0x89   :  { %821 = vmatpush1.bf16.msra.mxu0 %v3857_v59  ;;  %862 = vmatpush1.bf16.msra.mxu1 %v3859_v60  ;;  %v3881_v60 = vld [vmem:[#allocation11 + $0x1c0] ss:$16 sps:$4 sm:$0xff]   ;;  %v3883_v59 = vld [vmem:[#allocation11 + $0x1c8] ss:$16 sps:$4 sm:$0xff]  }
  0x8a   :  { %822 = vmatprep.subr.bf16.mxu0 %v3865_v0  ;;  %863 = vmatprep.subr.bf16.mxu1 %v3867_v62  ;;  %5441 = vst [vmem:[#allocation65_spill] sm:$0xff] %v3881_v60  ;;  %5442 = vst [vmem:[#allocation66_spill] sm:$0xff] %v3883_v59  ;;  %v3893_v62 = vld [vmem:[#allocation11 + $0x1e0] ss:$16 sps:$4 sm:$0xff]  }
  0x8b   :  { %5445 = vst [vmem:[#allocation69_spill] sm:$0xff] %v3893_v62 }
  0x8d   :  { %823 = vmatpush1.bf16.msra.mxu0 %v3869_v63  ;;  %864 = vmatpush1.bf16.msra.mxu1 %v3871_v41  ;;  %v3895_v63 = vld [vmem:[#allocation11 + $0x1e8] ss:$16 sps:$4 sm:$0xff]  }
  0x8e   :  { %824 = vmatprep.subr.bf16.mxu0 %v3873_v57  ;;  %865 = vmatprep.subr.bf16.mxu1 %v3875_v56  ;;  %5446 = vst [vmem:[#allocation70_spill] sm:$0xff] %v3895_v63  ;;  %v169_v56 = vld [vmem:[#allocation6] sm:$0xff] }
  0x8f   :  { %v171_v57 = vunpack.c.l.bf16 %v169_v56  ;;  %v172_v41 = vunpack.c.h.bf16 %v169_v56 }
  0x91   :  { %825 = vmatpush1.bf16.msra.mxu0 %v3881_v60  ;;  %866 = vmatpush1.bf16.msra.mxu1 %v3883_v59  ;;  %v170_v60 = vld [vmem:[#allocation6 + $0x8] sm:$0xff] }
  0x92   :  { %826 = vmatprep.subr.bf16.mxu0 %v3887_v58  ;;  %867 = vmatprep.subr.bf16.mxu1 %v3889_v61  ;;  %v173_v59 = vunpack.c.l.bf16 %v170_v60 }
  0x95   :  { %827 = vmatpush1.bf16.msra.mxu0 %v3893_v62  ;;  %868 = vmatpush1.bf16.msra.mxu1 %v3895_v63 }
  0x96   :  { %918 = vmatprep.subr.bf16.mxu0 %v3613_v1  ;;  %959 = vmatprep.subr.bf16.mxu1 %v3615_v2  ;;  %v174_v2 = vunpack.c.h.bf16 %v170_v60 }
 0x12b   :  { %v370_v0 = vpop.f32.mrb[0].mxu0  ;;  %v411_v55 = vpop.f32.mrb[0].mxu1 }
 0x12c   :  { %v418_v54 = vadd.f32 %v370_v0, %v171_v57  ;;  %v420_v53 = vadd.f32 %v411_v55, %v173_v59  ;;  %v372_v58 = vpop.f32.mrb[1].mxu0  ;;  %v413_v52 = vpop.f32.mrb[1].mxu1 }
 0x12d   :  { %v419_v61 = vadd.f32 %v372_v58, %v172_v41  ;;  %v374_v51 = vpop.f32.mrb[2].mxu0  ;;  %v415_v62 = vpop.f32.mrb[2].mxu1  ;;  %v421_v47 = vadd.f32 %v413_v52, %v174_v2  ;;  %v5471_v41 = vld [vmem:[#allocation41_spill] sm:$0xff] }
 0x12e   :  { %v2652_v50 = vmul.f32 -1.442695, %v418_v54  ;;  %v2654_v63 = vmul.f32 -1.442695, %v420_v53  ;;  %v375_v49 = vpop.f32.mrb[3].mxu0  ;;  %v416_v1 = vpop.f32.mrb[3].mxu1 }
 0x12f   :  { %v2653_v48 = vmul.f32 -1.442695, %v419_v61  ;;  %v2655_v56 = vmul.f32 -1.442695, %v421_v47  ;;  %v5447_v61 = vmov 0   ;;  %v5469_v62 = vld [vmem:[#allocation39_spill] sm:$0xff] }
 0x130   :  { %2950 = vpow2.f32 %v2652_v50 }
 0x131   :  { %2952 = vpow2.f32 %v2654_v63  ;;  %v5470_v63 = vld [vmem:[#allocation40_spill] sm:$0xff] }
 0x132   :  { %2954 = vpow2.f32 %v2653_v48 }
 0x133   :  { %2956 = vpow2.f32 %v2655_v56  ;;  %v5472_v56 = vld [vmem:[#allocation42_spill] sm:$0xff] }
 0x13a   :  { %v2951_v46 = vpop.eup %2950 }
 0x13b   :  { %v2953_v45 = vpop.eup %2952  ;;  %v434_v55 = vadd.f32 1.0, %v2951_v46 }
 0x13c   :  { %v2955_v0 = vpop.eup %2954  ;;  %v436_v57 = vadd.f32 1.0, %v2953_v45 }
 0x13d   :  { %v435_v59 = vadd.f32 1.0, %v2955_v0  ;;  %v2957_v51 = vpop.eup %2956  ;;  %v5473_v0 = vld [vmem:[#allocation43_spill] sm:$0xff] }
 0x13e   :  { %2958 = vrcp.f32 %v436_v57  ;;  %v437_v48 = vadd.f32 1.0, %v2957_v51  ;;  %v5475_v57 = vld [vmem:[#allocation45_spill] sm:$0xff]  ;;  %v5477_v51 = vld [vmem:[#allocation47_spill] sm:$0xff] }
 0x13f   :  { %2960 = vrcp.f32 %v435_v59  ;;  %v5476_v59 = vld [vmem:[#allocation46_spill] sm:$0xff] }
 0x140   :  { %2962 = vrcp.f32 %v434_v55  ;;  %v5474_v55 = vld [vmem:[#allocation44_spill] sm:$0xff] }
 0x141   :  { %2964 = vrcp.f32 %v437_v48  ;;  %v5484_v48 = vld [vmem:[#allocation54_spill] sm:$0xff] }
 0x148   :  { %v2959_v49 = vpop.eup %2958 }
 0x149   :  { %v2961_v1 = vpop.eup %2960  ;;  %v446_v53 = vmul.f32 2.0, %v2959_v49  ;;  %v5478_v49 = vld [vmem:[#allocation48_spill] sm:$0xff] }
 0x14a   :  { %v2963_v50 = vpop.eup %2962  ;;  %v448_v58 = vmul.f32 0.0, %v2961_v1  ;;  %v5479_v1 = vld [vmem:[#allocation49_spill] sm:$0xff] }
 0x14b   :  { %v2656_v54 = vadd.f32 -1.0, %v446_v53  ;;  %v2965_v45 = vpop.eup %2964  ;;  %v5480_v53 = vld [vmem:[#allocation50_spill] sm:$0xff] }
 0x14d   :  { %v449_v2 = vmul.f32 %v2963_v50, %v2656_v54  ;;  %v5481_v50 = vld [vmem:[#allocation51_spill] sm:$0xff]  ;;  %v5482_v54 = vld [vmem:[#allocation52_spill] sm:$0xff] }
 0x14f   :  { %v3903_v47 = vadd.f32 %v449_v2, %v448_v58  ;;  %v5483_v58 = vld [vmem:[#allocation53_spill] sm:$0xff]  ;;  %v5485_v2 = vld [vmem:[#allocation55_spill] sm:$0xff] }
 0x151   :  { %2966 = vtanh.f32 %v3903_v47 }
 0x15b   :  { %v2967_v46 = vpop.eup %2966 }
 0x15c   :  { %v452_v52 = vmul.f32 %v2967_v46, %v2965_v45  ;;  %v5486_v45 = vld [vmem:[#allocation56_spill] sm:$0xff]  ;;  %v5487_v46 = vld [vmem:[#allocation57_spill] sm:$0xff] }
 0x15e   :  { %v453_v60 = vpack.c.bf16 %v452_v52, %v452_v52  ;;  %v5488_v52 = vld [vmem:[#allocation58_spill] sm:$0xff] }
 0x160   :  { %829 = vmatmul.mubr.bf16.vlgmr.msra.gmra.mrb[4].mxu0 %v453_v60  ;;  %870 = vmatmul.mubr.bf16.vlgmr.msra.gmra.mrb[4].mxu1 %v453_v60 }
 0x161   :  { %919 = vmatpush1.bf16.msra.mxu0 %v3618_v3  ;;  %960 = vmatpush1.bf16.msra.mxu1 %v3620_v4  ;;  %v5448_v3 = vld [vmem:[#allocation18_spill] sm:$0xff]  ;;  %v5449_v4 = vld [vmem:[#allocation19_spill] sm:$0xff] }
 0x162   :  { %920 = vmatprep.subr.bf16.mxu0 %v3623_v5  ;;  %961 = vmatprep.subr.bf16.mxu1 %v3627_v6  ;;  %v5450_v5 = vld [vmem:[#allocation20_spill] sm:$0xff]  ;;  %v5451_v6 = vld [vmem:[#allocation21_spill] sm:$0xff] }
 0x163   :  { %950 = vmatprep.mubr.bf16.mxu0 %v5447_v61  ;;  %991 = vmatprep.mubr.bf16.mxu1 %v5447_v61 }
 0x165   :  { %921 = vmatpush1.bf16.msra.mxu0 %v3629_v7  ;;  %962 = vmatpush1.bf16.msra.mxu1 %v3632_v8  ;;  %v5452_v7 = vld [vmem:[#allocation22_spill] sm:$0xff]  ;;  %v5453_v8 = vld [vmem:[#allocation23_spill] sm:$0xff] }
 0x166   :  { %922 = vmatprep.subr.bf16.mxu0 %v3635_v9  ;;  %963 = vmatprep.subr.bf16.mxu1 %v3637_v10  ;;  %v5454_v9 = vld [vmem:[#allocation24_spill] sm:$0xff]  ;;  %v5455_v10 = vld [vmem:[#allocation25_spill] sm:$0xff] }
 0x169   :  { %923 = vmatpush1.bf16.msra.mxu0 %v3639_v11  ;;  %964 = vmatpush1.bf16.msra.mxu1 %v3641_v12  ;;  %v5456_v11 = vld [vmem:[#allocation26_spill] sm:$0xff]  ;;  %v5457_v12 = vld [vmem:[#allocation27_spill] sm:$0xff] }
 0x16a   :  { %924 = vmatprep.subr.bf16.mxu0 %v3645_v13  ;;  %965 = vmatprep.subr.bf16.mxu1 %v3649_v14  ;;  %v5458_v13 = vld [vmem:[#allocation28_spill] sm:$0xff]  ;;  %v5459_v14 = vld [vmem:[#allocation29_spill] sm:$0xff] }
 0x16d   :  { %925 = vmatpush1.bf16.msra.mxu0 %v3651_v15  ;;  %966 = vmatpush1.bf16.msra.mxu1 %v3655_v16  ;;  %v5460_v15 = vld [vmem:[#allocation30_spill] sm:$0xff]  ;;  %v5461_v16 = vld [vmem:[#allocation31_spill] sm:$0xff] }
 0x16e   :  { %926 = vmatprep.subr.bf16.mxu0 %v3657_v17  ;;  %967 = vmatprep.subr.bf16.mxu1 %v3661_v18  ;;  %v5462_v17 = vld [vmem:[#allocation32_spill] sm:$0xff]  ;;  %v5463_v18 = vld [vmem:[#allocation33_spill] sm:$0xff] }
 0x171   :  { %927 = vmatpush1.bf16.msra.mxu0 %v3663_v19  ;;  %968 = vmatpush1.bf16.msra.mxu1 %v3665_v20  ;;  %v5464_v19 = vld [vmem:[#allocation34_spill] sm:$0xff]  ;;  %v5465_v20 = vld [vmem:[#allocation35_spill] sm:$0xff] }
 0x172   :  { %928 = vmatprep.subr.bf16.mxu0 %v3669_v21  ;;  %969 = vmatprep.subr.bf16.mxu1 %v3673_v22  ;;  %v5466_v21 = vld [vmem:[#allocation36_spill] sm:$0xff]  ;;  %v5467_v22 = vld [vmem:[#allocation37_spill] sm:$0xff] }
 0x175   :  { %929 = vmatpush1.bf16.msra.mxu0 %v3675_v23  ;;  %970 = vmatpush1.bf16.msra.mxu1 %v3679_v24  ;;  %v5468_v23 = vld [vmem:[#allocation38_spill] sm:$0xff] }
 0x176   :  { %930 = vmatprep.subr.bf16.mxu0 %v3681_v25  ;;  %971 = vmatprep.subr.bf16.mxu1 %v3685_v26 }
 0x179   :  { %931 = vmatpush1.bf16.msra.mxu0 %v3687_v27  ;;  %972 = vmatpush1.bf16.msra.mxu1 %v3689_v28 }
 0x17a   :  { %932 = vmatprep.subr.bf16.mxu0 %v3693_v29  ;;  %973 = vmatprep.subr.bf16.mxu1 %v3697_v30 }
 0x17d   :  { %933 = vmatpush1.bf16.msra.mxu0 %v3699_v31  ;;  %974 = vmatpush1.bf16.msra.mxu1 %v3703_v32 }
 0x17e   :  { %1036 = vmatprep.subr.bf16.mxu0 %v3705_v33  ;;  %1077 = vmatprep.subr.bf16.mxu1 %v3709_v34 }
 0x180   :  { %951 = vmatmul.mubr.bf16.vlgmr.msra.gmra.mrb[8].mxu0 %v453_v60  ;;  %992 = vmatmul.mubr.bf16.vlgmr.msra.gmra.mrb[8].mxu1 %v453_v60  ;;  %v5489_v60 = vld [vmem:[#allocation59_spill] sm:$0xff] }
 0x181   :  { %1037 = vmatpush1.bf16.msra.mxu0 %v3711_v35  ;;  %1078 = vmatpush1.bf16.msra.mxu1 %v3713_v36 }
 0x182   :  { %1038 = vmatprep.subr.bf16.mxu0 %v3715_v37  ;;  %1079 = vmatprep.subr.bf16.mxu1 %v3717_v38 }
 0x185   :  { %1039 = vmatpush1.bf16.msra.mxu0 %v3723_v39  ;;  %1080 = vmatpush1.bf16.msra.mxu1 %v3725_v40 }
 0x186   :  { %1040 = vmatprep.subr.bf16.mxu0 %v3727_v42  ;;  %1081 = vmatprep.subr.bf16.mxu1 %v3729_v43 }
 0x189   :  { %1041 = vmatpush1.bf16.msra.mxu0 %v3735_v44  ;;  %1082 = vmatpush1.bf16.msra.mxu1 %v5448_v3 }
 0x18a   :  { %1042 = vmatprep.subr.bf16.mxu0 %v5449_v4  ;;  %1083 = vmatprep.subr.bf16.mxu1 %v5450_v5 }
 0x18d   :  { %1043 = vmatpush1.bf16.msra.mxu0 %v5451_v6  ;;  %1084 = vmatpush1.bf16.msra.mxu1 %v5452_v7 }
 0x18e   :  { %1044 = vmatprep.subr.bf16.mxu0 %v5453_v8  ;;  %1085 = vmatprep.subr.bf16.mxu1 %v5454_v9 }
 0x191   :  { %1045 = vmatpush1.bf16.msra.mxu0 %v5455_v10  ;;  %1086 = vmatpush1.bf16.msra.mxu1 %v5456_v11 }
 0x192   :  { %1046 = vmatprep.subr.bf16.mxu0 %v5457_v12  ;;  %1087 = vmatprep.subr.bf16.mxu1 %v5458_v13 }
 0x195   :  { %1047 = vmatpush1.bf16.msra.mxu0 %v5459_v14  ;;  %1088 = vmatpush1.bf16.msra.mxu1 %v5460_v15 }
 0x196   :  { %1048 = vmatprep.subr.bf16.mxu0 %v5461_v16  ;;  %1089 = vmatprep.subr.bf16.mxu1 %v5462_v17 }
 0x199   :  { %1049 = vmatpush1.bf16.msra.mxu0 %v5463_v18  ;;  %1090 = vmatpush1.bf16.msra.mxu1 %v5464_v19 }
 0x19a   :  { %1050 = vmatprep.subr.bf16.mxu0 %v5465_v20  ;;  %1091 = vmatprep.subr.bf16.mxu1 %v5466_v21 }
 0x19d   :  { %1051 = vmatpush1.bf16.msra.mxu0 %v5467_v22  ;;  %1092 = vmatpush1.bf16.msra.mxu1 %v5468_v23 }
 0x19e   :  { %1052 = vmatprep.subr.bf16.mxu0 %v5469_v62  ;;  %1093 = vmatprep.subr.bf16.mxu1 %v5470_v63 }
 0x1a1   :  { %1053 = vmatpush1.bf16.msra.mxu0 %v5471_v41  ;;  %1094 = vmatpush1.bf16.msra.mxu1 %v5472_v56 }
 0x1a2   :  { %1054 = vmatprep.subr.bf16.mxu0 %v5473_v0  ;;  %1095 = vmatprep.subr.bf16.mxu1 %v5474_v55 }
 0x1a5   :  { %1055 = vmatpush1.bf16.msra.mxu0 %v5475_v57  ;;  %1096 = vmatpush1.bf16.msra.mxu1 %v5476_v59 }
 0x1a6   :  { %1056 = vmatprep.subr.bf16.mxu0 %v5477_v51  ;;  %1097 = vmatprep.subr.bf16.mxu1 %v5478_v49 }
 0x1a9   :  { %1057 = vmatpush1.bf16.msra.mxu0 %v5479_v1  ;;  %1098 = vmatpush1.bf16.msra.mxu1 %v5480_v53  ;;  %v5490_v1 = vld [vmem:[#allocation60_spill] sm:$0xff]  ;;  %v5491_v53 = vld [vmem:[#allocation61_spill] sm:$0xff] }
 0x1aa   :  { %1058 = vmatprep.subr.bf16.mxu0 %v5481_v50  ;;  %1099 = vmatprep.subr.bf16.mxu1 %v5482_v54  ;;  %v5492_v50 = vld [vmem:[#allocation62_spill] sm:$0xff]  ;;  %v5493_v54 = vld [vmem:[#allocation63_spill] sm:$0xff] }
 0x1ad   :  { %1059 = vmatpush1.bf16.msra.mxu0 %v5483_v58  ;;  %1100 = vmatpush1.bf16.msra.mxu1 %v5484_v48  ;;  %v5494_v58 = vld [vmem:[#allocation64_spill] sm:$0xff]  ;;  %v5495_v48 = vld [vmem:[#allocation65_spill] sm:$0xff] }
 0x1ae   :  { %1060 = vmatprep.subr.bf16.mxu0 %v5485_v2  ;;  %1101 = vmatprep.subr.bf16.mxu1 %v5486_v45  ;;  %v5496_v2 = vld [vmem:[#allocation66_spill] sm:$0xff]  ;;  %v5497_v45 = vld [vmem:[#allocation67_spill] sm:$0xff] }
 0x1b1   :  { %1061 = vmatpush1.bf16.msra.mxu0 %v5487_v46  ;;  %1102 = vmatpush1.bf16.msra.mxu1 %v5488_v52  ;;  %v5498_v46 = vld [vmem:[#allocation68_spill] sm:$0xff]  ;;  %v5499_v52 = vld [vmem:[#allocation69_spill] sm:$0xff] }
 0x1b2   :  { %1062 = vmatprep.subr.bf16.mxu0 %v5489_v60  ;;  %1103 = vmatprep.subr.bf16.mxu1 %v5490_v1  ;;  %v5500_v60 = vld [vmem:[#allocation70_spill] sm:$0xff]  ;;  %v5501_v1 = vld [vmem:[#allocation16_spill] sm:$0xff] }
 0x1b5   :  { %1063 = vmatpush1.bf16.msra.mxu0 %v5491_v53  ;;  %1104 = vmatpush1.bf16.msra.mxu1 %v5492_v50  ;;  %v5502_v53 = vld [vmem:[#allocation17_spill] sm:$0xff]  ;;  %v456_v50 = vlaneseq }
 0x1b6   :  { %1064 = vmatprep.subr.bf16.mxu0 %v5493_v54  ;;  %1105 = vmatprep.subr.bf16.mxu1 %v5494_v58 }
 0x1b7   :  { %v457_v54 = vshrl.u32 %v456_v50, 7 }
 0x1b9   :  { %1065 = vmatpush1.bf16.msra.mxu0 %v5495_v48  ;;  %1106 = vmatpush1.bf16.msra.mxu1 %v5496_v2  ;;  %v458_v49 = vsub.s32 0, %v457_v54  ;;  %v466_v58 = vsub.s32 2, %v457_v54  ;;  %v164_v2 = vld [vmem:[%s5085_s3] sm:$0xf]  ;;  %v462_v48 = vsub.s32 1, %v457_v54  ;;  %v470_v55 = vsub.s32 3, %v457_v54 }
 0x1ba   :  { %1066 = vmatprep.subr.bf16.mxu0 %v5497_v45  ;;  %1107 = vmatprep.subr.bf16.mxu1 %v5498_v46  ;;  %s3531_s3 = smov [#allocation12]  }
 0x1bb   :  { %v4007_v45 = vrot.slane %v164_v2, %v458_v49  ;;  %v4009_v46 = vrot.slane %v164_v2, %v466_v58  ;;  %s2607_s26 = sshll.u32 %s3531_s3, 4  ;;  %s2608_s26 = int_to_ptr.vmem [resolvable:$true] %s2607_s26 }
 0x1bc   :  { %s3496_s27 = scalar_lea.vmem %s2608_s26, 512  ;;  %p3501_p11 = scmp.lt.s32.totalorder %s2608_s26, %s2608_s26 }
 0x1bd   :  { %1067 = vmatpush1.bf16.msra.mxu0 %v5499_v52  ;;  %1108 = vmatpush1.bf16.msra.mxu1 %v5500_v60  ;;  %5503 = vst [vmem:[#allocation18_spill] sm:$0xff] %v4007_v45  ;;  %5504 = vst [vmem:[#allocation19_spill] sm:$0xff] %v4009_v46  ;;  %v4011_v52 = vrot.slane %v164_v2, %v462_v48  ;;  %v4016_v48 = vrot.slane %v164_v2, %v470_v55  ;;  %p3497_p10 = scmp.ne.s32.totalorder %s2608_s26, %s3496_s27  ;;  %p3502_p12 = scmp.lt.s32.totalorder %s3496_s27, %s3496_s27 }
 0x1be   :  { %1159 = vmatprep.subr.bf16.mxu0 %v5501_v1  ;;  %1200 = vmatprep.subr.bf16.mxu1 %v5502_v53 }
 0x1bf   :  { %5505 = vst [vmem:[#allocation20_spill] sm:$0xff] %v4011_v52  ;;  %5506 = vst [vmem:[#allocation21_spill] sm:$0xff] %v4016_v48  ;;  %p3503_p13 = por %p3502_p12, %p3501_p11 }
 0x1c1   :  { %p3504_p0 = pnand %p3503_p13, %p3497_p10 }
 0x233   :  { %v830_v60 = vpop.f32.mrb[4].mxu0  ;;  %v871_v51 = vpop.f32.mrb[4].mxu1 }
 0x234   :  { %v831_v1 = vadd.f32 %v830_v60, %v4007_v45  ;;  %v872_v53 = vadd.f32 %v871_v51, %v4009_v46  ;;  %v832_v50 = vpop.f32.mrb[5].mxu0  ;;  %v873_v59 = vpop.f32.mrb[5].mxu1 }
 0x235   :  { %v833_v57 = vadd.f32 %v832_v50, %v4011_v52  ;;  %v834_v0 = vpop.f32.mrb[6].mxu0  ;;  %v875_v56 = vpop.f32.mrb[6].mxu1  ;;  %v874_v60 = vadd.f32 %v873_v59, %v4016_v48 }
 0x236   :  { %v2721_v41 = vmul.f32 -1.442695, %v831_v1  ;;  %v2723_v49 = vmul.f32 -1.442695, %v872_v53  ;;  %v835_v63 = vpop.f32.mrb[7].mxu0  ;;  %v876_v58 = vpop.f32.mrb[7].mxu1 }
 0x237   :  { %v2722_v62 = vmul.f32 -1.442695, %v833_v57  ;;  %v2724_v51 = vmul.f32 -1.442695, %v874_v60  ;;  %v912_v63 = vld [vmem:[#allocation6 + $0x10] sm:$0xff]  ;;  %v913_v0 = vld [vmem:[#allocation6 + $0x18] sm:$0xff] }
 0x238   :  { %2968 = vpow2.f32 %v2721_v41  ;;  %v914_v55 = vunpack.c.l.bf16 %v912_v63  ;;  %v916_v2 = vunpack.c.l.bf16 %v913_v0  ;;  %v915_v1 = vunpack.c.h.bf16 %v912_v63 }
 0x239   :  { %2970 = vpow2.f32 %v2723_v49 }
 0x23a   :  { %2972 = vpow2.f32 %v2722_v62 }
 0x23b   :  { %2974 = vpow2.f32 %v2724_v51 }
 0x242   :  { %v2969_v46 = vpop.eup %2968 }
 0x243   :  { %v2971_v45 = vpop.eup %2970  ;;  %v890_v56 = vadd.f32 1.0, %v2969_v46 }
 0x244   :  { %v2973_v23 = vpop.eup %2972  ;;  %v892_v50 = vadd.f32 1.0, %v2971_v45 }
 0x245   :  { %v891_v54 = vadd.f32 1.0, %v2973_v23  ;;  %v2975_v41 = vpop.eup %2974 }
 0x246   :  { %2976 = vrcp.f32 %v892_v50  ;;  %v893_v49 = vadd.f32 1.0, %v2975_v41 }
 0x247   :  { %2978 = vrcp.f32 %v891_v54 }
 0x248   :  { %2980 = vrcp.f32 %v890_v56 }
 0x249   :  { %2982 = vrcp.f32 %v893_v49 }
 0x250   :  { %v2977_v57 = vpop.eup %2976 }
 0x251   :  { %v902_v62 = vmul.f32 2.0, %v2977_v57  ;;  %v2979_v59 = vpop.eup %2978 }
 0x252   :  { %v2981_v45 = vpop.eup %2980  ;;  %v904_v56 = vmul.f32 0.0, %v2979_v59 }
 0x253   :  { %v2725_v53 = vadd.f32 -1.0, %v902_v62  ;;  %v952_v58 = vpop.f32.mrb[8].mxu0  ;;  %v993_v60 = vpop.f32.mrb[8].mxu1 }
 0x254   :  { %v1000_v23 = vadd.f32 %v952_v58, %v914_v55  ;;  %v1002_v51 = vadd.f32 %v993_v60, %v916_v2  ;;  %v954_v46 = vpop.f32.mrb[9].mxu0  ;;  %v995_v50 = vpop.f32.mrb[9].mxu1  ;;  %v917_v55 = vunpack.c.h.bf16 %v913_v0 }
 0x255   :  { %v905_v54 = vmul.f32 %v2981_v45, %v2725_v53  ;;  %v1001_v48 = vadd.f32 %v954_v46, %v915_v1  ;;  %v956_v52 = vpop.f32.mrb[10].mxu0  ;;  %v997_v22 = vpop.f32.mrb[10].mxu1 }
 0x256   :  { %v2726_v21 = vmul.f32 -1.442695, %v1000_v23  ;;  %v2728_v20 = vmul.f32 -1.442695, %v1002_v51  ;;  %v957_v19 = vpop.f32.mrb[11].mxu0  ;;  %v998_v57 = vpop.f32.mrb[11].mxu1  ;;  %v1003_v2 = vadd.f32 %v995_v50, %v917_v55 }
 0x257   :  { %v4019_v63 = vadd.f32 %v905_v54, %v904_v56  ;;  %v2727_v41 = vmul.f32 -1.442695, %v1001_v48  ;;  %v2983_v62 = vpop.eup %2982 }
 0x258   :  { %2984 = vpow2.f32 %v2726_v21  ;;  %v2729_v22 = vmul.f32 -1.442695, %v1003_v2 }
 0x259   :  { %2986 = vtanh.f32 %v4019_v63 }
 0x25a   :  { %2988 = vpow2.f32 %v2728_v20 }
 0x25b   :  { %2990 = vpow2.f32 %v2727_v41 }
 0x262   :  { %v2985_v59 = vpop.eup %2984 }
 0x263   :  { %v2987_v1 = vpop.eup %2986  ;;  %v1016_v23 = vadd.f32 1.0, %v2985_v59  ;;  %v4029_v59 = vld [vmem:[#allocation9 + $0x8] ss:$16 sps:$4 sm:$0xff]  }
 0x264   :  { %v2989_v52 = vpop.eup %2988  ;;  %v908_v53 = vmul.f32 %v2987_v1, %v2983_v62  ;;  %v4026_v62 = vld [vmem:[#allocation9] ss:$16 sps:$4 sm:$0xff]   ;;  %v4035_v1 = vld [vmem:[#allocation9 + $0x2c] ss:$16 sps:$4 sm:$0xff]  }
 0x265   :  { %v2991_v58 = vpop.eup %2990  ;;  %v1018_v19 = vadd.f32 1.0, %v2989_v52  ;;  %v4040_v52 = vld [vmem:[#allocation9 + $0x20] ss:$16 sps:$4 sm:$0xff]  }
 0x266   :  { %v1017_v60 = vadd.f32 1.0, %v2991_v58  ;;  %v909_v45 = vpack.c.bf16 %v908_v53, %v908_v53  ;;  %v4046_v53 = vld [vmem:[#allocation9 + $0x44] ss:$16 sps:$4 sm:$0xff]   ;;  %v4049_v58 = vld [vmem:[#allocation9 + $0x4c] ss:$16 sps:$4 sm:$0xff]  }
 0x267   :  { %2992 = vrcp.f32 %v1018_v19  ;;  %v4052_v19 = vld [vmem:[#allocation9 + $0x40] ss:$16 sps:$4 sm:$0xff]  }
 0x268   :  { %2994 = vpow2.f32 %v2729_v22  ;;  %910 = vst [vmem:[#allocation12] sm:$0xf] %v909_v45  ;;  %1068 = vmatprep.mubr.bf16.mxu0 %v909_v45  ;;  %1109 = vmatprep.mubr.bf16.mxu1 %v909_v45  ;;  %v4043_v22 = vld [vmem:[#allocation9 + $0x28] ss:$16 sps:$4 sm:$0xff]   ;;  %v4058_v45 = vld [vmem:[#allocation9 + $0x64] ss:$16 sps:$4 sm:$0xff]  }
 0x269   :  { %2996 = vrcp.f32 %v1017_v60  ;;  %v4055_v60 = vld [vmem:[#allocation9 + $0x48] ss:$16 sps:$4 sm:$0xff]  }
 0x26a   :  { %2998 = vrcp.f32 %v1016_v23  ;;  %v4061_v23 = vld [vmem:[#allocation9 + $0x6c] ss:$16 sps:$4 sm:$0xff]  }
 0x271   :  { %v2993_v20 = vpop.eup %2992 }
 0x272   :  { %v2995_v21 = vpop.eup %2994  ;;  %v1028_v48 = vmul.f32 2.0, %v2993_v20  ;;  %v4064_v20 = vld [vmem:[#allocation9 + $0x60] ss:$16 sps:$4 sm:$0xff]  }
 0x273   :  { %v2997_v0 = vpop.eup %2996  ;;  %v1019_v46 = vadd.f32 1.0, %v2995_v21  ;;  %v4067_v21 = vld [vmem:[#allocation9 + $0x68] ss:$16 sps:$4 sm:$0xff]  }
 0x274   :  { %v2730_v49 = vadd.f32 -1.0, %v1028_v48  ;;  %v2999_v51 = vpop.eup %2998  ;;  %v1030_v54 = vmul.f32 %v2997_v0, %v3903_v47  ;;  %v4032_v47 = vld [vmem:[#allocation9 + $0x24] ss:$16 sps:$4 sm:$0xff]   ;;  %v4073_v0 = vld [vmem:[#allocation9 + $0x8c] ss:$16 sps:$4 sm:$0xff]  }
 0x275   :  { %3000 = vrcp.f32 %v1019_v46  ;;  %v4070_v48 = vld [vmem:[#allocation9 + $0x84] ss:$16 sps:$4 sm:$0xff]  }
 0x276   :  { %v1031_v50 = vmul.f32 %v2999_v51, %v2730_v49  ;;  %v4076_v49 = vld [vmem:[#allocation9 + $0x80] ss:$16 sps:$4 sm:$0xff]   ;;  %v4079_v51 = vld [vmem:[#allocation9 + $0x88] ss:$16 sps:$4 sm:$0xff]   ;;  %v4082_v46 = vld [vmem:[#allocation9 + $0xa4] ss:$16 sps:$4 sm:$0xff]  }
 0x278   :  { %v4023_v56 = vadd.f32 %v1031_v50, %v1030_v54  ;;  %v4085_v50 = vld [vmem:[#allocation9 + $0xac] ss:$16 sps:$4 sm:$0xff]   ;;  %v4088_v54 = vld [vmem:[#allocation9 + $0xa0] ss:$16 sps:$4 sm:$0xff]  }
 0x27a   :  { %3002 = vtanh.f32 %v4023_v56 }
 0x27f   :  { %v3001_v57 = vpop.eup %3000 }
 0x284   :  { %v3003_v41 = vpop.eup %3002 }
 0x285   :  { %v1034_v55 = vmul.f32 %v3003_v41, %v3001_v57  ;;  %v5543_v57 = vld [vmem:[#allocation70_spill] sm:$0xff] }
 0x286   :  { %v4164_v41 = vld [vmem:[#allocation9 + $0x4] ss:$16 sps:$4 sm:$0xff]  }
 0x287   :  { %v1035_v2 = vpack.c.bf16 %v1034_v55, %v1034_v55  ;;  %5544 = vst [vmem:[#allocation22_spill] sm:$0xff] %v4164_v41  ;;  %v4167_v55 = vld [vmem:[#allocation9 + $0xc] ss:$16 sps:$4 sm:$0xff]  }
 0x288   :  { %5545 = vst [vmem:[#allocation23_spill] sm:$0xff] %v4167_v55 }
 0x289   :  { %1069 = vmatmul.mubr.bf16.vlgmr.msra.gmra.mrb[12].mxu0 %v1035_v2  ;;  %1110 = vmatmul.mubr.bf16.vlgmr.msra.gmra.mrb[12].mxu1 %v1035_v2 }
 0x28a   :  { %1160 = vmatpush1.bf16.msra.mxu0 %v4026_v62  ;;  %1201 = vmatpush1.bf16.msra.mxu1 %v4029_v59 }
 0x28b   :  { %1161 = vmatprep.subr.bf16.mxu0 %v4032_v47  ;;  %1202 = vmatprep.subr.bf16.mxu1 %v4035_v1 }
 0x28c   :  { %1191 = vmatprep.mubr.bf16.mxu0 %v5447_v61  ;;  %1232 = vmatprep.mubr.bf16.mxu1 %v5447_v61 }
 0x28e   :  { %1162 = vmatpush1.bf16.msra.mxu0 %v4040_v52  ;;  %1203 = vmatpush1.bf16.msra.mxu1 %v4043_v22 }
 0x28f   :  { %1163 = vmatprep.subr.bf16.mxu0 %v4046_v53  ;;  %1204 = vmatprep.subr.bf16.mxu1 %v4049_v58 }
 0x292   :  { %1164 = vmatpush1.bf16.msra.mxu0 %v4052_v19  ;;  %1205 = vmatpush1.bf16.msra.mxu1 %v4055_v60 }
 0x293   :  { %1165 = vmatprep.subr.bf16.mxu0 %v4058_v45  ;;  %1206 = vmatprep.subr.bf16.mxu1 %v4061_v23 }
 0x296   :  { %1166 = vmatpush1.bf16.msra.mxu0 %v4064_v20  ;;  %1207 = vmatpush1.bf16.msra.mxu1 %v4067_v21 }
 0x297   :  { %1167 = vmatprep.subr.bf16.mxu0 %v4070_v48  ;;  %1208 = vmatprep.subr.bf16.mxu1 %v4073_v0 }
 0x29a   :  { %1168 = vmatpush1.bf16.msra.mxu0 %v4076_v49  ;;  %1209 = vmatpush1.bf16.msra.mxu1 %v4079_v51 }
 0x29b   :  { %1169 = vmatprep.subr.bf16.mxu0 %v4082_v46  ;;  %1210 = vmatprep.subr.bf16.mxu1 %v4085_v50 }
 0x29e   :  { %1170 = vmatpush1.bf16.msra.mxu0 %v4088_v54  ;;  %1211 = vmatpush1.bf16.msra.mxu1 %v3679_v24  ;;  %v5507_v24 = vld [vmem:[#allocation34_spill] sm:$0xff] }
 0x29f   :  { %1171 = vmatprep.subr.bf16.mxu0 %v3681_v25  ;;  %1212 = vmatprep.subr.bf16.mxu1 %v3685_v26  ;;  %v5508_v25 = vld [vmem:[#allocation35_spill] sm:$0xff]  ;;  %v5509_v26 = vld [vmem:[#allocation36_spill] sm:$0xff] }
 0x2a2   :  { %1172 = vmatpush1.bf16.msra.mxu0 %v3687_v27  ;;  %1213 = vmatpush1.bf16.msra.mxu1 %v3689_v28  ;;  %v5510_v27 = vld [vmem:[#allocation37_spill] sm:$0xff]  ;;  %v5511_v28 = vld [vmem:[#allocation38_spill] sm:$0xff] }
 0x2a3   :  { %1173 = vmatprep.subr.bf16.mxu0 %v3693_v29  ;;  %1214 = vmatprep.subr.bf16.mxu1 %v3697_v30  ;;  %v5512_v29 = vld [vmem:[#allocation39_spill] sm:$0xff]  ;;  %v5513_v30 = vld [vmem:[#allocation40_spill] sm:$0xff] }
 0x2a6   :  { %1174 = vmatpush1.bf16.msra.mxu0 %v3699_v31  ;;  %1215 = vmatpush1.bf16.msra.mxu1 %v3703_v32  ;;  %v5514_v31 = vld [vmem:[#allocation41_spill] sm:$0xff]  ;;  %v5515_v32 = vld [vmem:[#allocation42_spill] sm:$0xff] }
 0x2a7   :  { %1277 = vmatprep.subr.bf16.mxu0 %v3705_v33  ;;  %1318 = vmatprep.subr.bf16.mxu1 %v3709_v34  ;;  %v5516_v33 = vld [vmem:[#allocation43_spill] sm:$0xff]  ;;  %v5517_v34 = vld [vmem:[#allocation44_spill] sm:$0xff] }
 0x2a9   :  { %1192 = vmatmul.mubr.bf16.vlgmr.msra.gmra.mrb[16].mxu0 %v1035_v2  ;;  %1233 = vmatmul.mubr.bf16.vlgmr.msra.gmra.mrb[16].mxu1 %v1035_v2 }
 0x2aa   :  { %1278 = vmatpush1.bf16.msra.mxu0 %v3711_v35  ;;  %1319 = vmatpush1.bf16.msra.mxu1 %v3713_v36  ;;  %v5518_v35 = vld [vmem:[#allocation45_spill] sm:$0xff]  ;;  %v5519_v36 = vld [vmem:[#allocation46_spill] sm:$0xff] }
 0x2ab   :  { %1279 = vmatprep.subr.bf16.mxu0 %v3715_v37  ;;  %1320 = vmatprep.subr.bf16.mxu1 %v3717_v38  ;;  %v5520_v37 = vld [vmem:[#allocation47_spill] sm:$0xff]  ;;  %v5521_v38 = vld [vmem:[#allocation48_spill] sm:$0xff] }
 0x2ae   :  { %1280 = vmatpush1.bf16.msra.mxu0 %v3723_v39  ;;  %1321 = vmatpush1.bf16.msra.mxu1 %v3725_v40  ;;  %v5522_v39 = vld [vmem:[#allocation49_spill] sm:$0xff]  ;;  %v5523_v40 = vld [vmem:[#allocation50_spill] sm:$0xff] }
 0x2af   :  { %1281 = vmatprep.subr.bf16.mxu0 %v3727_v42  ;;  %1322 = vmatprep.subr.bf16.mxu1 %v3729_v43  ;;  %v5524_v42 = vld [vmem:[#allocation51_spill] sm:$0xff]  ;;  %v5525_v43 = vld [vmem:[#allocation52_spill] sm:$0xff] }
 0x2b2   :  { %1282 = vmatpush1.bf16.msra.mxu0 %v3735_v44  ;;  %1323 = vmatpush1.bf16.msra.mxu1 %v5448_v3  ;;  %v5526_v44 = vld [vmem:[#allocation53_spill] sm:$0xff]  ;;  %v5527_v3 = vld [vmem:[#allocation54_spill] sm:$0xff] }
 0x2b3   :  { %1283 = vmatprep.subr.bf16.mxu0 %v5449_v4  ;;  %1324 = vmatprep.subr.bf16.mxu1 %v5450_v5  ;;  %v5528_v4 = vld [vmem:[#allocation55_spill] sm:$0xff]  ;;  %v5529_v5 = vld [vmem:[#allocation56_spill] sm:$0xff] }
 0x2b6   :  { %1284 = vmatpush1.bf16.msra.mxu0 %v5451_v6  ;;  %1325 = vmatpush1.bf16.msra.mxu1 %v5452_v7  ;;  %v5530_v6 = vld [vmem:[#allocation57_spill] sm:$0xff]  ;;  %v5531_v7 = vld [vmem:[#allocation58_spill] sm:$0xff] }
 0x2b7   :  { %1285 = vmatprep.subr.bf16.mxu0 %v5453_v8  ;;  %1326 = vmatprep.subr.bf16.mxu1 %v5454_v9  ;;  %v5532_v8 = vld [vmem:[#allocation59_spill] sm:$0xff]  ;;  %v5533_v9 = vld [vmem:[#allocation60_spill] sm:$0xff] }
 0x2ba   :  { %1286 = vmatpush1.bf16.msra.mxu0 %v5455_v10  ;;  %1327 = vmatpush1.bf16.msra.mxu1 %v5456_v11  ;;  %v5534_v10 = vld [vmem:[#allocation61_spill] sm:$0xff]  ;;  %v5535_v11 = vld [vmem:[#allocation62_spill] sm:$0xff] }
 0x2bb   :  { %1287 = vmatprep.subr.bf16.mxu0 %v5457_v12  ;;  %1328 = vmatprep.subr.bf16.mxu1 %v5458_v13  ;;  %v5536_v12 = vld [vmem:[#allocation63_spill] sm:$0xff]  ;;  %v5537_v13 = vld [vmem:[#allocation64_spill] sm:$0xff] }
 0x2be   :  { %1288 = vmatpush1.bf16.msra.mxu0 %v5459_v14  ;;  %1329 = vmatpush1.bf16.msra.mxu1 %v5460_v15  ;;  %v5538_v14 = vld [vmem:[#allocation65_spill] sm:$0xff]  ;;  %v5539_v15 = vld [vmem:[#allocation66_spill] sm:$0xff] }
 0x2bf   :  { %1289 = vmatprep.subr.bf16.mxu0 %v5461_v16  ;;  %1330 = vmatprep.subr.bf16.mxu1 %v5462_v17  ;;  %v5540_v16 = vld [vmem:[#allocation67_spill] sm:$0xff]  ;;  %v5541_v17 = vld [vmem:[#allocation68_spill] sm:$0xff] }
 0x2c2   :  { %1290 = vmatpush1.bf16.msra.mxu0 %v5463_v18  ;;  %1331 = vmatpush1.bf16.msra.mxu1 %v5507_v24  ;;  %v5542_v18 = vld [vmem:[#allocation69_spill] sm:$0xff] }
 0x2c3   :  { %1291 = vmatprep.subr.bf16.mxu0 %v5508_v25  ;;  %1332 = vmatprep.subr.bf16.mxu1 %v5509_v26  ;;  %v5546_v25 = vld [vmem:[#allocation18_spill] sm:$0xff] }
 0x2c6   :  { %1292 = vmatpush1.bf16.msra.mxu0 %v5510_v27  ;;  %1333 = vmatpush1.bf16.msra.mxu1 %v5511_v28  ;;  %v5547_v27 = vld [vmem:[#allocation19_spill] sm:$0xff] }
 0x2c7   :  { %1293 = vmatprep.subr.bf16.mxu0 %v5512_v29  ;;  %1334 = vmatprep.subr.bf16.mxu1 %v5513_v30 }
 0x2ca   :  { %1294 = vmatpush1.bf16.msra.mxu0 %v5514_v31  ;;  %1335 = vmatpush1.bf16.msra.mxu1 %v5515_v32  ;;  %v5548_v31 = vld [vmem:[#allocation20_spill] sm:$0xff] }
 0x2cb   :  { %1295 = vmatprep.subr.bf16.mxu0 %v5516_v33  ;;  %1336 = vmatprep.subr.bf16.mxu1 %v5517_v34 }
 0x2ce   :  { %1296 = vmatpush1.bf16.msra.mxu0 %v5518_v35  ;;  %1337 = vmatpush1.bf16.msra.mxu1 %v5519_v36 }
 0x2cf   :  { %1297 = vmatprep.subr.bf16.mxu0 %v5520_v37  ;;  %1338 = vmatprep.subr.bf16.mxu1 %v5521_v38 }
 0x2d2   :  { %1298 = vmatpush1.bf16.msra.mxu0 %v5522_v39  ;;  %1339 = vmatpush1.bf16.msra.mxu1 %v5523_v40  ;;  %v5549_v40 = vld [vmem:[#allocation21_spill] sm:$0xff] }
 0x2d3   :  { %1299 = vmatprep.subr.bf16.mxu0 %v5524_v42  ;;  %1340 = vmatprep.subr.bf16.mxu1 %v5525_v43 }
 0x2d6   :  { %1300 = vmatpush1.bf16.msra.mxu0 %v5526_v44  ;;  %1341 = vmatpush1.bf16.msra.mxu1 %v5527_v3 }
 0x2d7   :  { %1301 = vmatprep.subr.bf16.mxu0 %v5528_v4  ;;  %1342 = vmatprep.subr.bf16.mxu1 %v5529_v5 }
 0x2da   :  { %1302 = vmatpush1.bf16.msra.mxu0 %v5530_v6  ;;  %1343 = vmatpush1.bf16.msra.mxu1 %v5531_v7 }
 0x2db   :  { %1303 = vmatprep.subr.bf16.mxu0 %v5532_v8  ;;  %1344 = vmatprep.subr.bf16.mxu1 %v5533_v9  ;;  %v1153_v8 = vld [vmem:[#allocation6 + $0x20] sm:$0xff]  ;;  %v1154_v9 = vld [vmem:[#allocation6 + $0x28] sm:$0xff] }
 0x2de   :  { %1304 = vmatpush1.bf16.msra.mxu0 %v5534_v10  ;;  %1345 = vmatpush1.bf16.msra.mxu1 %v5535_v11  ;;  %v1155_v11 = vunpack.c.l.bf16 %v1153_v8 }
 0x2df   :  { %1305 = vmatprep.subr.bf16.mxu0 %v5536_v12  ;;  %1346 = vmatprep.subr.bf16.mxu1 %v5537_v13  ;;  %v1157_v12 = vunpack.c.l.bf16 %v1154_v9 }
 0x2e2   :  { %1306 = vmatpush1.bf16.msra.mxu0 %v5538_v14  ;;  %1347 = vmatpush1.bf16.msra.mxu1 %v5539_v15  ;;  %v1156_v14 = vunpack.c.h.bf16 %v1153_v8 }
 0x2e3   :  { %1307 = vmatprep.subr.bf16.mxu0 %v5540_v16  ;;  %1348 = vmatprep.subr.bf16.mxu1 %v5541_v17 }
 0x2e6   :  { %1308 = vmatpush1.bf16.msra.mxu0 %v5542_v18  ;;  %1349 = vmatpush1.bf16.msra.mxu1 %v5543_v57 }
 0x2e7   :  { %1400 = vmatprep.subr.bf16.mxu0 %v4164_v41  ;;  %1441 = vmatprep.subr.bf16.mxu1 %v4167_v55 }
 0x35c   :  { %v1070_v2 = vpop.f32.mrb[12].mxu0  ;;  %v1111_v24 = vpop.f32.mrb[12].mxu1 }
 0x35d   :  { %v1071_v26 = vadd.f32 %v1070_v2, %v5546_v25  ;;  %v1112_v28 = vadd.f32 %v1111_v24, %v5547_v27  ;;  %v1072_v29 = vpop.f32.mrb[13].mxu0  ;;  %v1113_v30 = vpop.f32.mrb[13].mxu1 }
 0x35e   :  { %v1073_v32 = vadd.f32 %v1072_v29, %v5548_v31  ;;  %v1074_v33 = vpop.f32.mrb[14].mxu0  ;;  %v1115_v34 = vpop.f32.mrb[14].mxu1  ;;  %v1114_v42 = vadd.f32 %v1113_v30, %v5549_v40 }
 0x35f   :  { %v2731_v35 = vmul.f32 -1.442695, %v1071_v26  ;;  %v2733_v36 = vmul.f32 -1.442695, %v1112_v28  ;;  %v1075_v37 = vpop.f32.mrb[15].mxu0  ;;  %v1116_v38 = vpop.f32.mrb[15].mxu1 }
 0x360   :  { %v2732_v39 = vmul.f32 -1.442695, %v1073_v32  ;;  %v2734_v6 = vmul.f32 -1.442695, %v1114_v42 }
 0x361   :  { %3004 = vpow2.f32 %v2731_v35 }
 0x362   :  { %3006 = vpow2.f32 %v2733_v36 }
 0x363   :  { %3008 = vpow2.f32 %v2732_v39 }
 0x36b   :  { %v3005_v43 = vpop.eup %3004 }
 0x36c   :  { %v3007_v44 = vpop.eup %3006  ;;  %v1130_v7 = vadd.f32 1.0, %v3005_v43 }
 0x36d   :  { %v3009_v3 = vpop.eup %3008  ;;  %v1132_v4 = vadd.f32 1.0, %v3007_v44 }
 0x36e   :  { %v1131_v5 = vadd.f32 1.0, %v3009_v3  ;;  %v1158_v3 = vunpack.c.h.bf16 %v1154_v9 }
 0x36f   :  { %3010 = vrcp.f32 %v1132_v4 }
 0x370   :  { %3012 = vrcp.f32 %v1131_v5 }
 0x371   :  { %3014 = vpow2.f32 %v2734_v6 }
 0x372   :  { %3016 = vrcp.f32 %v1130_v7 }
 0x379   :  { %v3011_v10 = vpop.eup %3010 }
 0x37a   :  { %v1142_v13 = vmul.f32 2.0, %v3011_v10  ;;  %v3013_v15 = vpop.eup %3012 }
 0x37b   :  { %v3015_v16 = vpop.eup %3014  ;;  %v1144_v32 = vmul.f32 %v3013_v15, %v4019_v63 }
 0x37c   :  { %v2735_v17 = vadd.f32 -1.0, %v1142_v13  ;;  %v1193_v18 = vpop.f32.mrb[16].mxu0  ;;  %v1234_v57 = vpop.f32.mrb[16].mxu1  ;;  %v1133_v42 = vadd.f32 1.0, %v3015_v16 }
 0x37d   :  { %v3017_v2 = vpop.eup %3016  ;;  %v1241_v24 = vadd.f32 %v1193_v18, %v1155_v11  ;;  %v1243_v26 = vadd.f32 %v1234_v57, %v1157_v12  ;;  %v1195_v28 = vpop.f32.mrb[17].mxu0 }
 0x37e   :  { %v1236_v29 = vpop.f32.mrb[17].mxu1  ;;  %v1145_v30 = vmul.f32 %v3017_v2, %v2735_v17  ;;  %v1242_v33 = vadd.f32 %v1195_v28, %v1156_v14  ;;  %v1197_v34 = vpop.f32.mrb[18].mxu0 }
 0x37f   :  { %v1238_v35 = vpop.f32.mrb[18].mxu1  ;;  %v2736_v36 = vmul.f32 -1.442695, %v1241_v24  ;;  %v2738_v37 = vmul.f32 -1.442695, %v1243_v26  ;;  %v1198_v38 = vpop.f32.mrb[19].mxu0  ;;  %v1244_v4 = vadd.f32 %v1236_v29, %v1158_v3 }
 0x380   :  { %v1239_v39 = vpop.f32.mrb[19].mxu1  ;;  %v2737_v43 = vmul.f32 -1.442695, %v1242_v33  ;;  %v4175_v44 = vadd.f32 %v1145_v30, %v1144_v32  ;;  %v4208_v35 = vld [vmem:[#allocation9 + $0xc4] ss:$16 sps:$4 sm:$0xff]  }
 0x381   :  { %3018 = vpow2.f32 %v2736_v36  ;;  %v2739_v6 = vmul.f32 -1.442695, %v1244_v4  ;;  %v4211_v36 = vld [vmem:[#allocation9 + $0xcc] ss:$16 sps:$4 sm:$0xff]   ;;  %v4217_v38 = vld [vmem:[#allocation9 + $0xc8] ss:$16 sps:$4 sm:$0xff]  }
 0x382   :  { %3020 = vpow2.f32 %v2738_v37  ;;  %v4214_v37 = vld [vmem:[#allocation9 + $0xc0] ss:$16 sps:$4 sm:$0xff]   ;;  %v4220_v39 = vld [vmem:[#allocation9 + $0xe4] ss:$16 sps:$4 sm:$0xff]   ;;  %v4229_v3 = vld [vmem:[#allocation9 + $0xe8] ss:$16 sps:$4 sm:$0xff]  }
 0x383   :  { %3022 = vpow2.f32 %v2737_v43  ;;  %v4226_v43 = vld [vmem:[#allocation9 + $0xe0] ss:$16 sps:$4 sm:$0xff]   ;;  %v4232_v4 = vld [vmem:[#allocation11 + $0x4] ss:$16 sps:$4 sm:$0xff]  }
 0x384   :  { %3024 = vrcp.f32 %v1133_v42  ;;  %v4223_v42 = vld [vmem:[#allocation9 + $0xec] ss:$16 sps:$4 sm:$0xff]  }
 0x385   :  { %3026 = vtanh.f32 %v4175_v44 }
 0x38b   :  { %v3019_v63 = vpop.eup %3018 }
 0x38c   :  { %v3021_v5 = vpop.eup %3020  ;;  %v1257_v13 = vadd.f32 1.0, %v3019_v63  ;;  %v4235_v63 = vld [vmem:[#allocation11 + $0xc] ss:$16 sps:$4 sm:$0xff]  }
 0x38d   :  { %v3023_v7 = vpop.eup %3022  ;;  %v1259_v8 = vadd.f32 1.0, %v3021_v5  ;;  %v4238_v5 = vld [vmem:[#allocation11] ss:$16 sps:$4 sm:$0xff]  }
 0x38e   :  { %v3025_v10 = vpop.eup %3024  ;;  %v1258_v11 = vadd.f32 1.0, %v3023_v7  ;;  %v4244_v7 = vld [vmem:[#allocation11 + $0x24] ss:$16 sps:$4 sm:$0xff]  }
 0x38f   :  { %v3027_v12 = vpop.eup %3026  ;;  %3028 = vrcp.f32 %v1259_v8  ;;  %v4247_v8 = vld [vmem:[#allocation11 + $0x2c] ss:$16 sps:$4 sm:$0xff]  }
 0x390   :  { %3030 = vpow2.f32 %v2739_v6  ;;  %v1148_v14 = vmul.f32 %v3027_v12, %v3025_v10  ;;  %v4241_v6 = vld [vmem:[#allocation11 + $0x8] ss:$16 sps:$4 sm:$0xff]   ;;  %5550 = vst [vmem:[#allocation24_spill] sm:$0xff] %v4247_v8  ;;  %v4250_v10 = vld [vmem:[#allocation11 + $0x20] ss:$16 sps:$4 sm:$0xff]  }
 0x391   :  { %3032 = vrcp.f32 %v1258_v11  ;;  %5551 = vst [vmem:[#allocation25_spill] sm:$0xff] %v4250_v10  ;;  %v4253_v11 = vld [vmem:[#allocation11 + $0x28] ss:$16 sps:$4 sm:$0xff]   ;;  %v4256_v12 = vld [vmem:[#allocation11 + $0x44] ss:$16 sps:$4 sm:$0xff]  }
 0x392   :  { %v1149_v15 = vpack.c.bf16 %v1148_v14, %v1148_v14  ;;  %3034 = vrcp.f32 %v1257_v13  ;;  %5552 = vst [vmem:[#allocation26_spill] sm:$0xff] %v4253_v11  ;;  %5553 = vst [vmem:[#allocation27_spill] sm:$0xff] %v4256_v12  ;;  %v4259_v13 = vld [vmem:[#allocation11 + $0x4c] ss:$16 sps:$4 sm:$0xff]   ;;  %v4262_v14 = vld [vmem:[#allocation11 + $0x40] ss:$16 sps:$4 sm:$0xff]  }
 0x393   :  { %5554 = vst [vmem:[#allocation28_spill] sm:$0xff] %v4259_v13  ;;  %5555 = vst [vmem:[#allocation29_spill] sm:$0xff] %v4262_v14 }
 0x394   :  { %1151 = vst [vmem:[#allocation12 + $0x4] sm:$0xf] %v1149_v15  ;;  %1309 = vmatprep.mubr.bf16.mxu0 %v1149_v15  ;;  %1350 = vmatprep.mubr.bf16.mxu1 %v1149_v15  ;;  %v4265_v15 = vld [vmem:[#allocation11 + $0x48] ss:$16 sps:$4 sm:$0xff]  }
 0x395   :  { %5556 = vst [vmem:[#allocation30_spill] sm:$0xff] %v4265_v15 }
 0x399   :  { %v3029_v9 = vpop.eup %3028 }
 0x39a   :  { %v3031_v16 = vpop.eup %3030  ;;  %v1269_v17 = vmul.f32 2.0, %v3029_v9  ;;  %v4268_v9 = vld [vmem:[#allocation11 + $0x64] ss:$16 sps:$4 sm:$0xff]  }
 0x39b   :  { %v3033_v18 = vpop.eup %3032  ;;  %v1260_v24 = vadd.f32 1.0, %v3031_v16  ;;  %5557 = vst [vmem:[#allocation31_spill] sm:$0xff] %v4268_v9  ;;  %v4271_v16 = vld [vmem:[#allocation11 + $0x6c] ss:$16 sps:$4 sm:$0xff]  }
 0x39c   :  { %v2740_v57 = vadd.f32 -1.0, %v1269_v17  ;;  %v3035_v2 = vpop.eup %3034  ;;  %v1271_v28 = vmul.f32 %v3033_v18, %v4023_v56  ;;  %v4205_v56 = vld [vmem:[#allocation9 + $0xa8] ss:$16 sps:$4 sm:$0xff]   ;;  %5558 = vst [vmem:[#allocation32_spill] sm:$0xff] %v4271_v16  ;;  %v4274_v17 = vld [vmem:[#allocation11 + $0x60] ss:$16 sps:$4 sm:$0xff]  }
 0x39d   :  { %3036 = vrcp.f32 %v1260_v24  ;;  %5559 = vst [vmem:[#allocation33_spill] sm:$0xff] %v4274_v17  ;;  %v4277_v18 = vld [vmem:[#allocation11 + $0x68] ss:$16 sps:$4 sm:$0xff]   ;;  %v4286_v24 = vld [vmem:[#allocation11 + $0x80] ss:$16 sps:$4 sm:$0xff]  }
 0x39e   :  { %v1272_v26 = vmul.f32 %v3035_v2, %v2740_v57  ;;  %5560 = vst [vmem:[#allocation16_spill] sm:$0xff] %v4277_v18  ;;  %v4280_v57 = vld [vmem:[#allocation11 + $0x84] ss:$16 sps:$4 sm:$0xff]   ;;  %v4283_v2 = vld [vmem:[#allocation11 + $0x8c] ss:$16 sps:$4 sm:$0xff]   ;;  %5563 = vst [vmem:[#allocation35_spill] sm:$0xff] %v4286_v24 }
 0x39f   :  { %5561 = vst [vmem:[#allocation17_spill] sm:$0xff] %v4280_v57  ;;  %5562 = vst [vmem:[#allocation34_spill] sm:$0xff] %v4283_v2 }
 0x3a0   :  { %v4179_v29 = vadd.f32 %v1272_v26, %v1271_v28  ;;  %v4289_v26 = vld [vmem:[#allocation11 + $0x88] ss:$16 sps:$4 sm:$0xff]   ;;  %v4292_v28 = vld [vmem:[#allocation11 + $0xa4] ss:$16 sps:$4 sm:$0xff]  }
 0x3a1   :  { %5564 = vst [vmem:[#allocation36_spill] sm:$0xff] %v4289_v26  ;;  %5565 = vst [vmem:[#allocation37_spill] sm:$0xff] %v4292_v28 }
 0x3a2   :  { %3038 = vtanh.f32 %v4179_v29 }
 0x3a7   :  { %v3037_v30 = vpop.eup %3036 }
 0x3ac   :  { %v3039_v32 = vpop.eup %3038 }
 0x3ad   :  { %v1275_v33 = vmul.f32 %v3039_v32, %v3037_v30  ;;  %v4295_v30 = vld [vmem:[#allocation11 + $0xac] ss:$16 sps:$4 sm:$0xff]   ;;  %v4298_v32 = vld [vmem:[#allocation11 + $0xa0] ss:$16 sps:$4 sm:$0xff]  }
 0x3ae   :  { %5566 = vst [vmem:[#allocation38_spill] sm:$0xff] %v4295_v30  ;;  %5567 = vst [vmem:[#allocation39_spill] sm:$0xff] %v4298_v32 }
 0x3af   :  { %v1276_v34 = vpack.c.bf16 %v1275_v33, %v1275_v33  ;;  %v4301_v33 = vld [vmem:[#allocation11 + $0xa8] ss:$16 sps:$4 sm:$0xff]  }
 0x3b0   :  { %5568 = vst [vmem:[#allocation40_spill] sm:$0xff] %v4301_v33 }
 0x3b1   :  { %1310 = vmatmul.mubr.bf16.vlgmr.msra.gmra.mrb[20].mxu0 %v1276_v34  ;;  %1351 = vmatmul.mubr.bf16.vlgmr.msra.gmra.mrb[20].mxu1 %v1276_v34 }
 0x3b2   :  { %1401 = vmatpush1.bf16.msra.mxu0 %v4026_v62  ;;  %1442 = vmatpush1.bf16.msra.mxu1 %v4029_v59 }
 0x3b3   :  { %1402 = vmatprep.subr.bf16.mxu0 %v4032_v47  ;;  %1443 = vmatprep.subr.bf16.mxu1 %v4035_v1 }
 0x3b4   :  { %1432 = vmatprep.mubr.bf16.mxu0 %v5447_v61  ;;  %1473 = vmatprep.mubr.bf16.mxu1 %v5447_v61 }
 0x3b6   :  { %1403 = vmatpush1.bf16.msra.mxu0 %v4040_v52  ;;  %1444 = vmatpush1.bf16.msra.mxu1 %v4043_v22 }
 0x3b7   :  { %1404 = vmatprep.subr.bf16.mxu0 %v4046_v53  ;;  %1445 = vmatprep.subr.bf16.mxu1 %v4049_v58 }
 0x3ba   :  { %1405 = vmatpush1.bf16.msra.mxu0 %v4052_v19  ;;  %1446 = vmatpush1.bf16.msra.mxu1 %v4055_v60 }
 0x3bb   :  { %1406 = vmatprep.subr.bf16.mxu0 %v4058_v45  ;;  %1447 = vmatprep.subr.bf16.mxu1 %v4061_v23 }
 0x3be   :  { %1407 = vmatpush1.bf16.msra.mxu0 %v4064_v20  ;;  %1448 = vmatpush1.bf16.msra.mxu1 %v4067_v21 }
 0x3bf   :  { %1408 = vmatprep.subr.bf16.mxu0 %v4070_v48  ;;  %1449 = vmatprep.subr.bf16.mxu1 %v4073_v0 }
 0x3c2   :  { %1409 = vmatpush1.bf16.msra.mxu0 %v4076_v49  ;;  %1450 = vmatpush1.bf16.msra.mxu1 %v4079_v51 }
 0x3c3   :  { %1410 = vmatprep.subr.bf16.mxu0 %v4082_v46  ;;  %1451 = vmatprep.subr.bf16.mxu1 %v4085_v50 }
 0x3c6   :  { %1411 = vmatpush1.bf16.msra.mxu0 %v4088_v54  ;;  %1452 = vmatpush1.bf16.msra.mxu1 %v4205_v56 }
 0x3c7   :  { %1412 = vmatprep.subr.bf16.mxu0 %v4208_v35  ;;  %1453 = vmatprep.subr.bf16.mxu1 %v4211_v36 }
 0x3ca   :  { %1413 = vmatpush1.bf16.msra.mxu0 %v4214_v37  ;;  %1454 = vmatpush1.bf16.msra.mxu1 %v4217_v38 }
 0x3cb   :  { %1414 = vmatprep.subr.bf16.mxu0 %v4220_v39  ;;  %1455 = vmatprep.subr.bf16.mxu1 %v4223_v42 }
 0x3ce   :  { %1415 = vmatpush1.bf16.msra.mxu0 %v4226_v43  ;;  %1456 = vmatpush1.bf16.msra.mxu1 %v4229_v3 }
 0x3cf   :  { %1518 = vmatprep.subr.bf16.mxu0 %v4232_v4  ;;  %1559 = vmatprep.subr.bf16.mxu1 %v4235_v63 }
 0x3d1   :  { %1433 = vmatmul.mubr.bf16.vlgmr.msra.gmra.mrb[24].mxu0 %v1276_v34  ;;  %1474 = vmatmul.mubr.bf16.vlgmr.msra.gmra.mrb[24].mxu1 %v1276_v34  ;;  %v4304_v34 = vld [vmem:[#allocation11 + $0xc4] ss:$16 sps:$4 sm:$0xff]  }
 0x3d2   :  { %1519 = vmatpush1.bf16.msra.mxu0 %v4238_v5  ;;  %1560 = vmatpush1.bf16.msra.mxu1 %v4241_v6  ;;  %5569 = vst [vmem:[#allocation41_spill] sm:$0xff] %v4304_v34 }
 0x3d3   :  { %1520 = vmatprep.subr.bf16.mxu0 %v4244_v7  ;;  %1561 = vmatprep.subr.bf16.mxu1 %v4247_v8 }
 0x3d6   :  { %1521 = vmatpush1.bf16.msra.mxu0 %v4250_v10  ;;  %1562 = vmatpush1.bf16.msra.mxu1 %v4253_v11 }
 0x3d7   :  { %1522 = vmatprep.subr.bf16.mxu0 %v4256_v12  ;;  %1563 = vmatprep.subr.bf16.mxu1 %v4259_v13 }
 0x3da   :  { %1523 = vmatpush1.bf16.msra.mxu0 %v4262_v14  ;;  %1564 = vmatpush1.bf16.msra.mxu1 %v4265_v15 }
 0x3db   :  { %1524 = vmatprep.subr.bf16.mxu0 %v4268_v9  ;;  %1565 = vmatprep.subr.bf16.mxu1 %v4271_v16 }
 0x3de   :  { %1525 = vmatpush1.bf16.msra.mxu0 %v4274_v17  ;;  %1566 = vmatpush1.bf16.msra.mxu1 %v4277_v18 }
 0x3df   :  { %1526 = vmatprep.subr.bf16.mxu0 %v4280_v57  ;;  %1567 = vmatprep.subr.bf16.mxu1 %v4283_v2 }
 0x3e2   :  { %1527 = vmatpush1.bf16.msra.mxu0 %v4286_v24  ;;  %1568 = vmatpush1.bf16.msra.mxu1 %v4289_v26  ;;  %v4307_v26 = vld [vmem:[#allocation11 + $0xcc] ss:$16 sps:$4 sm:$0xff]  }
 0x3e3   :  { %1528 = vmatprep.subr.bf16.mxu0 %v4292_v28  ;;  %1569 = vmatprep.subr.bf16.mxu1 %v4295_v30  ;;  %5570 = vst [vmem:[#allocation42_spill] sm:$0xff] %v4307_v26  ;;  %v4310_v28 = vld [vmem:[#allocation11 + $0xc0] ss:$16 sps:$4 sm:$0xff]   ;;  %v4313_v30 = vld [vmem:[#allocation11 + $0xc8] ss:$16 sps:$4 sm:$0xff]  }
 0x3e4   :  { %5571 = vst [vmem:[#allocation43_spill] sm:$0xff] %v4310_v28  ;;  %5572 = vst [vmem:[#allocation44_spill] sm:$0xff] %v4313_v30 }
 0x3e6   :  { %1529 = vmatpush1.bf16.msra.mxu0 %v4298_v32  ;;  %1570 = vmatpush1.bf16.msra.mxu1 %v4301_v33  ;;  %v4316_v32 = vld [vmem:[#allocation11 + $0xe4] ss:$16 sps:$4 sm:$0xff]   ;;  %v4319_v33 = vld [vmem:[#allocation11 + $0xec] ss:$16 sps:$4 sm:$0xff]  }
 0x3e7   :  { %1530 = vmatprep.subr.bf16.mxu0 %v4304_v34  ;;  %1571 = vmatprep.subr.bf16.mxu1 %v4307_v26  ;;  %5573 = vst [vmem:[#allocation45_spill] sm:$0xff] %v4316_v32  ;;  %5574 = vst [vmem:[#allocation46_spill] sm:$0xff] %v4319_v33  ;;  %v4322_v34 = vld [vmem:[#allocation11 + $0xe0] ss:$16 sps:$4 sm:$0xff]   ;;  %v4325_v26 = vld [vmem:[#allocation11 + $0xe8] ss:$16 sps:$4 sm:$0xff]  }
 0x3e8   :  { %5575 = vst [vmem:[#allocation47_spill] sm:$0xff] %v4322_v34  ;;  %5576 = vst [vmem:[#allocation48_spill] sm:$0xff] %v4325_v26 }
 0x3ea   :  { %1531 = vmatpush1.bf16.msra.mxu0 %v4310_v28  ;;  %1572 = vmatpush1.bf16.msra.mxu1 %v4313_v30  ;;  %v4328_v28 = vld [vmem:[#allocation11 + $0x104] ss:$16 sps:$4 sm:$0xff]   ;;  %v4331_v30 = vld [vmem:[#allocation11 + $0x10c] ss:$16 sps:$4 sm:$0xff]  }
 0x3eb   :  { %1532 = vmatprep.subr.bf16.mxu0 %v4316_v32  ;;  %1573 = vmatprep.subr.bf16.mxu1 %v4319_v33  ;;  %5577 = vst [vmem:[#allocation49_spill] sm:$0xff] %v4328_v28  ;;  %5578 = vst [vmem:[#allocation50_spill] sm:$0xff] %v4331_v30  ;;  %v4334_v32 = vld [vmem:[#allocation11 + $0x100] ss:$16 sps:$4 sm:$0xff]   ;;  %v4337_v33 = vld [vmem:[#allocation11 + $0x108] ss:$16 sps:$4 sm:$0xff]  }
 0x3ec   :  { %5579 = vst [vmem:[#allocation51_spill] sm:$0xff] %v4334_v32  ;;  %5580 = vst [vmem:[#allocation52_spill] sm:$0xff] %v4337_v33 }
 0x3ee   :  { %1533 = vmatpush1.bf16.msra.mxu0 %v4322_v34  ;;  %1574 = vmatpush1.bf16.msra.mxu1 %v4325_v26  ;;  %v4340_v34 = vld [vmem:[#allocation11 + $0x124] ss:$16 sps:$4 sm:$0xff]   ;;  %v4343_v26 = vld [vmem:[#allocation11 + $0x12c] ss:$16 sps:$4 sm:$0xff]  }
 0x3ef   :  { %1534 = vmatprep.subr.bf16.mxu0 %v4328_v28  ;;  %1575 = vmatprep.subr.bf16.mxu1 %v4331_v30  ;;  %5581 = vst [vmem:[#allocation53_spill] sm:$0xff] %v4340_v34  ;;  %5582 = vst [vmem:[#allocation54_spill] sm:$0xff] %v4343_v26  ;;  %v4346_v28 = vld [vmem:[#allocation11 + $0x120] ss:$16 sps:$4 sm:$0xff]   ;;  %v4349_v30 = vld [vmem:[#allocation11 + $0x128] ss:$16 sps:$4 sm:$0xff]  }
 0x3f0   :  { %5583 = vst [vmem:[#allocation55_spill] sm:$0xff] %v4346_v28  ;;  %5584 = vst [vmem:[#allocation56_spill] sm:$0xff] %v4349_v30 }
 0x3f2   :  { %1535 = vmatpush1.bf16.msra.mxu0 %v4334_v32  ;;  %1576 = vmatpush1.bf16.msra.mxu1 %v4337_v33  ;;  %v4352_v32 = vld [vmem:[#allocation11 + $0x144] ss:$16 sps:$4 sm:$0xff]   ;;  %v4355_v33 = vld [vmem:[#allocation11 + $0x14c] ss:$16 sps:$4 sm:$0xff]  }
 0x3f3   :  { %1536 = vmatprep.subr.bf16.mxu0 %v4340_v34  ;;  %1577 = vmatprep.subr.bf16.mxu1 %v4343_v26  ;;  %5585 = vst [vmem:[#allocation57_spill] sm:$0xff] %v4352_v32  ;;  %5586 = vst [vmem:[#allocation58_spill] sm:$0xff] %v4355_v33  ;;  %v4358_v34 = vld [vmem:[#allocation11 + $0x140] ss:$16 sps:$4 sm:$0xff]   ;;  %v4361_v26 = vld [vmem:[#allocation11 + $0x148] ss:$16 sps:$4 sm:$0xff]  }
 0x3f4   :  { %5587 = vst [vmem:[#allocation59_spill] sm:$0xff] %v4358_v34  ;;  %5588 = vst [vmem:[#allocation60_spill] sm:$0xff] %v4361_v26 }
 0x3f6   :  { %1537 = vmatpush1.bf16.msra.mxu0 %v4346_v28  ;;  %1578 = vmatpush1.bf16.msra.mxu1 %v4349_v30  ;;  %v4364_v28 = vld [vmem:[#allocation11 + $0x164] ss:$16 sps:$4 sm:$0xff]   ;;  %v4367_v30 = vld [vmem:[#allocation11 + $0x16c] ss:$16 sps:$4 sm:$0xff]  }
 0x3f7   :  { %1538 = vmatprep.subr.bf16.mxu0 %v4352_v32  ;;  %1579 = vmatprep.subr.bf16.mxu1 %v4355_v33  ;;  %5589 = vst [vmem:[#allocation61_spill] sm:$0xff] %v4364_v28  ;;  %5590 = vst [vmem:[#allocation62_spill] sm:$0xff] %v4367_v30  ;;  %v4370_v32 = vld [vmem:[#allocation11 + $0x160] ss:$16 sps:$4 sm:$0xff]   ;;  %v4373_v33 = vld [vmem:[#allocation11 + $0x168] ss:$16 sps:$4 sm:$0xff]  }
 0x3f8   :  { %5591 = vst [vmem:[#allocation63_spill] sm:$0xff] %v4370_v32  ;;  %5592 = vst [vmem:[#allocation64_spill] sm:$0xff] %v4373_v33 }
 0x3fa   :  { %1539 = vmatpush1.bf16.msra.mxu0 %v4358_v34  ;;  %1580 = vmatpush1.bf16.msra.mxu1 %v4361_v26  ;;  %v4376_v34 = vld [vmem:[#allocation11 + $0x184] ss:$16 sps:$4 sm:$0xff]   ;;  %v4379_v26 = vld [vmem:[#allocation11 + $0x18c] ss:$16 sps:$4 sm:$0xff]  }
 0x3fb   :  { %1540 = vmatprep.subr.bf16.mxu0 %v4364_v28  ;;  %1581 = vmatprep.subr.bf16.mxu1 %v4367_v30  ;;  %5593 = vst [vmem:[#allocation65_spill] sm:$0xff] %v4376_v34  ;;  %5594 = vst [vmem:[#allocation66_spill] sm:$0xff] %v4379_v26  ;;  %v4382_v28 = vld [vmem:[#allocation11 + $0x180] ss:$16 sps:$4 sm:$0xff]   ;;  %v4385_v30 = vld [vmem:[#allocation11 + $0x188] ss:$16 sps:$4 sm:$0xff]  }
 0x3fc   :  { %5595 = vst [vmem:[#allocation67_spill] sm:$0xff] %v4382_v28  ;;  %5596 = vst [vmem:[#allocation68_spill] sm:$0xff] %v4385_v30 }
 0x3fe   :  { %1541 = vmatpush1.bf16.msra.mxu0 %v4370_v32  ;;  %1582 = vmatpush1.bf16.msra.mxu1 %v4373_v33  ;;  %v4388_v32 = vld [vmem:[#allocation11 + $0x1a4] ss:$16 sps:$4 sm:$0xff]   ;;  %v4391_v33 = vld [vmem:[#allocation11 + $0x1ac] ss:$16 sps:$4 sm:$0xff]  }
 0x3ff   :  { %1542 = vmatprep.subr.bf16.mxu0 %v4376_v34  ;;  %1583 = vmatprep.subr.bf16.mxu1 %v4379_v26  ;;  %5597 = vst [vmem:[#allocation69_spill] sm:$0xff] %v4388_v32  ;;  %5598 = vst [vmem:[#allocation70_spill] sm:$0xff] %v4391_v33  ;;  %v4394_v34 = vld [vmem:[#allocation11 + $0x1a0] ss:$16 sps:$4 sm:$0xff]   ;;  %v4397_v26 = vld [vmem:[#allocation11 + $0x1a8] ss:$16 sps:$4 sm:$0xff]  }
 0x400   :  { %5599 = vst [vmem:[#allocation71_spill] sm:$0xff] %v4394_v34  ;;  %5600 = vst [vmem:[#allocation72_spill] sm:$0xff] %v4397_v26 }
 0x402   :  { %1543 = vmatpush1.bf16.msra.mxu0 %v4382_v28  ;;  %1584 = vmatpush1.bf16.msra.mxu1 %v4385_v30  ;;  %v4400_v28 = vld [vmem:[#allocation11 + $0x1c4] ss:$16 sps:$4 sm:$0xff]   ;;  %v4403_v30 = vld [vmem:[#allocation11 + $0x1cc] ss:$16 sps:$4 sm:$0xff]  }
 0x403   :  { %1544 = vmatprep.subr.bf16.mxu0 %v4388_v32  ;;  %1585 = vmatprep.subr.bf16.mxu1 %v4391_v33  ;;  %5601 = vst [vmem:[#allocation73_spill] sm:$0xff] %v4400_v28  ;;  %5602 = vst [vmem:[#allocation74_spill] sm:$0xff] %v4403_v30  ;;  %v4406_v32 = vld [vmem:[#allocation11 + $0x1c0] ss:$16 sps:$4 sm:$0xff]   ;;  %v4409_v33 = vld [vmem:[#allocation11 + $0x1c8] ss:$16 sps:$4 sm:$0xff]  }
 0x404   :  { %5603 = vst [vmem:[#allocation75_spill] sm:$0xff] %v4406_v32  ;;  %5604 = vst [vmem:[#allocation76_spill] sm:$0xff] %v4409_v33 }
 0x406   :  { %1545 = vmatpush1.bf16.msra.mxu0 %v4394_v34  ;;  %1586 = vmatpush1.bf16.msra.mxu1 %v4397_v26  ;;  %v4412_v34 = vld [vmem:[#allocation11 + $0x1e4] ss:$16 sps:$4 sm:$0xff]   ;;  %v4415_v26 = vld [vmem:[#allocation11 + $0x1ec] ss:$16 sps:$4 sm:$0xff]  }
 0x407   :  { %1546 = vmatprep.subr.bf16.mxu0 %v4400_v28  ;;  %1587 = vmatprep.subr.bf16.mxu1 %v4403_v30  ;;  %5605 = vst [vmem:[#allocation77_spill] sm:$0xff] %v4412_v34  ;;  %5606 = vst [vmem:[#allocation78_spill] sm:$0xff] %v4415_v26  ;;  %v4418_v28 = vld [vmem:[#allocation11 + $0x1e0] ss:$16 sps:$4 sm:$0xff]   ;;  %v4421_v30 = vld [vmem:[#allocation11 + $0x1e8] ss:$16 sps:$4 sm:$0xff]  }
 0x408   :  { %5607 = vst [vmem:[#allocation79_spill] sm:$0xff] %v4418_v28  ;;  %5608 = vst [vmem:[#allocation80_spill] sm:$0xff] %v4421_v30 }
 0x40a   :  { %1547 = vmatpush1.bf16.msra.mxu0 %v4406_v32  ;;  %1588 = vmatpush1.bf16.msra.mxu1 %v4409_v33 }
 0x40b   :  { %1548 = vmatprep.subr.bf16.mxu0 %v4412_v34  ;;  %1589 = vmatprep.subr.bf16.mxu1 %v4415_v26 }
 0x40e   :  { %1549 = vmatpush1.bf16.msra.mxu0 %v4418_v28  ;;  %1590 = vmatpush1.bf16.msra.mxu1 %v4421_v30 }
 0x40f   :  { %1641 = vmatprep.subr.bf16.mxu0 %v4164_v41  ;;  %1682 = vmatprep.subr.bf16.mxu1 %v4167_v55 }
 0x484   :  { %v1311_v33 = vpop.f32.mrb[20].mxu0  ;;  %v1352_v32 = vpop.f32.mrb[20].mxu1 }
 0x485   :  { %v1312_v34 = vadd.f32 %v1311_v33, %v5546_v25  ;;  %v1353_v24 = vadd.f32 %v1352_v32, %v5547_v27  ;;  %v1313_v2 = vpop.f32.mrb[21].mxu0  ;;  %v1354_v26 = vpop.f32.mrb[21].mxu1 }
 0x486   :  { %v1314_v57 = vadd.f32 %v1313_v2, %v5548_v31  ;;  %v1315_v18 = vpop.f32.mrb[22].mxu0  ;;  %v1356_v28 = vpop.f32.mrb[22].mxu1  ;;  %v1355_v55 = vadd.f32 %v1354_v26, %v5549_v40 }
 0x487   :  { %v2741_v17 = vmul.f32 -1.442695, %v1312_v34  ;;  %v2743_v16 = vmul.f32 -1.442695, %v1353_v24  ;;  %v1316_v9 = vpop.f32.mrb[23].mxu0  ;;  %v1357_v30 = vpop.f32.mrb[23].mxu1 }
 0x488   :  { %v2742_v15 = vmul.f32 -1.442695, %v1314_v57  ;;  %v2744_v14 = vmul.f32 -1.442695, %v1355_v55  ;;  %v1394_v18 = vld [vmem:[#allocation6 + $0x30] sm:$0xff]  ;;  %v1395_v9 = vld [vmem:[#allocation6 + $0x38] sm:$0xff] }
 0x489   :  { %3040 = vpow2.f32 %v2741_v17  ;;  %v1396_v57 = vunpack.c.l.bf16 %v1394_v18  ;;  %v1398_v17 = vunpack.c.l.bf16 %v1395_v9 }
 0x48a   :  { %3042 = vpow2.f32 %v2743_v16 }
 0x48b   :  { %3044 = vpow2.f32 %v2742_v15  ;;  %v1397_v15 = vunpack.c.h.bf16 %v1394_v18 }
 0x493   :  { %v3041_v41 = vpop.eup %3040 }
 0x494   :  { %v3043_v33 = vpop.eup %3042  ;;  %v1371_v13 = vadd.f32 1.0, %v3041_v41 }
 0x495   :  { %v3045_v25 = vpop.eup %3044  ;;  %v1373_v32 = vadd.f32 1.0, %v3043_v33 }
 0x496   :  { %v1372_v27 = vadd.f32 1.0, %v3045_v25 }
 0x497   :  { %3046 = vrcp.f32 %v1373_v32 }
 0x498   :  { %3048 = vrcp.f32 %v1372_v27 }
 0x499   :  { %3050 = vpow2.f32 %v2744_v14 }
 0x49a   :  { %3052 = vrcp.f32 %v1371_v13 }
 0x4a1   :  { %v3047_v2 = vpop.eup %3046 }
 0x4a2   :  { %v1383_v16 = vmul.f32 2.0, %v3047_v2  ;;  %v3049_v24 = vpop.eup %3048 }
 0x4a3   :  { %v3051_v26 = vpop.eup %3050  ;;  %v1385_v13 = vmul.f32 %v3049_v24, %v4175_v44 }
 0x4a4   :  { %v2745_v28 = vadd.f32 -1.0, %v1383_v16  ;;  %v1434_v30 = vpop.f32.mrb[24].mxu0  ;;  %v1475_v34 = vpop.f32.mrb[24].mxu1  ;;  %v1374_v10 = vadd.f32 1.0, %v3051_v26 }
 0x4a5   :  { %v3053_v33 = vpop.eup %3052  ;;  %v1482_v25 = vadd.f32 %v1434_v30, %v1396_v57  ;;  %v1484_v55 = vadd.f32 %v1475_v34, %v1398_v17  ;;  %v1436_v41 = vpop.f32.mrb[25].mxu0  ;;  %v1399_v57 = vunpack.c.h.bf16 %v1395_v9 }
 0x4a6   :  { %v1477_v32 = vpop.f32.mrb[25].mxu1  ;;  %v1386_v27 = vmul.f32 %v3053_v33, %v2745_v28  ;;  %v1483_v14 = vadd.f32 %v1436_v41, %v1397_v15  ;;  %v1438_v40 = vpop.f32.mrb[26].mxu0 }
 0x4a7   :  { %v1479_v31 = vpop.f32.mrb[26].mxu1  ;;  %v2746_v12 = vmul.f32 -1.442695, %v1482_v25  ;;  %v2748_v11 = vmul.f32 -1.442695, %v1484_v55  ;;  %v1439_v2 = vpop.f32.mrb[27].mxu0  ;;  %v1485_v17 = vadd.f32 %v1477_v32, %v1399_v57 }
 0x4a8   :  { %v1480_v18 = vpop.f32.mrb[27].mxu1  ;;  %v2747_v8 = vmul.f32 -1.442695, %v1483_v14  ;;  %v4431_v16 = vadd.f32 %v1386_v27, %v1385_v13 }
 0x4a9   :  { %3054 = vpow2.f32 %v2746_v12  ;;  %v2749_v40 = vmul.f32 -1.442695, %v1485_v17  ;;  %v5631_v17 = vld [vmem:[#allocation44_spill] sm:$0xff] }
 0x4aa   :  { %3056 = vpow2.f32 %v2748_v11 }
 0x4ab   :  { %3058 = vpow2.f32 %v2747_v8 }
 0x4ac   :  { %3060 = vrcp.f32 %v1374_v10 }
 0x4ad   :  { %3062 = vtanh.f32 %v4431_v16 }
 0x4b3   :  { %v3055_v44 = vpop.eup %3054 }
 0x4b4   :  { %v3057_v15 = vpop.eup %3056  ;;  %v1498_v26 = vadd.f32 1.0, %v3055_v44  ;;  %v5632_v44 = vld [vmem:[#allocation45_spill] sm:$0xff] }
 0x4b5   :  { %v3059_v31 = vpop.eup %3058  ;;  %v1500_v24 = vadd.f32 1.0, %v3057_v15  ;;  %v5633_v15 = vld [vmem:[#allocation46_spill] sm:$0xff] }
 0x4b6   :  { %v3061_v28 = vpop.eup %3060  ;;  %v1499_v30 = vadd.f32 1.0, %v3059_v31  ;;  %v5635_v31 = vld [vmem:[#allocation48_spill] sm:$0xff] }
 0x4b7   :  { %v3063_v34 = vpop.eup %3062  ;;  %3064 = vrcp.f32 %v1500_v24  ;;  %v5636_v24 = vld [vmem:[#allocation49_spill] sm:$0xff] }
 0x4b8   :  { %3066 = vpow2.f32 %v2749_v40  ;;  %v1389_v33 = vmul.f32 %v3063_v34, %v3061_v28  ;;  %v5634_v40 = vld [vmem:[#allocation47_spill] sm:$0xff]  ;;  %v5637_v28 = vld [vmem:[#allocation50_spill] sm:$0xff]  ;;  %v5639_v34 = vld [vmem:[#allocation52_spill] sm:$0xff] }
 0x4b9   :  { %3068 = vrcp.f32 %v1499_v30  ;;  %v5638_v30 = vld [vmem:[#allocation51_spill] sm:$0xff] }
 0x4ba   :  { %v1390_v11 = vpack.c.bf16 %v1389_v33, %v1389_v33  ;;  %3070 = vrcp.f32 %v1498_v26  ;;  %v5640_v26 = vld [vmem:[#allocation53_spill] sm:$0xff]  ;;  %v5641_v33 = vld [vmem:[#allocation54_spill] sm:$0xff] }
 0x4bc   :  { %1392 = vst [vmem:[#allocation12 + $0x8] sm:$0xf] %v1390_v11  ;;  %1550 = vmatprep.mubr.bf16.mxu0 %v1390_v11  ;;  %1591 = vmatprep.mubr.bf16.mxu1 %v1390_v11  ;;  %v5642_v11 = vld [vmem:[#allocation55_spill] sm:$0xff] }
 0x4c1   :  { %v3065_v8 = vpop.eup %3064 }
 0x4c2   :  { %v3067_v10 = vpop.eup %3066  ;;  %v1510_v12 = vmul.f32 2.0, %v3065_v8  ;;  %v5643_v8 = vld [vmem:[#allocation56_spill] sm:$0xff] }
 0x4c3   :  { %v3069_v9 = vpop.eup %3068  ;;  %v1501_v41 = vadd.f32 1.0, %v3067_v10  ;;  %v5644_v10 = vld [vmem:[#allocation57_spill] sm:$0xff] }
 0x4c4   :  { %v2750_v25 = vadd.f32 -1.0, %v1510_v12  ;;  %v3071_v55 = vpop.eup %3070  ;;  %v1512_v27 = vmul.f32 %v3069_v9, %v4179_v29  ;;  %v5630_v29 = vld [vmem:[#allocation43_spill] sm:$0xff]  ;;  %v5645_v12 = vld [vmem:[#allocation58_spill] sm:$0xff] }
 0x4c5   :  { %3072 = vrcp.f32 %v1501_v41  ;;  %v5646_v9 = vld [vmem:[#allocation59_spill] sm:$0xff]  ;;  %v5649_v41 = vld [vmem:[#allocation62_spill] sm:$0xff] }
 0x4c6   :  { %v1513_v32 = vmul.f32 %v3071_v55, %v2750_v25  ;;  %v5647_v25 = vld [vmem:[#allocation60_spill] sm:$0xff]  ;;  %v5648_v55 = vld [vmem:[#allocation61_spill] sm:$0xff] }
 0x4c8   :  { %v4435_v13 = vadd.f32 %v1513_v32, %v1512_v27  ;;  %v5650_v32 = vld [vmem:[#allocation63_spill] sm:$0xff]  ;;  %v5651_v27 = vld [vmem:[#allocation64_spill] sm:$0xff] }
 0x4ca   :  { %3074 = vtanh.f32 %v4435_v13 }
 0x4cf   :  { %v3073_v14 = vpop.eup %3072 }
 0x4d4   :  { %v3075_v2 = vpop.eup %3074 }
 0x4d5   :  { %v1516_v18 = vmul.f32 %v3075_v2, %v3073_v14  ;;  %v5652_v14 = vld [vmem:[#allocation65_spill] sm:$0xff]  ;;  %v5653_v2 = vld [vmem:[#allocation66_spill] sm:$0xff] }
 0x4d7   :  { %v1517_v57 = vpack.c.bf16 %v1516_v18, %v1516_v18  ;;  %v5654_v18 = vld [vmem:[#allocation67_spill] sm:$0xff] }
 0x4d9   :  { %1551 = vmatmul.mubr.bf16.vlgmr.msra.gmra.mrb[28].mxu0 %v1517_v57  ;;  %1592 = vmatmul.mubr.bf16.vlgmr.msra.gmra.mrb[28].mxu1 %v1517_v57 }
 0x4da   :  { %1642 = vmatpush1.bf16.msra.mxu0 %v4026_v62  ;;  %1683 = vmatpush1.bf16.msra.mxu1 %v4029_v59  ;;  %v5609_v62 = vld [vmem:[#allocation24_spill] sm:$0xff]  ;;  %v5610_v59 = vld [vmem:[#allocation25_spill] sm:$0xff] }
 0x4db   :  { %1643 = vmatprep.subr.bf16.mxu0 %v4032_v47  ;;  %1684 = vmatprep.subr.bf16.mxu1 %v4035_v1  ;;  %v5611_v47 = vld [vmem:[#allocation26_spill] sm:$0xff]  ;;  %v5612_v1 = vld [vmem:[#allocation27_spill] sm:$0xff] }
 0x4dc   :  { %1673 = vmatprep.mubr.bf16.mxu0 %v5447_v61  ;;  %1714 = vmatprep.mubr.bf16.mxu1 %v5447_v61 }
 0x4de   :  { %1644 = vmatpush1.bf16.msra.mxu0 %v4040_v52  ;;  %1685 = vmatpush1.bf16.msra.mxu1 %v4043_v22  ;;  %v5613_v52 = vld [vmem:[#allocation28_spill] sm:$0xff]  ;;  %v5614_v22 = vld [vmem:[#allocation29_spill] sm:$0xff] }
 0x4df   :  { %1645 = vmatprep.subr.bf16.mxu0 %v4046_v53  ;;  %1686 = vmatprep.subr.bf16.mxu1 %v4049_v58  ;;  %v5615_v53 = vld [vmem:[#allocation30_spill] sm:$0xff]  ;;  %v5616_v58 = vld [vmem:[#allocation31_spill] sm:$0xff] }
 0x4e2   :  { %1646 = vmatpush1.bf16.msra.mxu0 %v4052_v19  ;;  %1687 = vmatpush1.bf16.msra.mxu1 %v4055_v60  ;;  %v5617_v19 = vld [vmem:[#allocation32_spill] sm:$0xff]  ;;  %v5618_v60 = vld [vmem:[#allocation33_spill] sm:$0xff] }
 0x4e3   :  { %1647 = vmatprep.subr.bf16.mxu0 %v4058_v45  ;;  %1688 = vmatprep.subr.bf16.mxu1 %v4061_v23  ;;  %v5619_v45 = vld [vmem:[#allocation16_spill] sm:$0xff]  ;;  %v5620_v23 = vld [vmem:[#allocation17_spill] sm:$0xff] }
 0x4e6   :  { %1648 = vmatpush1.bf16.msra.mxu0 %v4064_v20  ;;  %1689 = vmatpush1.bf16.msra.mxu1 %v4067_v21  ;;  %v5621_v20 = vld [vmem:[#allocation34_spill] sm:$0xff]  ;;  %v5622_v21 = vld [vmem:[#allocation35_spill] sm:$0xff] }
 0x4e7   :  { %1649 = vmatprep.subr.bf16.mxu0 %v4070_v48  ;;  %1690 = vmatprep.subr.bf16.mxu1 %v4073_v0  ;;  %v5623_v48 = vld [vmem:[#allocation36_spill] sm:$0xff]  ;;  %v5624_v0 = vld [vmem:[#allocation37_spill] sm:$0xff] }
 0x4ea   :  { %1650 = vmatpush1.bf16.msra.mxu0 %v4076_v49  ;;  %1691 = vmatpush1.bf16.msra.mxu1 %v4079_v51  ;;  %v5625_v49 = vld [vmem:[#allocation38_spill] sm:$0xff]  ;;  %v5626_v51 = vld [vmem:[#allocation39_spill] sm:$0xff] }
 0x4eb   :  { %1651 = vmatprep.subr.bf16.mxu0 %v4082_v46  ;;  %1692 = vmatprep.subr.bf16.mxu1 %v4085_v50  ;;  %v5627_v46 = vld [vmem:[#allocation40_spill] sm:$0xff]  ;;  %v5628_v50 = vld [vmem:[#allocation41_spill] sm:$0xff] }
 0x4ee   :  { %1652 = vmatpush1.bf16.msra.mxu0 %v4088_v54  ;;  %1693 = vmatpush1.bf16.msra.mxu1 %v4205_v56  ;;  %v5629_v54 = vld [vmem:[#allocation42_spill] sm:$0xff] }
 0x4ef   :  { %1653 = vmatprep.subr.bf16.mxu0 %v4208_v35  ;;  %1694 = vmatprep.subr.bf16.mxu1 %v4211_v36 }
 0x4f2   :  { %1654 = vmatpush1.bf16.msra.mxu0 %v4214_v37  ;;  %1695 = vmatpush1.bf16.msra.mxu1 %v4217_v38 }
 0x4f3   :  { %1655 = vmatprep.subr.bf16.mxu0 %v4220_v39  ;;  %1696 = vmatprep.subr.bf16.mxu1 %v4223_v42 }
 0x4f6   :  { %1656 = vmatpush1.bf16.msra.mxu0 %v4226_v43  ;;  %1697 = vmatpush1.bf16.msra.mxu1 %v4229_v3 }
 0x4f7   :  { %1759 = vmatprep.subr.bf16.mxu0 %v4232_v4  ;;  %1800 = vmatprep.subr.bf16.mxu1 %v4235_v63 }
 0x4f9   :  { %1674 = vmatmul.mubr.bf16.vlgmr.msra.gmra.mrb[32].mxu0 %v1517_v57  ;;  %1715 = vmatmul.mubr.bf16.vlgmr.msra.gmra.mrb[32].mxu1 %v1517_v57  ;;  %v5655_v57 = vld [vmem:[#allocation68_spill] sm:$0xff] }
 0x4fa   :  { %1760 = vmatpush1.bf16.msra.mxu0 %v4238_v5  ;;  %1801 = vmatpush1.bf16.msra.mxu1 %v4241_v6 }
 0x4fb   :  { %1761 = vmatprep.subr.bf16.mxu0 %v4244_v7  ;;  %1802 = vmatprep.subr.bf16.mxu1 %v5609_v62 }
 0x4fe   :  { %1762 = vmatpush1.bf16.msra.mxu0 %v5610_v59  ;;  %1803 = vmatpush1.bf16.msra.mxu1 %v5611_v47 }
 0x4ff   :  { %1763 = vmatprep.subr.bf16.mxu0 %v5612_v1  ;;  %1804 = vmatprep.subr.bf16.mxu1 %v5613_v52 }
 0x502   :  { %1764 = vmatpush1.bf16.msra.mxu0 %v5614_v22  ;;  %1805 = vmatpush1.bf16.msra.mxu1 %v5615_v53 }
 0x503   :  { %1765 = vmatprep.subr.bf16.mxu0 %v5616_v58  ;;  %1806 = vmatprep.subr.bf16.mxu1 %v5617_v19 }
 0x506   :  { %1766 = vmatpush1.bf16.msra.mxu0 %v5618_v60  ;;  %1807 = vmatpush1.bf16.msra.mxu1 %v5619_v45 }
 0x507   :  { %1767 = vmatprep.subr.bf16.mxu0 %v5620_v23  ;;  %1808 = vmatprep.subr.bf16.mxu1 %v5621_v20 }
 0x50a   :  { %1768 = vmatpush1.bf16.msra.mxu0 %v5622_v21  ;;  %1809 = vmatpush1.bf16.msra.mxu1 %v5623_v48 }
 0x50b   :  { %1769 = vmatprep.subr.bf16.mxu0 %v5624_v0  ;;  %1810 = vmatprep.subr.bf16.mxu1 %v5625_v49 }
 0x50e   :  { %1770 = vmatpush1.bf16.msra.mxu0 %v5626_v51  ;;  %1811 = vmatpush1.bf16.msra.mxu1 %v5627_v46 }
 0x50f   :  { %1771 = vmatprep.subr.bf16.mxu0 %v5628_v50  ;;  %1812 = vmatprep.subr.bf16.mxu1 %v5629_v54 }
 0x512   :  { %1772 = vmatpush1.bf16.msra.mxu0 %v5630_v29  ;;  %1813 = vmatpush1.bf16.msra.mxu1 %v5631_v17 }
 0x513   :  { %1773 = vmatprep.subr.bf16.mxu0 %v5632_v44  ;;  %1814 = vmatprep.subr.bf16.mxu1 %v5633_v15 }
 0x516   :  { %1774 = vmatpush1.bf16.msra.mxu0 %v5634_v40  ;;  %1815 = vmatpush1.bf16.msra.mxu1 %v5635_v31 }
 0x517   :  { %1775 = vmatprep.subr.bf16.mxu0 %v5636_v24  ;;  %1816 = vmatprep.subr.bf16.mxu1 %v5637_v28 }
 0x51a   :  { %1776 = vmatpush1.bf16.msra.mxu0 %v5638_v30  ;;  %1817 = vmatpush1.bf16.msra.mxu1 %v5639_v34 }
 0x51b   :  { %1777 = vmatprep.subr.bf16.mxu0 %v5640_v26  ;;  %1818 = vmatprep.subr.bf16.mxu1 %v5641_v33  ;;  %v5672_v33 = vld [vmem:[#allocation20_spill] sm:$0xff] }
 0x51e   :  { %1778 = vmatpush1.bf16.msra.mxu0 %v5642_v11  ;;  %1819 = vmatpush1.bf16.msra.mxu1 %v5643_v8  ;;  %v5671_v8 = vld [vmem:[#allocation19_spill] sm:$0xff] }
 0x51f   :  { %1779 = vmatprep.subr.bf16.mxu0 %v5644_v10  ;;  %1820 = vmatprep.subr.bf16.mxu1 %v5645_v12  ;;  %v5656_v12 = vld [vmem:[#allocation69_spill] sm:$0xff]  ;;  %v5670_v10 = vld [vmem:[#allocation18_spill] sm:$0xff] }
 0x522   :  { %1780 = vmatpush1.bf16.msra.mxu0 %v5646_v9  ;;  %1821 = vmatpush1.bf16.msra.mxu1 %v5647_v25  ;;  %v5657_v9 = vld [vmem:[#allocation70_spill] sm:$0xff]  ;;  %v5658_v25 = vld [vmem:[#allocation71_spill] sm:$0xff] }
 0x523   :  { %1781 = vmatprep.subr.bf16.mxu0 %v5648_v55  ;;  %1822 = vmatprep.subr.bf16.mxu1 %v5649_v41  ;;  %v5659_v55 = vld [vmem:[#allocation72_spill] sm:$0xff]  ;;  %v5660_v41 = vld [vmem:[#allocation73_spill] sm:$0xff] }
 0x526   :  { %1782 = vmatpush1.bf16.msra.mxu0 %v5650_v32  ;;  %1823 = vmatpush1.bf16.msra.mxu1 %v5651_v27  ;;  %v5661_v32 = vld [vmem:[#allocation74_spill] sm:$0xff]  ;;  %v5662_v27 = vld [vmem:[#allocation75_spill] sm:$0xff] }
 0x527   :  { %1783 = vmatprep.subr.bf16.mxu0 %v5652_v14  ;;  %1824 = vmatprep.subr.bf16.mxu1 %v5653_v2  ;;  %v5663_v14 = vld [vmem:[#allocation76_spill] sm:$0xff]  ;;  %v5664_v2 = vld [vmem:[#allocation77_spill] sm:$0xff] }
 0x52a   :  { %1784 = vmatpush1.bf16.msra.mxu0 %v5654_v18  ;;  %1825 = vmatpush1.bf16.msra.mxu1 %v5655_v57  ;;  %v5665_v18 = vld [vmem:[#allocation78_spill] sm:$0xff]  ;;  %v5666_v57 = vld [vmem:[#allocation79_spill] sm:$0xff] }
 0x52b   :  { %1785 = vmatprep.subr.bf16.mxu0 %v5656_v12  ;;  %1826 = vmatprep.subr.bf16.mxu1 %v5657_v9  ;;  %v5667_v12 = vld [vmem:[#allocation80_spill] sm:$0xff]  ;;  %v5668_v9 = vld [vmem:[#allocation22_spill] sm:$0xff] }
 0x52e   :  { %1786 = vmatpush1.bf16.msra.mxu0 %v5658_v25  ;;  %1827 = vmatpush1.bf16.msra.mxu1 %v5659_v55  ;;  %v5669_v25 = vld [vmem:[#allocation23_spill] sm:$0xff] }
 0x52f   :  { %1787 = vmatprep.subr.bf16.mxu0 %v5660_v41  ;;  %1828 = vmatprep.subr.bf16.mxu1 %v5661_v32 }
 0x532   :  { %1788 = vmatpush1.bf16.msra.mxu0 %v5662_v27  ;;  %1829 = vmatpush1.bf16.msra.mxu1 %v5663_v14 }
 0x533   :  { %1789 = vmatprep.subr.bf16.mxu0 %v5664_v2  ;;  %1830 = vmatprep.subr.bf16.mxu1 %v5665_v18 }
 0x536   :  { %1790 = vmatpush1.bf16.msra.mxu0 %v5666_v57  ;;  %1831 = vmatpush1.bf16.msra.mxu1 %v5667_v12 }
 0x537   :  { %1882 = vmatprep.subr.bf16.mxu0 %v5668_v9  ;;  %1923 = vmatprep.subr.bf16.mxu1 %v5669_v25  ;;  %v5673_v9 = vld [vmem:[#allocation21_spill] sm:$0xff] }
 0x5ac   :  { %v1552_v55 = vpop.f32.mrb[28].mxu0  ;;  %v1593_v41 = vpop.f32.mrb[28].mxu1 }
 0x5ad   :  { %v1553_v32 = vadd.f32 %v1552_v55, %v5670_v10  ;;  %v1594_v27 = vadd.f32 %v1593_v41, %v5671_v8  ;;  %v1554_v11 = vpop.f32.mrb[29].mxu0  ;;  %v1595_v14 = vpop.f32.mrb[29].mxu1 }
 0x5ae   :  { %v1555_v2 = vadd.f32 %v1554_v11, %v5672_v33  ;;  %v1556_v26 = vpop.f32.mrb[30].mxu0  ;;  %v1597_v18 = vpop.f32.mrb[30].mxu1  ;;  %v1596_v25 = vadd.f32 %v1595_v14, %v5673_v9 }
 0x5af   :  { %v2751_v34 = vmul.f32 -1.442695, %v1553_v32  ;;  %v2753_v57 = vmul.f32 -1.442695, %v1594_v27  ;;  %v1557_v30 = vpop.f32.mrb[31].mxu0  ;;  %v1598_v12 = vpop.f32.mrb[31].mxu1 }
 0x5b0   :  { %v2752_v28 = vmul.f32 -1.442695, %v1555_v2  ;;  %v2754_v31 = vmul.f32 -1.442695, %v1596_v25  ;;  %v1635_v26 = vld [vmem:[#allocation6 + $0x40] sm:$0xff]  ;;  %v1636_v30 = vld [vmem:[#allocation6 + $0x48] sm:$0xff] }
 0x5b1   :  { %3076 = vpow2.f32 %v2751_v34  ;;  %v1637_v12 = vunpack.c.l.bf16 %v1635_v26  ;;  %v1639_v34 = vunpack.c.l.bf16 %v1636_v30 }
 0x5b2   :  { %3078 = vpow2.f32 %v2753_v57 }
 0x5b3   :  { %3080 = vpow2.f32 %v2752_v28  ;;  %v1638_v28 = vunpack.c.h.bf16 %v1635_v26 }
 0x5bb   :  { %v3077_v24 = vpop.eup %3076 }
 0x5bc   :  { %v3079_v55 = vpop.eup %3078  ;;  %v1612_v40 = vadd.f32 1.0, %v3077_v24 }
 0x5bd   :  { %v3081_v10 = vpop.eup %3080  ;;  %v1614_v41 = vadd.f32 1.0, %v3079_v55 }
 0x5be   :  { %v1613_v8 = vadd.f32 1.0, %v3081_v10 }
 0x5bf   :  { %3082 = vrcp.f32 %v1614_v41 }
 0x5c0   :  { %3084 = vrcp.f32 %v1613_v8 }
 0x5c1   :  { %3086 = vpow2.f32 %v2754_v31 }
 0x5c2   :  { %3088 = vrcp.f32 %v1612_v40 }
 0x5c9   :  { %v3083_v11 = vpop.eup %3082 }
 0x5ca   :  { %v1624_v32 = vmul.f32 2.0, %v3083_v11  ;;  %v3085_v27 = vpop.eup %3084 }
 0x5cb   :  { %v3087_v14 = vpop.eup %3086  ;;  %v1626_v40 = vmul.f32 %v3085_v27, %v4431_v16 }
 0x5cc   :  { %v2755_v2 = vadd.f32 -1.0, %v1624_v32  ;;  %v1675_v18 = vpop.f32.mrb[32].mxu0  ;;  %v1716_v57 = vpop.f32.mrb[32].mxu1  ;;  %v1615_v17 = vadd.f32 1.0, %v3087_v14 }
 0x5cd   :  { %v3089_v55 = vpop.eup %3088  ;;  %v1723_v10 = vadd.f32 %v1675_v18, %v1637_v12  ;;  %v1725_v25 = vadd.f32 %v1716_v57, %v1639_v34  ;;  %v1677_v24 = vpop.f32.mrb[33].mxu0  ;;  %v1640_v12 = vunpack.c.h.bf16 %v1636_v30 }
 0x5ce   :  { %v1718_v41 = vpop.f32.mrb[33].mxu1  ;;  %v1627_v8 = vmul.f32 %v3089_v55, %v2755_v2  ;;  %v1724_v31 = vadd.f32 %v1677_v24, %v1638_v28  ;;  %v1679_v9 = vpop.f32.mrb[34].mxu0 }
 0x5cf   :  { %v1720_v33 = vpop.f32.mrb[34].mxu1  ;;  %v2756_v15 = vmul.f32 -1.442695, %v1723_v10  ;;  %v2758_v44 = vmul.f32 -1.442695, %v1725_v25  ;;  %v1680_v11 = vpop.f32.mrb[35].mxu0  ;;  %v1726_v34 = vadd.f32 %v1718_v41, %v1640_v12 }
 0x5d0   :  { %v1721_v26 = vpop.f32.mrb[35].mxu1  ;;  %v2757_v29 = vmul.f32 -1.442695, %v1724_v31  ;;  %v4541_v32 = vadd.f32 %v1627_v8, %v1626_v40 }
 0x5d1   :  { %3090 = vpow2.f32 %v2756_v15  ;;  %v2759_v9 = vmul.f32 -1.442695, %v1726_v34  ;;  %v4548_v34 = vld [vmem:[#allocation9] ss:$16 sps:$4 sm:$0xff]  }
 0x5d2   :  { %3092 = vpow2.f32 %v2758_v44 }
 0x5d3   :  { %3094 = vpow2.f32 %v2757_v29 }
 0x5d4   :  { %3096 = vrcp.f32 %v1615_v17 }
 0x5d5   :  { %3098 = vtanh.f32 %v4541_v32 }
 0x5db   :  { %v3091_v16 = vpop.eup %3090 }
 0x5dc   :  { %v3093_v28 = vpop.eup %3092  ;;  %v1739_v14 = vadd.f32 1.0, %v3091_v16  ;;  %v4551_v16 = vld [vmem:[#allocation9 + $0x8] ss:$16 sps:$4 sm:$0xff]  }
 0x5dd   :  { %v3095_v33 = vpop.eup %3094  ;;  %v1741_v27 = vadd.f32 1.0, %v3093_v28  ;;  %v4557_v28 = vld [vmem:[#allocation9 + $0x2c] ss:$16 sps:$4 sm:$0xff]  }
 0x5de   :  { %v3097_v2 = vpop.eup %3096  ;;  %v1740_v18 = vadd.f32 1.0, %v3095_v33  ;;  %v4565_v33 = vld [vmem:[#allocation9 + $0x28] ss:$16 sps:$4 sm:$0xff]  }
 0x5df   :  { %v3099_v57 = vpop.eup %3098  ;;  %3100 = vrcp.f32 %v1741_v27  ;;  %v4568_v27 = vld [vmem:[#allocation9 + $0x44] ss:$16 sps:$4 sm:$0xff]  }
 0x5e0   :  { %3102 = vpow2.f32 %v2759_v9  ;;  %v1630_v55 = vmul.f32 %v3099_v57, %v3097_v2  ;;  %v4562_v9 = vld [vmem:[#allocation9 + $0x20] ss:$16 sps:$4 sm:$0xff]   ;;  %v4571_v2 = vld [vmem:[#allocation9 + $0x4c] ss:$16 sps:$4 sm:$0xff]   ;;  %v4577_v57 = vld [vmem:[#allocation9 + $0x48] ss:$16 sps:$4 sm:$0xff]  }
 0x5e1   :  { %3104 = vrcp.f32 %v1740_v18  ;;  %v4574_v18 = vld [vmem:[#allocation9 + $0x40] ss:$16 sps:$4 sm:$0xff]  }
 0x5e2   :  { %v1631_v44 = vpack.c.bf16 %v1630_v55, %v1630_v55  ;;  %3106 = vrcp.f32 %v1739_v14  ;;  %v4580_v14 = vld [vmem:[#allocation9 + $0x64] ss:$16 sps:$4 sm:$0xff]   ;;  %v4583_v55 = vld [vmem:[#allocation9 + $0x6c] ss:$16 sps:$4 sm:$0xff]  }
 0x5e4   :  { %1633 = vst [vmem:[#allocation12 + $0xc] sm:$0xf] %v1631_v44  ;;  %1791 = vmatprep.mubr.bf16.mxu0 %v1631_v44  ;;  %1832 = vmatprep.mubr.bf16.mxu1 %v1631_v44  ;;  %v4586_v44 = vld [vmem:[#allocation9 + $0x60] ss:$16 sps:$4 sm:$0xff]  }
 0x5e9   :  { %v3101_v29 = vpop.eup %3100 }
 0x5ea   :  { %v3103_v17 = vpop.eup %3102  ;;  %v1751_v15 = vmul.f32 2.0, %v3101_v29  ;;  %v4589_v29 = vld [vmem:[#allocation9 + $0x68] ss:$16 sps:$4 sm:$0xff]  }
 0x5eb   :  { %v3105_v30 = vpop.eup %3104  ;;  %v1742_v24 = vadd.f32 1.0, %v3103_v17  ;;  %v4592_v17 = vld [vmem:[#allocation9 + $0x84] ss:$16 sps:$4 sm:$0xff]  }
 0x5ec   :  { %v2760_v10 = vadd.f32 -1.0, %v1751_v15  ;;  %v3107_v25 = vpop.eup %3106  ;;  %v1753_v8 = vmul.f32 %v3105_v30, %v4435_v13  ;;  %v4554_v13 = vld [vmem:[#allocation9 + $0x24] ss:$16 sps:$4 sm:$0xff]   ;;  %v4595_v15 = vld [vmem:[#allocation9 + $0x8c] ss:$16 sps:$4 sm:$0xff]  }
 0x5ed   :  { %3108 = vrcp.f32 %v1742_v24  ;;  %v4598_v30 = vld [vmem:[#allocation9 + $0x80] ss:$16 sps:$4 sm:$0xff]   ;;  %v4607_v24 = vld [vmem:[#allocation9 + $0xac] ss:$16 sps:$4 sm:$0xff]  }
 0x5ee   :  { %v1754_v41 = vmul.f32 %v3107_v25, %v2760_v10  ;;  %v4601_v10 = vld [vmem:[#allocation9 + $0x88] ss:$16 sps:$4 sm:$0xff]   ;;  %v4604_v25 = vld [vmem:[#allocation9 + $0xa4] ss:$16 sps:$4 sm:$0xff]  }
 0x5f0   :  { %v4545_v40 = vadd.f32 %v1754_v41, %v1753_v8  ;;  %v4610_v41 = vld [vmem:[#allocation9 + $0xa0] ss:$16 sps:$4 sm:$0xff]  }
 0x5f1   :  { %v5709_v8 = vld [vmem:[#allocation78_spill] sm:$0xff] }
 0x5f2   :  { %3110 = vtanh.f32 %v4545_v40 }
 0x5f7   :  { %v3109_v31 = vpop.eup %3108 }
 0x5fc   :  { %v3111_v11 = vpop.eup %3110 }
 0x5fd   :  { %v1757_v26 = vmul.f32 %v3111_v11, %v3109_v31  ;;  %v5710_v31 = vld [vmem:[#allocation79_spill] sm:$0xff]  ;;  %v5711_v11 = vld [vmem:[#allocation80_spill] sm:$0xff] }
 0x5ff   :  { %v1758_v12 = vpack.c.bf16 %v1757_v26, %v1757_v26  ;;  %v4686_v26 = vld [vmem:[#allocation9 + $0x4] ss:$16 sps:$4 sm:$0xff]  }
 0x601   :  { %1792 = vmatmul.mubr.bf16.vlgmr.msra.gmra.mrb[36].mxu0 %v1758_v12  ;;  %1833 = vmatmul.mubr.bf16.vlgmr.msra.gmra.mrb[36].mxu1 %v1758_v12 }
 0x602   :  { %1883 = vmatpush1.bf16.msra.mxu0 %v4548_v34  ;;  %1924 = vmatpush1.bf16.msra.mxu1 %v4551_v16 }
 0x603   :  { %1884 = vmatprep.subr.bf16.mxu0 %v4554_v13  ;;  %1925 = vmatprep.subr.bf16.mxu1 %v4557_v28 }
 0x604   :  { %1914 = vmatprep.mubr.bf16.mxu0 %v5447_v61  ;;  %1955 = vmatprep.mubr.bf16.mxu1 %v5447_v61 }
 0x606   :  { %1885 = vmatpush1.bf16.msra.mxu0 %v4562_v9  ;;  %1926 = vmatpush1.bf16.msra.mxu1 %v4565_v33 }
 0x607   :  { %1886 = vmatprep.subr.bf16.mxu0 %v4568_v27  ;;  %1927 = vmatprep.subr.bf16.mxu1 %v4571_v2 }
 0x60a   :  { %1887 = vmatpush1.bf16.msra.mxu0 %v4574_v18  ;;  %1928 = vmatpush1.bf16.msra.mxu1 %v4577_v57 }
 0x60b   :  { %1888 = vmatprep.subr.bf16.mxu0 %v4580_v14  ;;  %1929 = vmatprep.subr.bf16.mxu1 %v4583_v55 }
 0x60e   :  { %1889 = vmatpush1.bf16.msra.mxu0 %v4586_v44  ;;  %1930 = vmatpush1.bf16.msra.mxu1 %v4589_v29 }
 0x60f   :  { %1890 = vmatprep.subr.bf16.mxu0 %v4592_v17  ;;  %1931 = vmatprep.subr.bf16.mxu1 %v4595_v15 }
 0x612   :  { %1891 = vmatpush1.bf16.msra.mxu0 %v4598_v30  ;;  %1932 = vmatpush1.bf16.msra.mxu1 %v4601_v10 }
 0x613   :  { %1892 = vmatprep.subr.bf16.mxu0 %v4604_v25  ;;  %1933 = vmatprep.subr.bf16.mxu1 %v4607_v24 }
 0x616   :  { %1893 = vmatpush1.bf16.msra.mxu0 %v4610_v41  ;;  %1934 = vmatpush1.bf16.msra.mxu1 %v4205_v56  ;;  %v5674_v56 = vld [vmem:[#allocation43_spill] sm:$0xff] }
 0x617   :  { %1894 = vmatprep.subr.bf16.mxu0 %v4208_v35  ;;  %1935 = vmatprep.subr.bf16.mxu1 %v4211_v36  ;;  %v5675_v35 = vld [vmem:[#allocation44_spill] sm:$0xff]  ;;  %v5676_v36 = vld [vmem:[#allocation45_spill] sm:$0xff] }
 0x61a   :  { %1895 = vmatpush1.bf16.msra.mxu0 %v4214_v37  ;;  %1936 = vmatpush1.bf16.msra.mxu1 %v4217_v38  ;;  %v5677_v37 = vld [vmem:[#allocation46_spill] sm:$0xff]  ;;  %v5678_v38 = vld [vmem:[#allocation47_spill] sm:$0xff] }
 0x61b   :  { %1896 = vmatprep.subr.bf16.mxu0 %v4220_v39  ;;  %1937 = vmatprep.subr.bf16.mxu1 %v4223_v42  ;;  %v5679_v39 = vld [vmem:[#allocation48_spill] sm:$0xff]  ;;  %v5680_v42 = vld [vmem:[#allocation49_spill] sm:$0xff] }
 0x61e   :  { %1897 = vmatpush1.bf16.msra.mxu0 %v4226_v43  ;;  %1938 = vmatpush1.bf16.msra.mxu1 %v4229_v3  ;;  %v5681_v43 = vld [vmem:[#allocation50_spill] sm:$0xff]  ;;  %v5682_v3 = vld [vmem:[#allocation51_spill] sm:$0xff] }
 0x61f   :  { %2000 = vmatprep.subr.bf16.mxu0 %v4232_v4  ;;  %2041 = vmatprep.subr.bf16.mxu1 %v4235_v63  ;;  %v5683_v4 = vld [vmem:[#allocation52_spill] sm:$0xff]  ;;  %v5684_v63 = vld [vmem:[#allocation53_spill] sm:$0xff] }
 0x621   :  { %1915 = vmatmul.mubr.bf16.vlgmr.msra.gmra.mrb[40].mxu0 %v1758_v12  ;;  %1956 = vmatmul.mubr.bf16.vlgmr.msra.gmra.mrb[40].mxu1 %v1758_v12  ;;  %v4689_v12 = vld [vmem:[#allocation9 + $0xc] ss:$16 sps:$4 sm:$0xff]  }
 0x622   :  { %2001 = vmatpush1.bf16.msra.mxu0 %v4238_v5  ;;  %2042 = vmatpush1.bf16.msra.mxu1 %v4241_v6  ;;  %v5685_v5 = vld [vmem:[#allocation54_spill] sm:$0xff]  ;;  %v5686_v6 = vld [vmem:[#allocation55_spill] sm:$0xff] }
 0x623   :  { %2002 = vmatprep.subr.bf16.mxu0 %v4244_v7  ;;  %2043 = vmatprep.subr.bf16.mxu1 %v5609_v62  ;;  %v5687_v7 = vld [vmem:[#allocation56_spill] sm:$0xff]  ;;  %v5688_v62 = vld [vmem:[#allocation57_spill] sm:$0xff] }
 0x626   :  { %2003 = vmatpush1.bf16.msra.mxu0 %v5610_v59  ;;  %2044 = vmatpush1.bf16.msra.mxu1 %v5611_v47  ;;  %v5689_v59 = vld [vmem:[#allocation58_spill] sm:$0xff]  ;;  %v5690_v47 = vld [vmem:[#allocation59_spill] sm:$0xff] }
 0x627   :  { %2004 = vmatprep.subr.bf16.mxu0 %v5612_v1  ;;  %2045 = vmatprep.subr.bf16.mxu1 %v5613_v52  ;;  %v5691_v1 = vld [vmem:[#allocation60_spill] sm:$0xff]  ;;  %v5692_v52 = vld [vmem:[#allocation61_spill] sm:$0xff] }
 0x62a   :  { %2005 = vmatpush1.bf16.msra.mxu0 %v5614_v22  ;;  %2046 = vmatpush1.bf16.msra.mxu1 %v5615_v53  ;;  %v5693_v22 = vld [vmem:[#allocation62_spill] sm:$0xff]  ;;  %v5694_v53 = vld [vmem:[#allocation63_spill] sm:$0xff] }
 0x62b   :  { %2006 = vmatprep.subr.bf16.mxu0 %v5616_v58  ;;  %2047 = vmatprep.subr.bf16.mxu1 %v5617_v19  ;;  %v5695_v58 = vld [vmem:[#allocation64_spill] sm:$0xff]  ;;  %v5696_v19 = vld [vmem:[#allocation65_spill] sm:$0xff] }
 0x62e   :  { %2007 = vmatpush1.bf16.msra.mxu0 %v5618_v60  ;;  %2048 = vmatpush1.bf16.msra.mxu1 %v5619_v45  ;;  %v5697_v60 = vld [vmem:[#allocation66_spill] sm:$0xff]  ;;  %v5698_v45 = vld [vmem:[#allocation67_spill] sm:$0xff] }
 0x62f   :  { %2008 = vmatprep.subr.bf16.mxu0 %v5620_v23  ;;  %2049 = vmatprep.subr.bf16.mxu1 %v5621_v20  ;;  %v5699_v23 = vld [vmem:[#allocation68_spill] sm:$0xff]  ;;  %v5700_v20 = vld [vmem:[#allocation69_spill] sm:$0xff] }
 0x632   :  { %2009 = vmatpush1.bf16.msra.mxu0 %v5622_v21  ;;  %2050 = vmatpush1.bf16.msra.mxu1 %v5623_v48  ;;  %v5701_v21 = vld [vmem:[#allocation70_spill] sm:$0xff]  ;;  %v5702_v48 = vld [vmem:[#allocation71_spill] sm:$0xff] }
 0x633   :  { %2010 = vmatprep.subr.bf16.mxu0 %v5624_v0  ;;  %2051 = vmatprep.subr.bf16.mxu1 %v5625_v49  ;;  %v5703_v0 = vld [vmem:[#allocation72_spill] sm:$0xff]  ;;  %v5704_v49 = vld [vmem:[#allocation73_spill] sm:$0xff] }
 0x636   :  { %2011 = vmatpush1.bf16.msra.mxu0 %v5626_v51  ;;  %2052 = vmatpush1.bf16.msra.mxu1 %v5627_v46  ;;  %v5705_v51 = vld [vmem:[#allocation74_spill] sm:$0xff]  ;;  %v5706_v46 = vld [vmem:[#allocation75_spill] sm:$0xff] }
 0x637   :  { %2012 = vmatprep.subr.bf16.mxu0 %v5628_v50  ;;  %2053 = vmatprep.subr.bf16.mxu1 %v5629_v54  ;;  %v5707_v50 = vld [vmem:[#allocation76_spill] sm:$0xff]  ;;  %v5708_v54 = vld [vmem:[#allocation77_spill] sm:$0xff] }
 0x63a   :  { %2013 = vmatpush1.bf16.msra.mxu0 %v5674_v56  ;;  %2054 = vmatpush1.bf16.msra.mxu1 %v5675_v35 }
 0x63b   :  { %2014 = vmatprep.subr.bf16.mxu0 %v5676_v36  ;;  %2055 = vmatprep.subr.bf16.mxu1 %v5677_v37  ;;  %v5712_v36 = vld [vmem:[#allocation18_spill] sm:$0xff] }
 0x63e   :  { %2015 = vmatpush1.bf16.msra.mxu0 %v5678_v38  ;;  %2056 = vmatpush1.bf16.msra.mxu1 %v5679_v39  ;;  %v5713_v38 = vld [vmem:[#allocation19_spill] sm:$0xff] }
 0x63f   :  { %2016 = vmatprep.subr.bf16.mxu0 %v5680_v42  ;;  %2057 = vmatprep.subr.bf16.mxu1 %v5681_v43 }
 0x642   :  { %2017 = vmatpush1.bf16.msra.mxu0 %v5682_v3  ;;  %2058 = vmatpush1.bf16.msra.mxu1 %v5683_v4  ;;  %v5714_v3 = vld [vmem:[#allocation20_spill] sm:$0xff] }
 0x643   :  { %2018 = vmatprep.subr.bf16.mxu0 %v5684_v63  ;;  %2059 = vmatprep.subr.bf16.mxu1 %v5685_v5 }
 0x646   :  { %2019 = vmatpush1.bf16.msra.mxu0 %v5686_v6  ;;  %2060 = vmatpush1.bf16.msra.mxu1 %v5687_v7 }
 0x647   :  { %2020 = vmatprep.subr.bf16.mxu0 %v5688_v62  ;;  %2061 = vmatprep.subr.bf16.mxu1 %v5689_v59 }
 0x64a   :  { %2021 = vmatpush1.bf16.msra.mxu0 %v5690_v47  ;;  %2062 = vmatpush1.bf16.msra.mxu1 %v5691_v1  ;;  %v5715_v1 = vld [vmem:[#allocation21_spill] sm:$0xff] }
 0x64b   :  { %2022 = vmatprep.subr.bf16.mxu0 %v5692_v52  ;;  %2063 = vmatprep.subr.bf16.mxu1 %v5693_v22 }
 0x64e   :  { %2023 = vmatpush1.bf16.msra.mxu0 %v5694_v53  ;;  %2064 = vmatpush1.bf16.msra.mxu1 %v5695_v58 }
 0x64f   :  { %2024 = vmatprep.subr.bf16.mxu0 %v5696_v19  ;;  %2065 = vmatprep.subr.bf16.mxu1 %v5697_v60 }
 0x652   :  { %2025 = vmatpush1.bf16.msra.mxu0 %v5698_v45  ;;  %2066 = vmatpush1.bf16.msra.mxu1 %v5699_v23 }
 0x653   :  { %2026 = vmatprep.subr.bf16.mxu0 %v5700_v20  ;;  %2067 = vmatprep.subr.bf16.mxu1 %v5701_v21  ;;  %v1876_v20 = vld [vmem:[#allocation6 + $0x50] sm:$0xff]  ;;  %v1877_v21 = vld [vmem:[#allocation6 + $0x58] sm:$0xff] }
 0x656   :  { %2027 = vmatpush1.bf16.msra.mxu0 %v5702_v48  ;;  %2068 = vmatpush1.bf16.msra.mxu1 %v5703_v0  ;;  %v1878_v0 = vunpack.c.l.bf16 %v1876_v20 }
 0x657   :  { %2028 = vmatprep.subr.bf16.mxu0 %v5704_v49  ;;  %2069 = vmatprep.subr.bf16.mxu1 %v5705_v51  ;;  %v1880_v49 = vunpack.c.l.bf16 %v1877_v21 }
 0x65a   :  { %2029 = vmatpush1.bf16.msra.mxu0 %v5706_v46  ;;  %2070 = vmatpush1.bf16.msra.mxu1 %v5707_v50  ;;  %v1879_v46 = vunpack.c.h.bf16 %v1876_v20 }
 0x65b   :  { %2030 = vmatprep.subr.bf16.mxu0 %v5708_v54  ;;  %2071 = vmatprep.subr.bf16.mxu1 %v5709_v8 }
 0x65e   :  { %2031 = vmatpush1.bf16.msra.mxu0 %v5710_v31  ;;  %2072 = vmatpush1.bf16.msra.mxu1 %v5711_v11 }
 0x65f   :  { %2123 = vmatprep.subr.bf16.mxu0 %v4686_v26  ;;  %2164 = vmatprep.subr.bf16.mxu1 %v4689_v12 }
 0x6d4   :  { %v1793_v56 = vpop.f32.mrb[36].mxu0  ;;  %v1834_v35 = vpop.f32.mrb[36].mxu1 }
 0x6d5   :  { %v1794_v37 = vadd.f32 %v1793_v56, %v5712_v36  ;;  %v1835_v39 = vadd.f32 %v1834_v35, %v5713_v38  ;;  %v1795_v42 = vpop.f32.mrb[37].mxu0  ;;  %v1836_v43 = vpop.f32.mrb[37].mxu1 }
 0x6d6   :  { %v1796_v4 = vadd.f32 %v1795_v42, %v5714_v3  ;;  %v1797_v63 = vpop.f32.mrb[38].mxu0  ;;  %v1838_v5 = vpop.f32.mrb[38].mxu1  ;;  %v1837_v52 = vadd.f32 %v1836_v43, %v5715_v1 }
 0x6d7   :  { %v2761_v6 = vmul.f32 -1.442695, %v1794_v37  ;;  %v2763_v7 = vmul.f32 -1.442695, %v1835_v39  ;;  %v1798_v62 = vpop.f32.mrb[39].mxu0  ;;  %v1839_v59 = vpop.f32.mrb[39].mxu1 }
 0x6d8   :  { %v2762_v47 = vmul.f32 -1.442695, %v1796_v4  ;;  %v2764_v45 = vmul.f32 -1.442695, %v1837_v52 }
 0x6d9   :  { %3112 = vpow2.f32 %v2761_v6 }
 0x6da   :  { %3114 = vpow2.f32 %v2763_v7 }
 0x6db   :  { %3116 = vpow2.f32 %v2762_v47 }
 0x6e3   :  { %v3113_v22 = vpop.eup %3112 }
 0x6e4   :  { %v3115_v53 = vpop.eup %3114  ;;  %v1853_v23 = vadd.f32 1.0, %v3113_v22 }
 0x6e5   :  { %v3117_v58 = vpop.eup %3116  ;;  %v1855_v19 = vadd.f32 1.0, %v3115_v53 }
 0x6e6   :  { %v1854_v60 = vadd.f32 1.0, %v3117_v58  ;;  %v1881_v58 = vunpack.c.h.bf16 %v1877_v21 }
 0x6e7   :  { %3118 = vrcp.f32 %v1855_v19 }
 0x6e8   :  { %3120 = vrcp.f32 %v1854_v60 }
 0x6e9   :  { %3122 = vpow2.f32 %v2764_v45 }
 0x6ea   :  { %3124 = vrcp.f32 %v1853_v23 }
 0x6f1   :  { %v3119_v48 = vpop.eup %3118 }
 0x6f2   :  { %v1865_v51 = vmul.f32 2.0, %v3119_v48  ;;  %v3121_v50 = vpop.eup %3120 }
 0x6f3   :  { %v3123_v54 = vpop.eup %3122  ;;  %v1867_v4 = vmul.f32 %v3121_v50, %v4541_v32 }
 0x6f4   :  { %v2765_v8 = vadd.f32 -1.0, %v1865_v51  ;;  %v1916_v31 = vpop.f32.mrb[40].mxu0  ;;  %v1957_v11 = vpop.f32.mrb[40].mxu1  ;;  %v1856_v52 = vadd.f32 1.0, %v3123_v54 }
 0x6f5   :  { %v3125_v56 = vpop.eup %3124  ;;  %v1964_v35 = vadd.f32 %v1916_v31, %v1878_v0  ;;  %v1966_v37 = vadd.f32 %v1957_v11, %v1880_v49  ;;  %v1918_v39 = vpop.f32.mrb[41].mxu0 }
 0x6f6   :  { %v1959_v42 = vpop.f32.mrb[41].mxu1  ;;  %v1868_v43 = vmul.f32 %v3125_v56, %v2765_v8  ;;  %v1965_v63 = vadd.f32 %v1918_v39, %v1879_v46  ;;  %v1920_v5 = vpop.f32.mrb[42].mxu0 }
 0x6f7   :  { %v1961_v6 = vpop.f32.mrb[42].mxu1  ;;  %v2766_v7 = vmul.f32 -1.442695, %v1964_v35  ;;  %v2768_v62 = vmul.f32 -1.442695, %v1966_v37  ;;  %v1921_v59 = vpop.f32.mrb[43].mxu0  ;;  %v1967_v19 = vadd.f32 %v1959_v42, %v1881_v58 }
 0x6f8   :  { %v1962_v47 = vpop.f32.mrb[43].mxu1  ;;  %v2767_v22 = vmul.f32 -1.442695, %v1965_v63  ;;  %v4697_v53 = vadd.f32 %v1868_v43, %v1867_v4  ;;  %v4730_v6 = vld [vmem:[#allocation9 + $0xc4] ss:$16 sps:$4 sm:$0xff]  }
 0x6f9   :  { %3126 = vpow2.f32 %v2766_v7  ;;  %v2769_v45 = vmul.f32 -1.442695, %v1967_v19  ;;  %v4733_v7 = vld [vmem:[#allocation9 + $0xcc] ss:$16 sps:$4 sm:$0xff]   ;;  %v4739_v59 = vld [vmem:[#allocation9 + $0xc8] ss:$16 sps:$4 sm:$0xff]  }
 0x6fa   :  { %3128 = vpow2.f32 %v2768_v62  ;;  %v4736_v62 = vld [vmem:[#allocation9 + $0xc0] ss:$16 sps:$4 sm:$0xff]   ;;  %v4742_v47 = vld [vmem:[#allocation9 + $0xe4] ss:$16 sps:$4 sm:$0xff]   ;;  %v4751_v58 = vld [vmem:[#allocation9 + $0xe8] ss:$16 sps:$4 sm:$0xff]  }
 0x6fb   :  { %3130 = vpow2.f32 %v2767_v22  ;;  %v4748_v22 = vld [vmem:[#allocation9 + $0xe0] ss:$16 sps:$4 sm:$0xff]   ;;  %v4754_v19 = vld [vmem:[#allocation11 + $0x4] ss:$16 sps:$4 sm:$0xff]  }
 0x6fc   :  { %3132 = vrcp.f32 %v1856_v52  ;;  %v4745_v52 = vld [vmem:[#allocation9 + $0xec] ss:$16 sps:$4 sm:$0xff]  }
 0x6fd   :  { %3134 = vtanh.f32 %v4697_v53 }
 0x703   :  { %v3127_v32 = vpop.eup %3126 }
 0x704   :  { %v3129_v60 = vpop.eup %3128  ;;  %v1980_v51 = vadd.f32 1.0, %v3127_v32  ;;  %v4757_v32 = vld [vmem:[#allocation11 + $0xc] ss:$16 sps:$4 sm:$0xff]  }
 0x705   :  { %v3131_v23 = vpop.eup %3130  ;;  %v1982_v20 = vadd.f32 1.0, %v3129_v60  ;;  %v4760_v60 = vld [vmem:[#allocation11] ss:$16 sps:$4 sm:$0xff]  }
 0x706   :  { %v3133_v48 = vpop.eup %3132  ;;  %v1981_v0 = vadd.f32 1.0, %v3131_v23  ;;  %v4766_v23 = vld [vmem:[#allocation11 + $0x24] ss:$16 sps:$4 sm:$0xff]  }
 0x707   :  { %v3135_v49 = vpop.eup %3134  ;;  %3136 = vrcp.f32 %v1982_v20  ;;  %v4769_v20 = vld [vmem:[#allocation11 + $0x2c] ss:$16 sps:$4 sm:$0xff]  }
 0x708   :  { %3138 = vpow2.f32 %v2769_v45  ;;  %v1871_v46 = vmul.f32 %v3135_v49, %v3133_v48  ;;  %v4763_v45 = vld [vmem:[#allocation11 + $0x8] ss:$16 sps:$4 sm:$0xff]   ;;  %5716 = vst [vmem:[#allocation24_spill] sm:$0xff] %v4769_v20  ;;  %v4772_v48 = vld [vmem:[#allocation11 + $0x20] ss:$16 sps:$4 sm:$0xff]  }
 0x709   :  { %3140 = vrcp.f32 %v1981_v0  ;;  %5717 = vst [vmem:[#allocation25_spill] sm:$0xff] %v4772_v48  ;;  %v4775_v0 = vld [vmem:[#allocation11 + $0x28] ss:$16 sps:$4 sm:$0xff]   ;;  %v4778_v49 = vld [vmem:[#allocation11 + $0x44] ss:$16 sps:$4 sm:$0xff]  }
 0x70a   :  { %v1872_v50 = vpack.c.bf16 %v1871_v46, %v1871_v46  ;;  %3142 = vrcp.f32 %v1980_v51  ;;  %5718 = vst [vmem:[#allocation26_spill] sm:$0xff] %v4775_v0  ;;  %5719 = vst [vmem:[#allocation27_spill] sm:$0xff] %v4778_v49  ;;  %v4781_v51 = vld [vmem:[#allocation11 + $0x4c] ss:$16 sps:$4 sm:$0xff]   ;;  %v4784_v46 = vld [vmem:[#allocation11 + $0x40] ss:$16 sps:$4 sm:$0xff]  }
 0x70b   :  { %5720 = vst [vmem:[#allocation28_spill] sm:$0xff] %v4781_v51  ;;  %5721 = vst [vmem:[#allocation29_spill] sm:$0xff] %v4784_v46 }
 0x70c   :  { %1874 = vst [vmem:[#allocation12 + $0x10] sm:$0xf] %v1872_v50  ;;  %2032 = vmatprep.mubr.bf16.mxu0 %v1872_v50  ;;  %2073 = vmatprep.mubr.bf16.mxu1 %v1872_v50  ;;  %v4787_v50 = vld [vmem:[#allocation11 + $0x48] ss:$16 sps:$4 sm:$0xff]  }
 0x70d   :  { %5722 = vst [vmem:[#allocation30_spill] sm:$0xff] %v4787_v50 }
 0x711   :  { %v3137_v21 = vpop.eup %3136 }
 0x712   :  { %v3139_v54 = vpop.eup %3138  ;;  %v1992_v8 = vmul.f32 2.0, %v3137_v21  ;;  %v4790_v21 = vld [vmem:[#allocation11 + $0x64] ss:$16 sps:$4 sm:$0xff]  }
 0x713   :  { %v3141_v31 = vpop.eup %3140  ;;  %v1983_v35 = vadd.f32 1.0, %v3139_v54  ;;  %5723 = vst [vmem:[#allocation31_spill] sm:$0xff] %v4790_v21  ;;  %v4793_v54 = vld [vmem:[#allocation11 + $0x6c] ss:$16 sps:$4 sm:$0xff]  }
 0x714   :  { %v2770_v11 = vadd.f32 -1.0, %v1992_v8  ;;  %v3143_v56 = vpop.eup %3142  ;;  %v1994_v39 = vmul.f32 %v3141_v31, %v4545_v40  ;;  %v4727_v40 = vld [vmem:[#allocation9 + $0xa8] ss:$16 sps:$4 sm:$0xff]   ;;  %5724 = vst [vmem:[#allocation32_spill] sm:$0xff] %v4793_v54  ;;  %v4796_v8 = vld [vmem:[#allocation11 + $0x60] ss:$16 sps:$4 sm:$0xff]  }
 0x715   :  { %3144 = vrcp.f32 %v1983_v35  ;;  %5725 = vst [vmem:[#allocation33_spill] sm:$0xff] %v4796_v8  ;;  %v4799_v31 = vld [vmem:[#allocation11 + $0x68] ss:$16 sps:$4 sm:$0xff]   ;;  %v4808_v35 = vld [vmem:[#allocation11 + $0x80] ss:$16 sps:$4 sm:$0xff]  }
 0x716   :  { %v1995_v37 = vmul.f32 %v3143_v56, %v2770_v11  ;;  %5726 = vst [vmem:[#allocation16_spill] sm:$0xff] %v4799_v31  ;;  %v4802_v11 = vld [vmem:[#allocation11 + $0x84] ss:$16 sps:$4 sm:$0xff]   ;;  %v4805_v56 = vld [vmem:[#allocation11 + $0x8c] ss:$16 sps:$4 sm:$0xff]   ;;  %5729 = vst [vmem:[#allocation35_spill] sm:$0xff] %v4808_v35 }
 0x717   :  { %5727 = vst [vmem:[#allocation17_spill] sm:$0xff] %v4802_v11  ;;  %5728 = vst [vmem:[#allocation34_spill] sm:$0xff] %v4805_v56 }
 0x718   :  { %v4701_v42 = vadd.f32 %v1995_v37, %v1994_v39  ;;  %v4811_v37 = vld [vmem:[#allocation11 + $0x88] ss:$16 sps:$4 sm:$0xff]   ;;  %v4814_v39 = vld [vmem:[#allocation11 + $0xa4] ss:$16 sps:$4 sm:$0xff]  }
 0x719   :  { %5730 = vst [vmem:[#allocation36_spill] sm:$0xff] %v4811_v37  ;;  %5731 = vst [vmem:[#allocation37_spill] sm:$0xff] %v4814_v39 }
 0x71a   :  { %3146 = vtanh.f32 %v4701_v42 }
 0x71f   :  { %v3145_v43 = vpop.eup %3144 }
 0x724   :  { %v3147_v4 = vpop.eup %3146 }
 0x725   :  { %v1998_v63 = vmul.f32 %v3147_v4, %v3145_v43  ;;  %v4817_v43 = vld [vmem:[#allocation11 + $0xac] ss:$16 sps:$4 sm:$0xff]   ;;  %v4820_v4 = vld [vmem:[#allocation11 + $0xa0] ss:$16 sps:$4 sm:$0xff]  }
 0x726   :  { %5732 = vst [vmem:[#allocation38_spill] sm:$0xff] %v4817_v43  ;;  %5733 = vst [vmem:[#allocation39_spill] sm:$0xff] %v4820_v4 }
 0x727   :  { %v1999_v5 = vpack.c.bf16 %v1998_v63, %v1998_v63  ;;  %v4823_v63 = vld [vmem:[#allocation11 + $0xa8] ss:$16 sps:$4 sm:$0xff]  }
 0x728   :  { %5734 = vst [vmem:[#allocation40_spill] sm:$0xff] %v4823_v63 }
 0x729   :  { %2033 = vmatmul.mubr.bf16.vlgmr.msra.gmra.mrb[44].mxu0 %v1999_v5  ;;  %2074 = vmatmul.mubr.bf16.vlgmr.msra.gmra.mrb[44].mxu1 %v1999_v5 }
 0x72a   :  { %2124 = vmatpush1.bf16.msra.mxu0 %v4548_v34  ;;  %2165 = vmatpush1.bf16.msra.mxu1 %v4551_v16 }
 0x72b   :  { %2125 = vmatprep.subr.bf16.mxu0 %v4554_v13  ;;  %2166 = vmatprep.subr.bf16.mxu1 %v4557_v28 }
 0x72c   :  { %2155 = vmatprep.mubr.bf16.mxu0 %v5447_v61  ;;  %2196 = vmatprep.mubr.bf16.mxu1 %v5447_v61 }
 0x72e   :  { %2126 = vmatpush1.bf16.msra.mxu0 %v4562_v9  ;;  %2167 = vmatpush1.bf16.msra.mxu1 %v4565_v33 }
 0x72f   :  { %2127 = vmatprep.subr.bf16.mxu0 %v4568_v27  ;;  %2168 = vmatprep.subr.bf16.mxu1 %v4571_v2 }
 0x732   :  { %2128 = vmatpush1.bf16.msra.mxu0 %v4574_v18  ;;  %2169 = vmatpush1.bf16.msra.mxu1 %v4577_v57 }
 0x733   :  { %2129 = vmatprep.subr.bf16.mxu0 %v4580_v14  ;;  %2170 = vmatprep.subr.bf16.mxu1 %v4583_v55 }
 0x736   :  { %2130 = vmatpush1.bf16.msra.mxu0 %v4586_v44  ;;  %2171 = vmatpush1.bf16.msra.mxu1 %v4589_v29 }
 0x737   :  { %2131 = vmatprep.subr.bf16.mxu0 %v4592_v17  ;;  %2172 = vmatprep.subr.bf16.mxu1 %v4595_v15 }
 0x73a   :  { %2132 = vmatpush1.bf16.msra.mxu0 %v4598_v30  ;;  %2173 = vmatpush1.bf16.msra.mxu1 %v4601_v10 }
 0x73b   :  { %2133 = vmatprep.subr.bf16.mxu0 %v4604_v25  ;;  %2174 = vmatprep.subr.bf16.mxu1 %v4607_v24 }
 0x73e   :  { %2134 = vmatpush1.bf16.msra.mxu0 %v4610_v41  ;;  %2175 = vmatpush1.bf16.msra.mxu1 %v4727_v40 }
 0x73f   :  { %2135 = vmatprep.subr.bf16.mxu0 %v4730_v6  ;;  %2176 = vmatprep.subr.bf16.mxu1 %v4733_v7 }
 0x742   :  { %2136 = vmatpush1.bf16.msra.mxu0 %v4736_v62  ;;  %2177 = vmatpush1.bf16.msra.mxu1 %v4739_v59 }
 0x743   :  { %2137 = vmatprep.subr.bf16.mxu0 %v4742_v47  ;;  %2178 = vmatprep.subr.bf16.mxu1 %v4745_v52 }
 0x746   :  { %2138 = vmatpush1.bf16.msra.mxu0 %v4748_v22  ;;  %2179 = vmatpush1.bf16.msra.mxu1 %v4751_v58 }
 0x747   :  { %2241 = vmatprep.subr.bf16.mxu0 %v4754_v19  ;;  %2282 = vmatprep.subr.bf16.mxu1 %v4757_v32 }
 0x749   :  { %2156 = vmatmul.mubr.bf16.vlgmr.msra.gmra.mrb[48].mxu0 %v1999_v5  ;;  %2197 = vmatmul.mubr.bf16.vlgmr.msra.gmra.mrb[48].mxu1 %v1999_v5  ;;  %v4826_v5 = vld [vmem:[#allocation11 + $0xc4] ss:$16 sps:$4 sm:$0xff]  }
 0x74a   :  { %2242 = vmatpush1.bf16.msra.mxu0 %v4760_v60  ;;  %2283 = vmatpush1.bf16.msra.mxu1 %v4763_v45  ;;  %5735 = vst [vmem:[#allocation41_spill] sm:$0xff] %v4826_v5 }
 0x74b   :  { %2243 = vmatprep.subr.bf16.mxu0 %v4766_v23  ;;  %2284 = vmatprep.subr.bf16.mxu1 %v4769_v20 }
 0x74e   :  { %2244 = vmatpush1.bf16.msra.mxu0 %v4772_v48  ;;  %2285 = vmatpush1.bf16.msra.mxu1 %v4775_v0 }
 0x74f   :  { %2245 = vmatprep.subr.bf16.mxu0 %v4778_v49  ;;  %2286 = vmatprep.subr.bf16.mxu1 %v4781_v51 }
 0x752   :  { %2246 = vmatpush1.bf16.msra.mxu0 %v4784_v46  ;;  %2287 = vmatpush1.bf16.msra.mxu1 %v4787_v50 }
 0x753   :  { %2247 = vmatprep.subr.bf16.mxu0 %v4790_v21  ;;  %2288 = vmatprep.subr.bf16.mxu1 %v4793_v54 }
 0x756   :  { %2248 = vmatpush1.bf16.msra.mxu0 %v4796_v8  ;;  %2289 = vmatpush1.bf16.msra.mxu1 %v4799_v31 }
 0x757   :  { %2249 = vmatprep.subr.bf16.mxu0 %v4802_v11  ;;  %2290 = vmatprep.subr.bf16.mxu1 %v4805_v56 }
 0x75a   :  { %2250 = vmatpush1.bf16.msra.mxu0 %v4808_v35  ;;  %2291 = vmatpush1.bf16.msra.mxu1 %v4811_v37  ;;  %v4829_v37 = vld [vmem:[#allocation11 + $0xcc] ss:$16 sps:$4 sm:$0xff]  }
 0x75b   :  { %2251 = vmatprep.subr.bf16.mxu0 %v4814_v39  ;;  %2292 = vmatprep.subr.bf16.mxu1 %v4817_v43  ;;  %5736 = vst [vmem:[#allocation42_spill] sm:$0xff] %v4829_v37  ;;  %v4832_v39 = vld [vmem:[#allocation11 + $0xc0] ss:$16 sps:$4 sm:$0xff]   ;;  %v4835_v43 = vld [vmem:[#allocation11 + $0xc8] ss:$16 sps:$4 sm:$0xff]  }
 0x75c   :  { %5737 = vst [vmem:[#allocation22_spill] sm:$0xff] %v4832_v39  ;;  %5738 = vst [vmem:[#allocation23_spill] sm:$0xff] %v4835_v43 }
 0x75e   :  { %2252 = vmatpush1.bf16.msra.mxu0 %v4820_v4  ;;  %2293 = vmatpush1.bf16.msra.mxu1 %v4823_v63  ;;  %v4838_v4 = vld [vmem:[#allocation11 + $0xe4] ss:$16 sps:$4 sm:$0xff]   ;;  %v4841_v63 = vld [vmem:[#allocation11 + $0xec] ss:$16 sps:$4 sm:$0xff]  }
 0x75f   :  { %2253 = vmatprep.subr.bf16.mxu0 %v4826_v5  ;;  %2294 = vmatprep.subr.bf16.mxu1 %v4829_v37  ;;  %5739 = vst [vmem:[#allocation43_spill] sm:$0xff] %v4838_v4  ;;  %5740 = vst [vmem:[#allocation44_spill] sm:$0xff] %v4841_v63  ;;  %v4844_v5 = vld [vmem:[#allocation11 + $0xe0] ss:$16 sps:$4 sm:$0xff]   ;;  %v4847_v37 = vld [vmem:[#allocation11 + $0xe8] ss:$16 sps:$4 sm:$0xff]  }
 0x760   :  { %5741 = vst [vmem:[#allocation45_spill] sm:$0xff] %v4844_v5  ;;  %5742 = vst [vmem:[#allocation46_spill] sm:$0xff] %v4847_v37 }
 0x762   :  { %2254 = vmatpush1.bf16.msra.mxu0 %v4832_v39  ;;  %2295 = vmatpush1.bf16.msra.mxu1 %v4835_v43  ;;  %v4850_v39 = vld [vmem:[#allocation11 + $0x104] ss:$16 sps:$4 sm:$0xff]   ;;  %v4853_v43 = vld [vmem:[#allocation11 + $0x10c] ss:$16 sps:$4 sm:$0xff]  }
 0x763   :  { %2255 = vmatprep.subr.bf16.mxu0 %v4838_v4  ;;  %2296 = vmatprep.subr.bf16.mxu1 %v4841_v63  ;;  %5743 = vst [vmem:[#allocation47_spill] sm:$0xff] %v4850_v39  ;;  %5744 = vst [vmem:[#allocation48_spill] sm:$0xff] %v4853_v43  ;;  %v4856_v4 = vld [vmem:[#allocation11 + $0x100] ss:$16 sps:$4 sm:$0xff]   ;;  %v4859_v63 = vld [vmem:[#allocation11 + $0x108] ss:$16 sps:$4 sm:$0xff]  }
 0x764   :  { %5745 = vst [vmem:[#allocation49_spill] sm:$0xff] %v4856_v4  ;;  %5746 = vst [vmem:[#allocation50_spill] sm:$0xff] %v4859_v63 }
 0x766   :  { %2256 = vmatpush1.bf16.msra.mxu0 %v4844_v5  ;;  %2297 = vmatpush1.bf16.msra.mxu1 %v4847_v37  ;;  %v4862_v5 = vld [vmem:[#allocation11 + $0x124] ss:$16 sps:$4 sm:$0xff]   ;;  %v4865_v37 = vld [vmem:[#allocation11 + $0x12c] ss:$16 sps:$4 sm:$0xff]  }
 0x767   :  { %2257 = vmatprep.subr.bf16.mxu0 %v4850_v39  ;;  %2298 = vmatprep.subr.bf16.mxu1 %v4853_v43  ;;  %5747 = vst [vmem:[#allocation51_spill] sm:$0xff] %v4862_v5  ;;  %5748 = vst [vmem:[#allocation52_spill] sm:$0xff] %v4865_v37  ;;  %v4868_v39 = vld [vmem:[#allocation11 + $0x120] ss:$16 sps:$4 sm:$0xff]   ;;  %v4871_v43 = vld [vmem:[#allocation11 + $0x128] ss:$16 sps:$4 sm:$0xff]  }
 0x768   :  { %5749 = vst [vmem:[#allocation53_spill] sm:$0xff] %v4868_v39  ;;  %5750 = vst [vmem:[#allocation54_spill] sm:$0xff] %v4871_v43 }
 0x76a   :  { %2258 = vmatpush1.bf16.msra.mxu0 %v4856_v4  ;;  %2299 = vmatpush1.bf16.msra.mxu1 %v4859_v63  ;;  %v4874_v4 = vld [vmem:[#allocation11 + $0x144] ss:$16 sps:$4 sm:$0xff]   ;;  %v4877_v63 = vld [vmem:[#allocation11 + $0x14c] ss:$16 sps:$4 sm:$0xff]  }
 0x76b   :  { %2259 = vmatprep.subr.bf16.mxu0 %v4862_v5  ;;  %2300 = vmatprep.subr.bf16.mxu1 %v4865_v37  ;;  %5751 = vst [vmem:[#allocation55_spill] sm:$0xff] %v4874_v4  ;;  %5752 = vst [vmem:[#allocation56_spill] sm:$0xff] %v4877_v63  ;;  %v4880_v5 = vld [vmem:[#allocation11 + $0x140] ss:$16 sps:$4 sm:$0xff]   ;;  %v4883_v37 = vld [vmem:[#allocation11 + $0x148] ss:$16 sps:$4 sm:$0xff]  }
 0x76c   :  { %5753 = vst [vmem:[#allocation57_spill] sm:$0xff] %v4880_v5  ;;  %5754 = vst [vmem:[#allocation58_spill] sm:$0xff] %v4883_v37 }
 0x76e   :  { %2260 = vmatpush1.bf16.msra.mxu0 %v4868_v39  ;;  %2301 = vmatpush1.bf16.msra.mxu1 %v4871_v43  ;;  %v4886_v39 = vld [vmem:[#allocation11 + $0x164] ss:$16 sps:$4 sm:$0xff]   ;;  %v4889_v43 = vld [vmem:[#allocation11 + $0x16c] ss:$16 sps:$4 sm:$0xff]  }
 0x76f   :  { %2261 = vmatprep.subr.bf16.mxu0 %v4874_v4  ;;  %2302 = vmatprep.subr.bf16.mxu1 %v4877_v63  ;;  %5755 = vst [vmem:[#allocation59_spill] sm:$0xff] %v4886_v39  ;;  %5756 = vst [vmem:[#allocation60_spill] sm:$0xff] %v4889_v43  ;;  %v4892_v4 = vld [vmem:[#allocation11 + $0x160] ss:$16 sps:$4 sm:$0xff]   ;;  %v4895_v63 = vld [vmem:[#allocation11 + $0x168] ss:$16 sps:$4 sm:$0xff]  }
 0x770   :  { %5757 = vst [vmem:[#allocation61_spill] sm:$0xff] %v4892_v4  ;;  %5758 = vst [vmem:[#allocation62_spill] sm:$0xff] %v4895_v63 }
 0x772   :  { %2262 = vmatpush1.bf16.msra.mxu0 %v4880_v5  ;;  %2303 = vmatpush1.bf16.msra.mxu1 %v4883_v37  ;;  %v4898_v5 = vld [vmem:[#allocation11 + $0x184] ss:$16 sps:$4 sm:$0xff]   ;;  %v4901_v37 = vld [vmem:[#allocation11 + $0x18c] ss:$16 sps:$4 sm:$0xff]  }
 0x773   :  { %2263 = vmatprep.subr.bf16.mxu0 %v4886_v39  ;;  %2304 = vmatprep.subr.bf16.mxu1 %v4889_v43  ;;  %5759 = vst [vmem:[#allocation63_spill] sm:$0xff] %v4898_v5  ;;  %5760 = vst [vmem:[#allocation64_spill] sm:$0xff] %v4901_v37  ;;  %v4904_v39 = vld [vmem:[#allocation11 + $0x180] ss:$16 sps:$4 sm:$0xff]   ;;  %v4907_v43 = vld [vmem:[#allocation11 + $0x188] ss:$16 sps:$4 sm:$0xff]  }
 0x774   :  { %5761 = vst [vmem:[#allocation65_spill] sm:$0xff] %v4904_v39  ;;  %5762 = vst [vmem:[#allocation66_spill] sm:$0xff] %v4907_v43 }
 0x776   :  { %2264 = vmatpush1.bf16.msra.mxu0 %v4892_v4  ;;  %2305 = vmatpush1.bf16.msra.mxu1 %v4895_v63  ;;  %v4910_v4 = vld [vmem:[#allocation11 + $0x1a4] ss:$16 sps:$4 sm:$0xff]   ;;  %v4913_v63 = vld [vmem:[#allocation11 + $0x1ac] ss:$16 sps:$4 sm:$0xff]  }
 0x777   :  { %2265 = vmatprep.subr.bf16.mxu0 %v4898_v5  ;;  %2306 = vmatprep.subr.bf16.mxu1 %v4901_v37  ;;  %5763 = vst [vmem:[#allocation67_spill] sm:$0xff] %v4910_v4  ;;  %5764 = vst [vmem:[#allocation68_spill] sm:$0xff] %v4913_v63  ;;  %v4916_v5 = vld [vmem:[#allocation11 + $0x1a0] ss:$16 sps:$4 sm:$0xff]   ;;  %v4919_v37 = vld [vmem:[#allocation11 + $0x1a8] ss:$16 sps:$4 sm:$0xff]  }
 0x778   :  { %5765 = vst [vmem:[#allocation69_spill] sm:$0xff] %v4916_v5  ;;  %5766 = vst [vmem:[#allocation70_spill] sm:$0xff] %v4919_v37 }
 0x77a   :  { %2266 = vmatpush1.bf16.msra.mxu0 %v4904_v39  ;;  %2307 = vmatpush1.bf16.msra.mxu1 %v4907_v43  ;;  %v4922_v39 = vld [vmem:[#allocation11 + $0x1c4] ss:$16 sps:$4 sm:$0xff]   ;;  %v4925_v43 = vld [vmem:[#allocation11 + $0x1cc] ss:$16 sps:$4 sm:$0xff]  }
 0x77b   :  { %2267 = vmatprep.subr.bf16.mxu0 %v4910_v4  ;;  %2308 = vmatprep.subr.bf16.mxu1 %v4913_v63  ;;  %5767 = vst [vmem:[#allocation71_spill] sm:$0xff] %v4922_v39  ;;  %5768 = vst [vmem:[#allocation72_spill] sm:$0xff] %v4925_v43  ;;  %v4928_v4 = vld [vmem:[#allocation11 + $0x1c0] ss:$16 sps:$4 sm:$0xff]   ;;  %v4931_v63 = vld [vmem:[#allocation11 + $0x1c8] ss:$16 sps:$4 sm:$0xff]  }
 0x77c   :  { %5769 = vst [vmem:[#allocation73_spill] sm:$0xff] %v4928_v4  ;;  %5770 = vst [vmem:[#allocation74_spill] sm:$0xff] %v4931_v63 }
 0x77e   :  { %2268 = vmatpush1.bf16.msra.mxu0 %v4916_v5  ;;  %2309 = vmatpush1.bf16.msra.mxu1 %v4919_v37  ;;  %v4934_v5 = vld [vmem:[#allocation11 + $0x1e4] ss:$16 sps:$4 sm:$0xff]   ;;  %v4937_v37 = vld [vmem:[#allocation11 + $0x1ec] ss:$16 sps:$4 sm:$0xff]  }
 0x77f   :  { %2269 = vmatprep.subr.bf16.mxu0 %v4922_v39  ;;  %2310 = vmatprep.subr.bf16.mxu1 %v4925_v43  ;;  %5771 = vst [vmem:[#allocation75_spill] sm:$0xff] %v4934_v5  ;;  %5772 = vst [vmem:[#allocation76_spill] sm:$0xff] %v4937_v37  ;;  %v4940_v39 = vld [vmem:[#allocation11 + $0x1e0] ss:$16 sps:$4 sm:$0xff]   ;;  %v4943_v43 = vld [vmem:[#allocation11 + $0x1e8] ss:$16 sps:$4 sm:$0xff]  }
 0x780   :  { %5773 = vst [vmem:[#allocation77_spill] sm:$0xff] %v4940_v39  ;;  %5774 = vst [vmem:[#allocation78_spill] sm:$0xff] %v4943_v43 }
 0x782   :  { %2270 = vmatpush1.bf16.msra.mxu0 %v4928_v4  ;;  %2311 = vmatpush1.bf16.msra.mxu1 %v4931_v63 }
 0x783   :  { %2271 = vmatprep.subr.bf16.mxu0 %v4934_v5  ;;  %2312 = vmatprep.subr.bf16.mxu1 %v4937_v37 }
 0x786   :  { %2272 = vmatpush1.bf16.msra.mxu0 %v4940_v39  ;;  %2313 = vmatpush1.bf16.msra.mxu1 %v4943_v43 }
 0x787   :  { %2364 = vmatprep.subr.bf16.mxu0 %v4686_v26  ;;  %2405 = vmatprep.subr.bf16.mxu1 %v4689_v12 }
 0x7fc   :  { %v2034_v63 = vpop.f32.mrb[44].mxu0  ;;  %v2075_v4 = vpop.f32.mrb[44].mxu1 }
 0x7fd   :  { %v2035_v5 = vadd.f32 %v2034_v63, %v5712_v36  ;;  %v2076_v35 = vadd.f32 %v2075_v4, %v5713_v38  ;;  %v2036_v56 = vpop.f32.mrb[45].mxu0  ;;  %v2077_v37 = vpop.f32.mrb[45].mxu1 }
 0x7fe   :  { %v2037_v11 = vadd.f32 %v2036_v56, %v5714_v3  ;;  %v2038_v31 = vpop.f32.mrb[46].mxu0  ;;  %v2079_v39 = vpop.f32.mrb[46].mxu1  ;;  %v2078_v26 = vadd.f32 %v2077_v37, %v5715_v1 }
 0x7ff   :  { %v2771_v8 = vmul.f32 -1.442695, %v2035_v5  ;;  %v2773_v54 = vmul.f32 -1.442695, %v2076_v35  ;;  %v2039_v21 = vpop.f32.mrb[47].mxu0  ;;  %v2080_v43 = vpop.f32.mrb[47].mxu1 }
 0x800   :  { %v2772_v50 = vmul.f32 -1.442695, %v2037_v11  ;;  %v2774_v46 = vmul.f32 -1.442695, %v2078_v26  ;;  %v2117_v31 = vld [vmem:[#allocation6 + $0x60] sm:$0xff]  ;;  %v2118_v21 = vld [vmem:[#allocation6 + $0x68] sm:$0xff] }
 0x801   :  { %3148 = vpow2.f32 %v2771_v8  ;;  %v2119_v11 = vunpack.c.l.bf16 %v2117_v31  ;;  %v2121_v8 = vunpack.c.l.bf16 %v2118_v21 }
 0x802   :  { %3150 = vpow2.f32 %v2773_v54 }
 0x803   :  { %3152 = vpow2.f32 %v2772_v50  ;;  %v2120_v50 = vunpack.c.h.bf16 %v2117_v31 }
 0x80b   :  { %v3149_v12 = vpop.eup %3148 }
 0x80c   :  { %v3151_v63 = vpop.eup %3150  ;;  %v2094_v51 = vadd.f32 1.0, %v3149_v12 }
 0x80d   :  { %v3153_v36 = vpop.eup %3152  ;;  %v2096_v4 = vadd.f32 1.0, %v3151_v63 }
 0x80e   :  { %v2095_v38 = vadd.f32 1.0, %v3153_v36 }
 0x80f   :  { %3154 = vrcp.f32 %v2096_v4 }
 0x810   :  { %3156 = vrcp.f32 %v2095_v38 }
 0x811   :  { %3158 = vpow2.f32 %v2774_v46 }
 0x812   :  { %3160 = vrcp.f32 %v2094_v51 }
 0x819   :  { %v3155_v56 = vpop.eup %3154 }
 0x81a   :  { %v2106_v54 = vmul.f32 2.0, %v3155_v56  ;;  %v3157_v35 = vpop.eup %3156 }
 0x81b   :  { %v3159_v37 = vpop.eup %3158  ;;  %v2108_v51 = vmul.f32 %v3157_v35, %v4697_v53 }
 0x81c   :  { %v2775_v39 = vadd.f32 -1.0, %v2106_v54  ;;  %v2157_v43 = vpop.f32.mrb[48].mxu0  ;;  %v2198_v5 = vpop.f32.mrb[48].mxu1  ;;  %v2097_v48 = vadd.f32 1.0, %v3159_v37 }
 0x81d   :  { %v3161_v63 = vpop.eup %3160  ;;  %v2205_v36 = vadd.f32 %v2157_v43, %v2119_v11  ;;  %v2207_v26 = vadd.f32 %v2198_v5, %v2121_v8  ;;  %v2159_v12 = vpop.f32.mrb[49].mxu0  ;;  %v2122_v11 = vunpack.c.h.bf16 %v2118_v21 }
 0x81e   :  { %v2200_v4 = vpop.f32.mrb[49].mxu1  ;;  %v2109_v38 = vmul.f32 %v3161_v63, %v2775_v39  ;;  %v2206_v46 = vadd.f32 %v2159_v12, %v2120_v50  ;;  %v2161_v1 = vpop.f32.mrb[50].mxu0 }
 0x81f   :  { %v2202_v3 = vpop.f32.mrb[50].mxu1  ;;  %v2776_v49 = vmul.f32 -1.442695, %v2205_v36  ;;  %v2778_v0 = vmul.f32 -1.442695, %v2207_v26  ;;  %v2162_v56 = vpop.f32.mrb[51].mxu0  ;;  %v2208_v8 = vadd.f32 %v2200_v4, %v2122_v11 }
 0x820   :  { %v2203_v31 = vpop.f32.mrb[51].mxu1  ;;  %v2777_v20 = vmul.f32 -1.442695, %v2206_v46  ;;  %v4953_v54 = vadd.f32 %v2109_v38, %v2108_v51 }
 0x821   :  { %3162 = vpow2.f32 %v2776_v49  ;;  %v2779_v1 = vmul.f32 -1.442695, %v2208_v8  ;;  %v5812_v8 = vld [vmem:[#allocation57_spill] sm:$0xff] }
 0x822   :  { %3164 = vpow2.f32 %v2778_v0 }
 0x823   :  { %3166 = vpow2.f32 %v2777_v20 }
 0x824   :  { %3168 = vrcp.f32 %v2097_v48 }
 0x825   :  { %3170 = vtanh.f32 %v4953_v54 }
 0x82b   :  { %v3163_v53 = vpop.eup %3162 }
 0x82c   :  { %v3165_v50 = vpop.eup %3164  ;;  %v2221_v37 = vadd.f32 1.0, %v3163_v53  ;;  %v5813_v53 = vld [vmem:[#allocation58_spill] sm:$0xff] }
 0x82d   :  { %v3167_v3 = vpop.eup %3166  ;;  %v2223_v35 = vadd.f32 1.0, %v3165_v50  ;;  %v5814_v50 = vld [vmem:[#allocation59_spill] sm:$0xff] }
 0x82e   :  { %v3169_v39 = vpop.eup %3168  ;;  %v2222_v43 = vadd.f32 1.0, %v3167_v3  ;;  %v5816_v3 = vld [vmem:[#allocation61_spill] sm:$0xff] }
 0x82f   :  { %v3171_v5 = vpop.eup %3170  ;;  %3172 = vrcp.f32 %v2223_v35  ;;  %v5817_v35 = vld [vmem:[#allocation62_spill] sm:$0xff] }
 0x830   :  { %3174 = vpow2.f32 %v2779_v1  ;;  %v2112_v63 = vmul.f32 %v3171_v5, %v3169_v39  ;;  %v5815_v1 = vld [vmem:[#allocation60_spill] sm:$0xff]  ;;  %v5818_v39 = vld [vmem:[#allocation63_spill] sm:$0xff]  ;;  %v5820_v5 = vld [vmem:[#allocation65_spill] sm:$0xff] }
 0x831   :  { %3176 = vrcp.f32 %v2222_v43  ;;  %v5819_v43 = vld [vmem:[#allocation64_spill] sm:$0xff] }
 0x832   :  { %v2113_v0 = vpack.c.bf16 %v2112_v63, %v2112_v63  ;;  %3178 = vrcp.f32 %v2221_v37  ;;  %v5821_v37 = vld [vmem:[#allocation66_spill] sm:$0xff]  ;;  %v5822_v63 = vld [vmem:[#allocation67_spill] sm:$0xff] }
 0x834   :  { %2115 = vst [vmem:[#allocation12 + $0x14] sm:$0xf] %v2113_v0  ;;  %2273 = vmatprep.mubr.bf16.mxu0 %v2113_v0  ;;  %2314 = vmatprep.mubr.bf16.mxu1 %v2113_v0  ;;  %v5823_v0 = vld [vmem:[#allocation68_spill] sm:$0xff] }
 0x839   :  { %v3173_v20 = vpop.eup %3172 }
 0x83a   :  { %v3175_v48 = vpop.eup %3174  ;;  %v2233_v49 = vmul.f32 2.0, %v3173_v20  ;;  %v5824_v20 = vld [vmem:[#allocation69_spill] sm:$0xff] }
 0x83b   :  { %v3177_v21 = vpop.eup %3176  ;;  %v2224_v12 = vadd.f32 1.0, %v3175_v48  ;;  %v5825_v48 = vld [vmem:[#allocation70_spill] sm:$0xff] }
 0x83c   :  { %v2780_v36 = vadd.f32 -1.0, %v2233_v49  ;;  %v3179_v26 = vpop.eup %3178  ;;  %v2235_v38 = vmul.f32 %v3177_v21, %v4701_v42  ;;  %v5797_v42 = vld [vmem:[#allocation23_spill] sm:$0xff]  ;;  %v5827_v21 = vld [vmem:[#allocation72_spill] sm:$0xff] }
 0x83d   :  { %3180 = vrcp.f32 %v2224_v12  ;;  %v5826_v49 = vld [vmem:[#allocation71_spill] sm:$0xff] }
 0x83e   :  { %v2236_v4 = vmul.f32 %v3179_v26, %v2780_v36  ;;  %v5828_v36 = vld [vmem:[#allocation73_spill] sm:$0xff]  ;;  %v5829_v26 = vld [vmem:[#allocation74_spill] sm:$0xff]  ;;  %v5830_v12 = vld [vmem:[#allocation75_spill] sm:$0xff] }
 0x840   :  { %v4957_v51 = vadd.f32 %v2236_v4, %v2235_v38  ;;  %v5831_v4 = vld [vmem:[#allocation76_spill] sm:$0xff]  ;;  %v5832_v38 = vld [vmem:[#allocation77_spill] sm:$0xff] }
 0x842   :  { %3182 = vtanh.f32 %v4957_v51 }
 0x847   :  { %v3181_v46 = vpop.eup %3180 }
 0x84c   :  { %v3183_v56 = vpop.eup %3182 }
 0x84d   :  { %v2239_v31 = vmul.f32 %v3183_v56, %v3181_v46  ;;  %v5833_v46 = vld [vmem:[#allocation78_spill] sm:$0xff] }
 0x84f   :  { %v2240_v11 = vpack.c.bf16 %v2239_v31, %v2239_v31 }
 0x851   :  { %2274 = vmatmul.mubr.bf16.vlgmr.msra.gmra.mrb[52].mxu0 %v2240_v11  ;;  %2315 = vmatmul.mubr.bf16.vlgmr.msra.gmra.mrb[52].mxu1 %v2240_v11 }
 0x852   :  { %2365 = vmatpush1.bf16.msra.mxu0 %v4548_v34  ;;  %2406 = vmatpush1.bf16.msra.mxu1 %v4551_v16  ;;  %v5776_v34 = vld [vmem:[#allocation25_spill] sm:$0xff]  ;;  %v5777_v16 = vld [vmem:[#allocation26_spill] sm:$0xff] }
 0x853   :  { %2366 = vmatprep.subr.bf16.mxu0 %v4554_v13  ;;  %2407 = vmatprep.subr.bf16.mxu1 %v4557_v28  ;;  %v5778_v13 = vld [vmem:[#allocation27_spill] sm:$0xff]  ;;  %v5779_v28 = vld [vmem:[#allocation28_spill] sm:$0xff] }
 0x854   :  { %2396 = vmatprep.mubr.bf16.mxu0 %v5447_v61  ;;  %2437 = vmatprep.mubr.bf16.mxu1 %v5447_v61  ;;  %v5775_v61 = vld [vmem:[#allocation24_spill] sm:$0xff] }
 0x856   :  { %2367 = vmatpush1.bf16.msra.mxu0 %v4562_v9  ;;  %2408 = vmatpush1.bf16.msra.mxu1 %v4565_v33  ;;  %v5780_v9 = vld [vmem:[#allocation29_spill] sm:$0xff]  ;;  %v5781_v33 = vld [vmem:[#allocation30_spill] sm:$0xff] }
 0x857   :  { %2368 = vmatprep.subr.bf16.mxu0 %v4568_v27  ;;  %2409 = vmatprep.subr.bf16.mxu1 %v4571_v2  ;;  %v5782_v27 = vld [vmem:[#allocation31_spill] sm:$0xff]  ;;  %v5783_v2 = vld [vmem:[#allocation32_spill] sm:$0xff] }
 0x85a   :  { %2369 = vmatpush1.bf16.msra.mxu0 %v4574_v18  ;;  %2410 = vmatpush1.bf16.msra.mxu1 %v4577_v57  ;;  %v5784_v18 = vld [vmem:[#allocation33_spill] sm:$0xff]  ;;  %v5785_v57 = vld [vmem:[#allocation16_spill] sm:$0xff] }
 0x85b   :  { %2370 = vmatprep.subr.bf16.mxu0 %v4580_v14  ;;  %2411 = vmatprep.subr.bf16.mxu1 %v4583_v55  ;;  %v5786_v14 = vld [vmem:[#allocation17_spill] sm:$0xff]  ;;  %v5787_v55 = vld [vmem:[#allocation34_spill] sm:$0xff] }
 0x85e   :  { %2371 = vmatpush1.bf16.msra.mxu0 %v4586_v44  ;;  %2412 = vmatpush1.bf16.msra.mxu1 %v4589_v29  ;;  %v5788_v44 = vld [vmem:[#allocation35_spill] sm:$0xff]  ;;  %v5789_v29 = vld [vmem:[#allocation36_spill] sm:$0xff] }
 0x85f   :  { %2372 = vmatprep.subr.bf16.mxu0 %v4592_v17  ;;  %2413 = vmatprep.subr.bf16.mxu1 %v4595_v15  ;;  %v5790_v17 = vld [vmem:[#allocation37_spill] sm:$0xff]  ;;  %v5791_v15 = vld [vmem:[#allocation38_spill] sm:$0xff] }
 0x862   :  { %2373 = vmatpush1.bf16.msra.mxu0 %v4598_v30  ;;  %2414 = vmatpush1.bf16.msra.mxu1 %v4601_v10  ;;  %v5792_v30 = vld [vmem:[#allocation39_spill] sm:$0xff]  ;;  %v5793_v10 = vld [vmem:[#allocation40_spill] sm:$0xff] }
 0x863   :  { %2374 = vmatprep.subr.bf16.mxu0 %v4604_v25  ;;  %2415 = vmatprep.subr.bf16.mxu1 %v4607_v24  ;;  %v5794_v25 = vld [vmem:[#allocation41_spill] sm:$0xff]  ;;  %v5795_v24 = vld [vmem:[#allocation42_spill] sm:$0xff] }
 0x866   :  { %2375 = vmatpush1.bf16.msra.mxu0 %v4610_v41  ;;  %2416 = vmatpush1.bf16.msra.mxu1 %v4727_v40  ;;  %v5796_v41 = vld [vmem:[#allocation22_spill] sm:$0xff]  ;;  %v5798_v40 = vld [vmem:[#allocation43_spill] sm:$0xff] }
 0x867   :  { %2376 = vmatprep.subr.bf16.mxu0 %v4730_v6  ;;  %2417 = vmatprep.subr.bf16.mxu1 %v4733_v7  ;;  %v5799_v6 = vld [vmem:[#allocation44_spill] sm:$0xff]  ;;  %v5800_v7 = vld [vmem:[#allocation45_spill] sm:$0xff] }
 0x86a   :  { %2377 = vmatpush1.bf16.msra.mxu0 %v4736_v62  ;;  %2418 = vmatpush1.bf16.msra.mxu1 %v4739_v59  ;;  %v5801_v62 = vld [vmem:[#allocation46_spill] sm:$0xff]  ;;  %v5802_v59 = vld [vmem:[#allocation47_spill] sm:$0xff] }
 0x86b   :  { %2378 = vmatprep.subr.bf16.mxu0 %v4742_v47  ;;  %2419 = vmatprep.subr.bf16.mxu1 %v4745_v52  ;;  %v5803_v47 = vld [vmem:[#allocation48_spill] sm:$0xff]  ;;  %v5804_v52 = vld [vmem:[#allocation49_spill] sm:$0xff] }
 0x86e   :  { %2379 = vmatpush1.bf16.msra.mxu0 %v4748_v22  ;;  %2420 = vmatpush1.bf16.msra.mxu1 %v4751_v58  ;;  %v5805_v22 = vld [vmem:[#allocation50_spill] sm:$0xff]  ;;  %v5806_v58 = vld [vmem:[#allocation51_spill] sm:$0xff] }
 0x86f   :  { %2482 = vmatprep.subr.bf16.mxu0 %v4754_v19  ;;  %2523 = vmatprep.subr.bf16.mxu1 %v4757_v32  ;;  %v5807_v19 = vld [vmem:[#allocation52_spill] sm:$0xff]  ;;  %v5808_v32 = vld [vmem:[#allocation53_spill] sm:$0xff] }
 0x871   :  { %2397 = vmatmul.mubr.bf16.vlgmr.msra.gmra.mrb[56].mxu0 %v2240_v11  ;;  %2438 = vmatmul.mubr.bf16.vlgmr.msra.gmra.mrb[56].mxu1 %v2240_v11  ;;  %v5834_v11 = vld [vmem:[#allocation18_spill] sm:$0xff] }
 0x872   :  { %2483 = vmatpush1.bf16.msra.mxu0 %v4760_v60  ;;  %2524 = vmatpush1.bf16.msra.mxu1 %v4763_v45  ;;  %v5809_v60 = vld [vmem:[#allocation54_spill] sm:$0xff]  ;;  %v5810_v45 = vld [vmem:[#allocation55_spill] sm:$0xff] }
 0x873   :  { %2484 = vmatprep.subr.bf16.mxu0 %v4766_v23  ;;  %2525 = vmatprep.subr.bf16.mxu1 %v5775_v61  ;;  %v5811_v23 = vld [vmem:[#allocation56_spill] sm:$0xff] }
 0x876   :  { %2485 = vmatpush1.bf16.msra.mxu0 %v5776_v34  ;;  %2526 = vmatpush1.bf16.msra.mxu1 %v5777_v16  ;;  %v5835_v34 = vld [vmem:[#allocation19_spill] sm:$0xff] }
 0x877   :  { %2486 = vmatprep.subr.bf16.mxu0 %v5778_v13  ;;  %2527 = vmatprep.subr.bf16.mxu1 %v5779_v28 }
 0x87a   :  { %2487 = vmatpush1.bf16.msra.mxu0 %v5780_v9  ;;  %2528 = vmatpush1.bf16.msra.mxu1 %v5781_v33  ;;  %v5836_v9 = vld [vmem:[#allocation20_spill] sm:$0xff] }
 0x87b   :  { %2488 = vmatprep.subr.bf16.mxu0 %v5782_v27  ;;  %2529 = vmatprep.subr.bf16.mxu1 %v5783_v2 }
 0x87e   :  { %2489 = vmatpush1.bf16.msra.mxu0 %v5784_v18  ;;  %2530 = vmatpush1.bf16.msra.mxu1 %v5785_v57 }
 0x87f   :  { %2490 = vmatprep.subr.bf16.mxu0 %v5786_v14  ;;  %2531 = vmatprep.subr.bf16.mxu1 %v5787_v55 }
 0x882   :  { %2491 = vmatpush1.bf16.msra.mxu0 %v5788_v44  ;;  %2532 = vmatpush1.bf16.msra.mxu1 %v5789_v29  ;;  %v5837_v29 = vld [vmem:[#allocation21_spill] sm:$0xff] }
 0x883   :  { %2492 = vmatprep.subr.bf16.mxu0 %v5790_v17  ;;  %2533 = vmatprep.subr.bf16.mxu1 %v5791_v15 }
 0x886   :  { %2493 = vmatpush1.bf16.msra.mxu0 %v5792_v30  ;;  %2534 = vmatpush1.bf16.msra.mxu1 %v5793_v10 }
 0x887   :  { %2494 = vmatprep.subr.bf16.mxu0 %v5794_v25  ;;  %2535 = vmatprep.subr.bf16.mxu1 %v5795_v24 }
 0x88a   :  { %2495 = vmatpush1.bf16.msra.mxu0 %v5796_v41  ;;  %2536 = vmatpush1.bf16.msra.mxu1 %v5797_v42 }
 0x88b   :  { %2496 = vmatprep.subr.bf16.mxu0 %v5798_v40  ;;  %2537 = vmatprep.subr.bf16.mxu1 %v5799_v6  ;;  %v2358_v40 = vld [vmem:[#allocation6 + $0x70] sm:$0xff]  ;;  %v2359_v6 = vld [vmem:[#allocation6 + $0x78] sm:$0xff] }
 0x88e   :  { %2497 = vmatpush1.bf16.msra.mxu0 %v5800_v7  ;;  %2538 = vmatpush1.bf16.msra.mxu1 %v5801_v62  ;;  %v2360_v62 = vunpack.c.l.bf16 %v2358_v40 }
 0x88f   :  { %2498 = vmatprep.subr.bf16.mxu0 %v5802_v59  ;;  %2539 = vmatprep.subr.bf16.mxu1 %v5803_v47  ;;  %v2362_v59 = vunpack.c.l.bf16 %v2359_v6 }
 0x892   :  { %2499 = vmatpush1.bf16.msra.mxu0 %v5804_v52  ;;  %2540 = vmatpush1.bf16.msra.mxu1 %v5805_v22  ;;  %v2361_v52 = vunpack.c.h.bf16 %v2358_v40 }
 0x893   :  { %2500 = vmatprep.subr.bf16.mxu0 %v5806_v58  ;;  %2541 = vmatprep.subr.bf16.mxu1 %v5807_v19 }
 0x896   :  { %2501 = vmatpush1.bf16.msra.mxu0 %v5808_v32  ;;  %2542 = vmatpush1.bf16.msra.mxu1 %v5809_v60 }
 0x897   :  { %2502 = vmatprep.subr.bf16.mxu0 %v5810_v45  ;;  %2543 = vmatprep.subr.bf16.mxu1 %v5811_v23 }
 0x89a   :  { %2503 = vmatpush1.bf16.msra.mxu0 %v5812_v8  ;;  %2544 = vmatpush1.bf16.msra.mxu1 %v5813_v53 }
 0x89b   :  { %2504 = vmatprep.subr.bf16.mxu0 %v5814_v50  ;;  %2545 = vmatprep.subr.bf16.mxu1 %v5815_v1 }
 0x89e   :  { %2505 = vmatpush1.bf16.msra.mxu0 %v5816_v3  ;;  %2546 = vmatpush1.bf16.msra.mxu1 %v5817_v35 }
 0x89f   :  { %2506 = vmatprep.subr.bf16.mxu0 %v5818_v39  ;;  %2547 = vmatprep.subr.bf16.mxu1 %v5819_v43 }
 0x8a2   :  { %2507 = vmatpush1.bf16.msra.mxu0 %v5820_v5  ;;  %2548 = vmatpush1.bf16.msra.mxu1 %v5821_v37 }
 0x8a3   :  { %2508 = vmatprep.subr.bf16.mxu0 %v5822_v63  ;;  %2549 = vmatprep.subr.bf16.mxu1 %v5823_v0 }
 0x8a6   :  { %2509 = vmatpush1.bf16.msra.mxu0 %v5824_v20  ;;  %2550 = vmatpush1.bf16.msra.mxu1 %v5825_v48 }
 0x8a7   :  { %2510 = vmatprep.subr.bf16.mxu0 %v5826_v49  ;;  %2551 = vmatprep.subr.bf16.mxu1 %v5827_v21  ;;  %v2363_v21 = vunpack.c.h.bf16 %v2359_v6 }
 0x8aa   :  { %2511 = vmatpush1.bf16.msra.mxu0 %v5828_v36  ;;  %2552 = vmatpush1.bf16.msra.mxu1 %v5829_v26 }
 0x8ab   :  { %2512 = vmatprep.subr.bf16.mxu0 %v5830_v12  ;;  %2553 = vmatprep.subr.bf16.mxu1 %v5831_v4 }
 0x8ae   :  { %2513 = vmatpush1.bf16.msra.mxu0 %v5832_v38  ;;  %2554 = vmatpush1.bf16.msra.mxu1 %v5833_v46 }
 0x924   :  { %v2275_v56 = vpop.f32.mrb[52].mxu0  ;;  %v2316_v31 = vpop.f32.mrb[52].mxu1 }
 0x925   :  { %v2276_v61 = vadd.f32 %v2275_v56, %v5834_v11  ;;  %v2317_v16 = vadd.f32 %v2316_v31, %v5835_v34  ;;  %v2277_v13 = vpop.f32.mrb[53].mxu0  ;;  %v2318_v28 = vpop.f32.mrb[53].mxu1 }
 0x926   :  { %v2278_v33 = vadd.f32 %v2277_v13, %v5836_v9  ;;  %v2279_v27 = vpop.f32.mrb[54].mxu0  ;;  %v2320_v2 = vpop.f32.mrb[54].mxu1  ;;  %v2319_v17 = vadd.f32 %v2318_v28, %v5837_v29 }
 0x927   :  { %v2781_v18 = vmul.f32 -1.442695, %v2276_v61  ;;  %v2783_v57 = vmul.f32 -1.442695, %v2317_v16  ;;  %v2280_v14 = vpop.f32.mrb[55].mxu0  ;;  %v2321_v55 = vpop.f32.mrb[55].mxu1 }
 0x928   :  { %v2782_v44 = vmul.f32 -1.442695, %v2278_v33  ;;  %v2784_v41 = vmul.f32 -1.442695, %v2319_v17 }
 0x929   :  { %3184 = vpow2.f32 %v2781_v18 }
 0x92a   :  { %3186 = vpow2.f32 %v2783_v57 }
 0x92b   :  { %3188 = vpow2.f32 %v2782_v44 }
 0x933   :  { %v3185_v15 = vpop.eup %3184 }
 0x934   :  { %v3187_v30 = vpop.eup %3186  ;;  %v2335_v42 = vadd.f32 1.0, %v3185_v15 }
 0x935   :  { %v3189_v10 = vpop.eup %3188  ;;  %v2337_v25 = vadd.f32 1.0, %v3187_v30 }
 0x936   :  { %v2336_v24 = vadd.f32 1.0, %v3189_v10 }
 0x937   :  { %3190 = vrcp.f32 %v2337_v25 }
 0x938   :  { %3192 = vrcp.f32 %v2336_v24 }
 0x939   :  { %3194 = vpow2.f32 %v2784_v41 }
 0x93a   :  { %3196 = vrcp.f32 %v2335_v42 }
 0x941   :  { %v3191_v7 = vpop.eup %3190 }
 0x942   :  { %v2347_v47 = vmul.f32 2.0, %v3191_v7  ;;  %v3193_v22 = vpop.eup %3192 }
 0x943   :  { %v3195_v58 = vpop.eup %3194  ;;  %v2349_v3 = vmul.f32 %v3193_v22, %v4953_v54 }
 0x944   :  { %v2785_v19 = vadd.f32 -1.0, %v2347_v47  ;;  %v2398_v32 = vpop.f32.mrb[56].mxu0  ;;  %v2439_v60 = vpop.f32.mrb[56].mxu1  ;;  %v2338_v20 = vadd.f32 1.0, %v3195_v58 }
 0x945   :  { %v3197_v45 = vpop.eup %3196  ;;  %v2446_v23 = vadd.f32 %v2398_v32, %v2360_v62  ;;  %v2448_v8 = vadd.f32 %v2439_v60, %v2362_v59  ;;  %v2400_v53 = vpop.f32.mrb[57].mxu0 }
 0x946   :  { %v2441_v50 = vpop.f32.mrb[57].mxu1  ;;  %v2350_v1 = vmul.f32 %v3197_v45, %v2785_v19  ;;  %v2447_v35 = vadd.f32 %v2400_v53, %v2361_v52  ;;  %v2402_v39 = vpop.f32.mrb[58].mxu0 }
 0x947   :  { %v2443_v43 = vpop.f32.mrb[58].mxu1  ;;  %v2786_v5 = vmul.f32 -1.442695, %v2446_v23  ;;  %v2788_v37 = vmul.f32 -1.442695, %v2448_v8  ;;  %v2403_v63 = vpop.f32.mrb[59].mxu0  ;;  %v2449_v36 = vadd.f32 %v2441_v50, %v2363_v21 }
 0x948   :  { %v2444_v0 = vpop.f32.mrb[59].mxu1  ;;  %v2787_v48 = vmul.f32 -1.442695, %v2447_v35  ;;  %v5061_v49 = vadd.f32 %v2350_v1, %v2349_v3 }
 0x949   :  { %3198 = vpow2.f32 %v2786_v5  ;;  %v2789_v12 = vmul.f32 -1.442695, %v2449_v36 }
 0x94a   :  { %3200 = vpow2.f32 %v2788_v37 }
 0x94b   :  { %3202 = vpow2.f32 %v2787_v48 }
 0x94c   :  { %3204 = vrcp.f32 %v2338_v20 }
 0x94d   :  { %3206 = vtanh.f32 %v5061_v49 }
 0x953   :  { %v3199_v54 = vpop.eup %3198 }
 0x954   :  { %v3201_v26 = vpop.eup %3200  ;;  %v2462_v61 = vadd.f32 1.0, %v3199_v54 }
 0x955   :  { %v3203_v4 = vpop.eup %3202  ;;  %v2464_v38 = vadd.f32 1.0, %v3201_v26 }
 0x956   :  { %v3205_v46 = vpop.eup %3204  ;;  %v2463_v56 = vadd.f32 1.0, %v3203_v4 }
 0x957   :  { %v3207_v31 = vpop.eup %3206  ;;  %3208 = vrcp.f32 %v2464_v38 }
 0x958   :  { %3210 = vpow2.f32 %v2789_v12  ;;  %v2353_v16 = vmul.f32 %v3207_v31, %v3205_v46 }
 0x959   :  { %3212 = vrcp.f32 %v2463_v56 }
 0x95a   :  { %v2354_v13 = vpack.c.bf16 %v2353_v16, %v2353_v16  ;;  %3214 = vrcp.f32 %v2462_v61 }
 0x95c   :  { %2356 = vst [vmem:[#allocation12 + $0x18] sm:$0xf] %v2354_v13  ;;  %2514 = vmatprep.mubr.bf16.mxu0 %v2354_v13  ;;  %2555 = vmatprep.mubr.bf16.mxu1 %v2354_v13 }
 0x961   :  { %v3209_v28 = vpop.eup %3208 }
 0x962   :  { %v3211_v33 = vpop.eup %3210  ;;  %v2474_v27 = vmul.f32 2.0, %v3209_v28 }
 0x963   :  { %v3213_v2 = vpop.eup %3212  ;;  %v2465_v14 = vadd.f32 1.0, %v3211_v33 }
 0x964   :  { %v2790_v18 = vadd.f32 -1.0, %v2474_v27  ;;  %v3215_v57 = vpop.eup %3214  ;;  %v2476_v44 = vmul.f32 %v3213_v2, %v4957_v51 }
 0x965   :  { %3216 = vrcp.f32 %v2465_v14 }
 0x966   :  { %v2477_v55 = vmul.f32 %v3215_v57, %v2790_v18 }
 0x968   :  { %v2478_v17 = vadd.f32 %v2477_v55, %v2476_v44 }
 0x96a   :  { %3218 = vtanh.f32 %v2478_v17 }
 0x96f   :  { %v3217_v15 = vpop.eup %3216 }
 0x974   :  { %v3219_v30 = vpop.eup %3218 }
 0x975   :  { %v2480_v10 = vmul.f32 %v3219_v30, %v3217_v15 }
 0x977   :  { %v2481_v25 = vpack.c.bf16 %v2480_v10, %v2480_v10 }
 0x979   :  { %2515 = vmatmul.mubr.bf16.vlgmr.msra.gmra.mrb[60].mxu0 %v2481_v25  ;;  %2556 = vmatmul.mubr.bf16.vlgmr.msra.gmra.mrb[60].mxu1 %v2481_v25 }
 0xa4c   :  { %v2516_v24 = vpop.f32.mrb[60].mxu0  ;;  %v2557_v41 = vpop.f32.mrb[60].mxu1 }
 0xa4d   :  { %v2517_v42 = vadd.f32 %v2516_v24, %v5834_v11  ;;  %v2558_v40 = vadd.f32 %v2557_v41, %v5835_v34  ;;  %v2518_v6 = vpop.f32.mrb[61].mxu0  ;;  %v2559_v7 = vpop.f32.mrb[61].mxu1 }
 0xa4e   :  { %v2519_v62 = vadd.f32 %v2518_v6, %v5836_v9  ;;  %v2520_v51 = vpop.f32.mrb[62].mxu0  ;;  %v2561_v59 = vpop.f32.mrb[62].mxu1  ;;  %v2560_v32 = vadd.f32 %v2559_v7, %v5837_v29 }
 0xa4f   :  { %v2791_v47 = vmul.f32 -1.442695, %v2517_v42  ;;  %v2793_v52 = vmul.f32 -1.442695, %v2558_v40  ;;  %v2521_v22 = vpop.f32.mrb[63].mxu0  ;;  %v2562_v58 = vpop.f32.mrb[63].mxu1 }
 0xa50   :  { %v2792_v19 = vmul.f32 -1.442695, %v2519_v62  ;;  %v2794_v45 = vmul.f32 -1.442695, %v2560_v32 }
 0xa51   :  { %3220 = vpow2.f32 %v2791_v47 }
 0xa52   :  { %3222 = vpow2.f32 %v2793_v52 }
 0xa53   :  { %3224 = vpow2.f32 %v2792_v19 }
 0xa5b   :  { %v3221_v60 = vpop.eup %3220 }
 0xa5c   :  { %v3223_v11 = vpop.eup %3222  ;;  %v2576_v53 = vadd.f32 1.0, %v3221_v60 }
 0xa5d   :  { %v3225_v34 = vpop.eup %3224  ;;  %v2578_v23 = vadd.f32 1.0, %v3223_v11 }
 0xa5e   :  { %v2577_v8 = vadd.f32 1.0, %v3225_v34 }
 0xa5f   :  { %3226 = vrcp.f32 %v2578_v23 }
 0xa60   :  { %3228 = vpow2.f32 %v2794_v45 }
 0xa61   :  { %3230 = vrcp.f32 %v2577_v8 }
 0xa62   :  { %3232 = vrcp.f32 %v2576_v53 }
 0xa69   :  { %v3227_v9 = vpop.eup %3226 }
 0xa6a   :  { %v3229_v50 = vpop.eup %3228  ;;  %v2588_v1 = vmul.f32 2.0, %v3227_v9 }
 0xa6b   :  { %v3231_v3 = vpop.eup %3230  ;;  %v2579_v43 = vadd.f32 1.0, %v3229_v50 }
 0xa6c   :  { %v2795_v35 = vadd.f32 -1.0, %v2588_v1  ;;  %v3233_v39 = vpop.eup %3232  ;;  %v2590_v29 = vmul.f32 %v3231_v3, %v5061_v49 }
 0xa6d   :  { %3234 = vrcp.f32 %v2579_v43 }
 0xa6e   :  { %v2591_v5 = vmul.f32 %v3233_v39, %v2795_v35 }
 0xa70   :  { %v2592_v37 = vadd.f32 %v2591_v5, %v2590_v29 }
 0xa72   :  { %3236 = vtanh.f32 %v2592_v37 }
 0xa77   :  { %v3235_v63 = vpop.eup %3234 }
 0xa7c   :  { %v3237_v0 = vpop.eup %3236 }
 0xa7d   :  { %v2594_v20 = vmul.f32 %v3237_v0, %v3235_v63 }
 0xa7f   :  { %v2595_v48 = vpack.c.bf16 %v2594_v20, %v2594_v20 }
 0xa81   :  { %2597 = vst [vmem:[#allocation12 + $0x1c] sm:$0xf] %v2595_v48 }
 0xa82   :  { %3507 = shalt.err (!%p3504_p0)
}
 0xa83   :  { %s3508_s30 = scalar_lea.hbm %s5086_s4, 512 }
 0xa84   :  { %p3509_p1 = scmp.ne.s32.totalorder %s5086_s4, %s3508_s30  ;;  %p3512_p2 = scmp.lt.u32.totalorder %s3508_s30, %s5086_s4 }
 0xa86   :  { %p3514_p3 = pnand %p3512_p2, %p3509_p1 }
 0xa88   :  { %3517 = shalt.err (!%p3514_p3)
}
 0xa89   :  { %s3532_s9 = smov 64   ;;  %s3533_s10 = smov 4  }
 0xa8a   :  { %2613 = dma.vmem_to_hbm [thread:$0]  %s2608_s26, 512, %s5086_s4, [#allocation8], %s3532_s9, %s3532_s9, %s3533_s10  }
 0xa8b   :  { %3522 = dma.done.wait [#allocation8], 512  }
 0xa8c   :  { %3523 = vsyncadd [#allocation8], 4294966784 }
 0xa8d   :  { %2617 = vsyncpa [#allocation7], 1 }
 0xa8e   :  { %2618 = vsyncpa [#allocation10], 1 }
 0xa8f   :  { %2619 = vsyncpa [#allocation8], 1 }

</bundles_post_ra>
